<compile_context>
chip_gen: v5e
topology: v5e:2x2
jax: 0.10.0
libtpu: 0.0.40
codegen_flags: <defaults>
</compile_context>

<pallas_src>
import jax
import jax.numpy as jnp
from jax.experimental import pallas as pl
from jax.experimental.pallas import tpu as pltpu

EPS = 1e-5  # torch.nn.InstanceNorm2d default


def _resnet_block_kernel(x_ref, w1_ref, b1_ref, w2_ref, b2_ref, o_ref):
    # x_ref / o_ref blocks: (1, H, W, C)   (NHWC, one image per grid step)
    # w*_ref blocks:        (9, C, C)      (tap-major, [kh*3+kw, Cin, Cout])
    # b*_ref blocks:        (1, C)
    x = x_ref[0].astype(jnp.float32)          # (H, W, C)
    H, W, C = x.shape

    def reflect_pad(img):
        # ReflectionPad2d(1): index -1 -> 1, index H -> H-2 (edge excluded).
        top = img[1:2, :, :]
        bot = img[H - 2:H - 1, :, :]
        img_h = jnp.concatenate([top, img, bot], axis=0)       # (H+2, W, C)
        left = img_h[:, 1:2, :]
        right = img_h[:, W - 2:W - 1, :]
        return jnp.concatenate([left, img_h, right], axis=1)   # (H+2, W+2, C)

    def conv3x3(img, w_ref, b_ref):
        # img: (H, W, C) f32  ->  (H*W, C) f32
        xp = reflect_pad(img)
        acc = jnp.zeros((H * W, C), dtype=jnp.float32)
        for kh in range(3):
            for kw in range(3):
                patch = xp[kh:kh + H, kw:kw + W, :].reshape(H * W, C)
                wk = w_ref[kh * 3 + kw]                        # (Cin, Cout)
                acc = acc + jnp.dot(patch, wk,
                                    preferred_element_type=jnp.float32)
        return acc + b_ref[...]                                # broadcast (1, C)

    def instance_norm(y):
        # y: (H*W, C); per-channel stats over the spatial axis (biased variance).
        mean = jnp.mean(y, axis=0, keepdims=True)
        var = jnp.mean(jnp.square(y - mean), axis=0, keepdims=True)
        return (y - mean) * jax.lax.rsqrt(var + EPS)

    h1 = instance_norm(conv3x3(x, w1_ref, b1_ref))
    h1 = jnp.maximum(h1, 0.0)                                  # ReLU
    h2 = instance_norm(conv3x3(h1.reshape(H, W, C), w2_ref, b2_ref))

    out = x.reshape(H * W, C) + h2                             # residual add
    o_ref[0] = out.reshape(H, W, C).astype(o_ref.dtype)


def resnet_block_forward(x_nchw, w1, b1, w2, b2):
    """x: (N, C, H, W) f32; w*: (C, C, 3, 3) [OIHW]; b*: (C,)."""
    N, C, H, W = x_nchw.shape
    assert H >= 2 and W >= 2, "reflection padding needs spatial >= 2"
    assert W % 8 == 0, "W must be a multiple of 8 (sublane-aligned flatten)"

    x_nhwc = jnp.transpose(x_nchw, (0, 2, 3, 1))               # (N, H, W, C)
    # OIHW -> (kh, kw, Cin, Cout) -> (9, Cin, Cout): tap-major, matmul-ready.
    w1r = jnp.transpose(w1, (2, 3, 1, 0)).reshape(9, C, C)
    w2r = jnp.transpose(w2, (2, 3, 1, 0)).reshape(9, C, C)
    b1r = b1.reshape(1, C)
    b2r = b2.reshape(1, C)

    flops = N * 2 * (2 * 9 * H * W * C * C)                    # two 3x3 convs
    bytes_accessed = 4 * (2 * N * H * W * C + 2 * 9 * C * C + 2 * C)

    out = pl.pallas_call(
        _resnet_block_kernel,
        out_shape=jax.ShapeDtypeStruct((N, H, W, C), x_nchw.dtype),
        grid_spec=pltpu.PrefetchScalarGridSpec(
            num_scalar_prefetch=0,
            grid=(N,),
            in_specs=[
                pl.BlockSpec((1, H, W, C), lambda n: (n, 0, 0, 0)),
                pl.BlockSpec((9, C, C), lambda n: (0, 0, 0)),
                pl.BlockSpec((1, C), lambda n: (0, 0)),
                pl.BlockSpec((9, C, C), lambda n: (0, 0, 0)),
                pl.BlockSpec((1, C), lambda n: (0, 0)),
            ],
            out_specs=pl.BlockSpec((1, H, W, C), lambda n: (n, 0, 0, 0)),
        ),
        compiler_params=pltpu.CompilerParams(
            dimension_semantics=("parallel",)),
        cost_estimate=pl.CostEstimate(
            flops=flops, transcendentals=4 * N * C,
            bytes_accessed=bytes_accessed),
    )(x_nhwc, w1r, b1r, w2r, b2r)
    return jnp.transpose(out, (0, 3, 1, 2))                    # back to NCHW


def resnet_block_ref(x, w1, b1, w2, b2):
    """Pure-JAX reference matching the PyTorch ResnetBlock forward."""
    def conv(inp, w, b):
        xp = jnp.pad(inp, ((0, 0), (0, 0), (1, 1), (1, 1)), mode='reflect')
        y = jax.lax.conv_general_dilated(
            xp, w, window_strides=(1, 1), padding='VALID',
            dimension_numbers=('NCHW', 'OIHW', 'NCHW'))
        return y + b[None, :, None, None]

    def inorm(y):
        mean = jnp.mean(y, axis=(2, 3), keepdims=True)
        var = jnp.mean(jnp.square(y - mean), axis=(2, 3), keepdims=True)
        return (y - mean) * jax.lax.rsqrt(var + EPS)

    h = jax.nn.relu(inorm(conv(x, w1, b1)))
    h = inorm(conv(h, w2, b2))
    return x + h


if __name__ == "__main__":
    key = jax.random.PRNGKey(0)
    N, C, H, W = 2, 4, 16, 16
    k1, k2, k3, k4, k5 = jax.random.split(key, 5)

    def bf16_round(a):
        # Make inputs exactly bf16-representable so MXU input rounding is
        # identical between the Pallas kernel and the XLA reference conv.
        return a.astype(jnp.bfloat16).astype(jnp.float32)

    scale = 1.0 / jnp.sqrt(jnp.float32(C * 9))
    x = bf16_round(jax.random.normal(k1, (N, C, H, W), dtype=jnp.float32))
    w1 = bf16_round(jax.random.normal(k2, (C, C, 3, 3), dtype=jnp.float32) * scale)
    w2 = bf16_round(jax.random.normal(k3, (C, C, 3, 3), dtype=jnp.float32) * scale)
    b1 = bf16_round(jax.random.normal(k4, (C,), dtype=jnp.float32) * 0.1)
    b2 = bf16_round(jax.random.normal(k5, (C,), dtype=jnp.float32) * 0.1)

    out = jax.block_until_ready(resnet_block_forward(x, w1, b1, w2, b2))
    ref = resnet_block_ref(x, w1, b1, w2, b2)

    assert out.shape == ref.shape and out.dtype == ref.dtype
    assert bool(jnp.allclose(out, ref, atol=1e-3, rtol=1e-3)), \
        "Pallas ResnetBlock mismatch vs reference"
    print("KERNEL_OK")
</pallas_src>

<mosaic_0001>
module attributes {stable_mosaic.version = 11 : i64} {
  func.func @_resnet_block_kernel(%arg0: i32, %arg1: memref<1x16x16x4xf32, #tpu.memory_space<vmem>>, %arg2: memref<9x4x4xf32, #tpu.memory_space<vmem>>, %arg3: memref<1x4xf32, #tpu.memory_space<vmem>>, %arg4: memref<9x4x4xf32, #tpu.memory_space<vmem>>, %arg5: memref<1x4xf32, #tpu.memory_space<vmem>>, %arg6: memref<1x16x16x4xf32, #tpu.memory_space<vmem>>) attributes {dimension_semantics = [#tpu.dimension_semantics<parallel>], iteration_bounds = array<i64: 2>, scalar_prefetch = 0 : i64, scratch_operands = 0 : i64, tpu.core_type = #tpu.core_type<tc>, window_params = [{transform_indices = @transform_0, window_bounds = array<i64: 1, 16, 16, 4>}, {pipeline_mode = #tpu.pipeline_mode<synchronous>, transform_indices = @transform_1, window_bounds = array<i64: 9, 4, 4>}, {pipeline_mode = #tpu.pipeline_mode<synchronous>, transform_indices = @transform_2, window_bounds = array<i64: 1, 4>}, {pipeline_mode = #tpu.pipeline_mode<synchronous>, transform_indices = @transform_3, window_bounds = array<i64: 9, 4, 4>}, {pipeline_mode = #tpu.pipeline_mode<synchronous>, transform_indices = @transform_4, window_bounds = array<i64: 1, 4>}, {transform_indices = @transform_5, window_bounds = array<i64: 1, 16, 16, 4>}]} {
    %c0 = arith.constant 0 : index
    %c0_0 = arith.constant 0 : index
    %c0_1 = arith.constant 0 : index
    %c0_2 = arith.constant 0 : index
    %0 = vector.load %arg1[%c0, %c0_0, %c0_1, %c0_2] : memref<1x16x16x4xf32, #tpu.memory_space<vmem>>, vector<1x16x16x4xf32>
    %1 = vector.shape_cast %0 : vector<1x16x16x4xf32> to vector<16x16x4xf32>
    %2 = vector.extract_strided_slice %1 {offsets = [1, 0, 0], sizes = [1, 16, 4], strides = [1, 1, 1]} : vector<16x16x4xf32> to vector<1x16x4xf32>
    %3 = vector.extract_strided_slice %1 {offsets = [14, 0, 0], sizes = [1, 16, 4], strides = [1, 1, 1]} : vector<16x16x4xf32> to vector<1x16x4xf32>
    %4 = tpu.concatenate %2, %1, %3 in 0 : vector<1x16x4xf32>, vector<16x16x4xf32>, vector<1x16x4xf32> -> vector<18x16x4xf32>
    %5 = vector.extract_strided_slice %4 {offsets = [0, 1, 0], sizes = [18, 1, 4], strides = [1, 1, 1]} : vector<18x16x4xf32> to vector<18x1x4xf32>
    %6 = vector.extract_strided_slice %4 {offsets = [0, 14, 0], sizes = [18, 1, 4], strides = [1, 1, 1]} : vector<18x16x4xf32> to vector<18x1x4xf32>
    %7 = tpu.concatenate %5, %4, %6 in 1 : vector<18x1x4xf32>, vector<18x16x4xf32>, vector<18x1x4xf32> -> vector<18x18x4xf32>
    %cst = arith.constant 0.000000e+00 : f32
    %8 = vector.broadcast %cst : f32 to vector<256x4xf32>
    %9 = vector.extract_strided_slice %7 {offsets = [0, 0, 0], sizes = [16, 16, 4], strides = [1, 1, 1]} : vector<18x18x4xf32> to vector<16x16x4xf32>
    %10 = vector.shape_cast %9 : vector<16x16x4xf32> to vector<256x4xf32>
    %c0_3 = arith.constant 0 : index
    %c0_4 = arith.constant 0 : index
    %c0_5 = arith.constant 0 : index
    %11 = vector.load %arg2[%c0_3, %c0_4, %c0_5] : memref<9x4x4xf32, #tpu.memory_space<vmem>>, vector<1x4x4xf32>
    %12 = vector.shape_cast %11 : vector<1x4x4xf32> to vector<4x4xf32>
    %cst_6 = arith.constant dense<0.000000e+00> : vector<256x4xf32>
    %13 = tpu.matmul %10, %12, %cst_6 {dimension_numbers = #tpu.dot_dimension_numbers<[1], [0], [0], [1], [0, 0, 1, 1], [], []>} : vector<256x4xf32>, vector<4x4xf32>, vector<256x4xf32> -> vector<256x4xf32>
    %14 = arith.addf %8, %13 : vector<256x4xf32>
    %15 = vector.extract_strided_slice %7 {offsets = [0, 1, 0], sizes = [16, 16, 4], strides = [1, 1, 1]} : vector<18x18x4xf32> to vector<16x16x4xf32>
    %16 = vector.shape_cast %15 : vector<16x16x4xf32> to vector<256x4xf32>
    %c1 = arith.constant 1 : index
    %c0_7 = arith.constant 0 : index
    %c0_8 = arith.constant 0 : index
    %17 = vector.load %arg2[%c1, %c0_7, %c0_8] : memref<9x4x4xf32, #tpu.memory_space<vmem>>, vector<1x4x4xf32>
    %18 = vector.shape_cast %17 : vector<1x4x4xf32> to vector<4x4xf32>
    %cst_9 = arith.constant dense<0.000000e+00> : vector<256x4xf32>
    %19 = tpu.matmul %16, %18, %cst_9 {dimension_numbers = #tpu.dot_dimension_numbers<[1], [0], [0], [1], [0, 0, 1, 1], [], []>} : vector<256x4xf32>, vector<4x4xf32>, vector<256x4xf32> -> vector<256x4xf32>
    %20 = arith.addf %14, %19 : vector<256x4xf32>
    %21 = vector.extract_strided_slice %7 {offsets = [0, 2, 0], sizes = [16, 16, 4], strides = [1, 1, 1]} : vector<18x18x4xf32> to vector<16x16x4xf32>
    %22 = vector.shape_cast %21 : vector<16x16x4xf32> to vector<256x4xf32>
    %c2 = arith.constant 2 : index
    %c0_10 = arith.constant 0 : index
    %c0_11 = arith.constant 0 : index
    %23 = vector.load %arg2[%c2, %c0_10, %c0_11] : memref<9x4x4xf32, #tpu.memory_space<vmem>>, vector<1x4x4xf32>
    %24 = vector.shape_cast %23 : vector<1x4x4xf32> to vector<4x4xf32>
    %cst_12 = arith.constant dense<0.000000e+00> : vector<256x4xf32>
    %25 = tpu.matmul %22, %24, %cst_12 {dimension_numbers = #tpu.dot_dimension_numbers<[1], [0], [0], [1], [0, 0, 1, 1], [], []>} : vector<256x4xf32>, vector<4x4xf32>, vector<256x4xf32> -> vector<256x4xf32>
    %26 = arith.addf %20, %25 : vector<256x4xf32>
    %27 = vector.extract_strided_slice %7 {offsets = [1, 0, 0], sizes = [16, 16, 4], strides = [1, 1, 1]} : vector<18x18x4xf32> to vector<16x16x4xf32>
    %28 = vector.shape_cast %27 : vector<16x16x4xf32> to vector<256x4xf32>
    %c3 = arith.constant 3 : index
    %c0_13 = arith.constant 0 : index
    %c0_14 = arith.constant 0 : index
    %29 = vector.load %arg2[%c3, %c0_13, %c0_14] : memref<9x4x4xf32, #tpu.memory_space<vmem>>, vector<1x4x4xf32>
    %30 = vector.shape_cast %29 : vector<1x4x4xf32> to vector<4x4xf32>
    %cst_15 = arith.constant dense<0.000000e+00> : vector<256x4xf32>
    %31 = tpu.matmul %28, %30, %cst_15 {dimension_numbers = #tpu.dot_dimension_numbers<[1], [0], [0], [1], [0, 0, 1, 1], [], []>} : vector<256x4xf32>, vector<4x4xf32>, vector<256x4xf32> -> vector<256x4xf32>
    %32 = arith.addf %26, %31 : vector<256x4xf32>
    %33 = vector.extract_strided_slice %7 {offsets = [1, 1, 0], sizes = [16, 16, 4], strides = [1, 1, 1]} : vector<18x18x4xf32> to vector<16x16x4xf32>
    %34 = vector.shape_cast %33 : vector<16x16x4xf32> to vector<256x4xf32>
    %c4 = arith.constant 4 : index
    %c0_16 = arith.constant 0 : index
    %c0_17 = arith.constant 0 : index
    %35 = vector.load %arg2[%c4, %c0_16, %c0_17] : memref<9x4x4xf32, #tpu.memory_space<vmem>>, vector<1x4x4xf32>
    %36 = vector.shape_cast %35 : vector<1x4x4xf32> to vector<4x4xf32>
    %cst_18 = arith.constant dense<0.000000e+00> : vector<256x4xf32>
    %37 = tpu.matmul %34, %36, %cst_18 {dimension_numbers = #tpu.dot_dimension_numbers<[1], [0], [0], [1], [0, 0, 1, 1], [], []>} : vector<256x4xf32>, vector<4x4xf32>, vector<256x4xf32> -> vector<256x4xf32>
    %38 = arith.addf %32, %37 : vector<256x4xf32>
    %39 = vector.extract_strided_slice %7 {offsets = [1, 2, 0], sizes = [16, 16, 4], strides = [1, 1, 1]} : vector<18x18x4xf32> to vector<16x16x4xf32>
    %40 = vector.shape_cast %39 : vector<16x16x4xf32> to vector<256x4xf32>
    %c5 = arith.constant 5 : index
    %c0_19 = arith.constant 0 : index
    %c0_20 = arith.constant 0 : index
    %41 = vector.load %arg2[%c5, %c0_19, %c0_20] : memref<9x4x4xf32, #tpu.memory_space<vmem>>, vector<1x4x4xf32>
    %42 = vector.shape_cast %41 : vector<1x4x4xf32> to vector<4x4xf32>
    %cst_21 = arith.constant dense<0.000000e+00> : vector<256x4xf32>
    %43 = tpu.matmul %40, %42, %cst_21 {dimension_numbers = #tpu.dot_dimension_numbers<[1], [0], [0], [1], [0, 0, 1, 1], [], []>} : vector<256x4xf32>, vector<4x4xf32>, vector<256x4xf32> -> vector<256x4xf32>
    %44 = arith.addf %38, %43 : vector<256x4xf32>
    %45 = vector.extract_strided_slice %7 {offsets = [2, 0, 0], sizes = [16, 16, 4], strides = [1, 1, 1]} : vector<18x18x4xf32> to vector<16x16x4xf32>
    %46 = vector.shape_cast %45 : vector<16x16x4xf32> to vector<256x4xf32>
    %c6 = arith.constant 6 : index
    %c0_22 = arith.constant 0 : index
    %c0_23 = arith.constant 0 : index
    %47 = vector.load %arg2[%c6, %c0_22, %c0_23] : memref<9x4x4xf32, #tpu.memory_space<vmem>>, vector<1x4x4xf32>
    %48 = vector.shape_cast %47 : vector<1x4x4xf32> to vector<4x4xf32>
    %cst_24 = arith.constant dense<0.000000e+00> : vector<256x4xf32>
    %49 = tpu.matmul %46, %48, %cst_24 {dimension_numbers = #tpu.dot_dimension_numbers<[1], [0], [0], [1], [0, 0, 1, 1], [], []>} : vector<256x4xf32>, vector<4x4xf32>, vector<256x4xf32> -> vector<256x4xf32>
    %50 = arith.addf %44, %49 : vector<256x4xf32>
    %51 = vector.extract_strided_slice %7 {offsets = [2, 1, 0], sizes = [16, 16, 4], strides = [1, 1, 1]} : vector<18x18x4xf32> to vector<16x16x4xf32>
    %52 = vector.shape_cast %51 : vector<16x16x4xf32> to vector<256x4xf32>
    %c7 = arith.constant 7 : index
    %c0_25 = arith.constant 0 : index
    %c0_26 = arith.constant 0 : index
    %53 = vector.load %arg2[%c7, %c0_25, %c0_26] : memref<9x4x4xf32, #tpu.memory_space<vmem>>, vector<1x4x4xf32>
    %54 = vector.shape_cast %53 : vector<1x4x4xf32> to vector<4x4xf32>
    %cst_27 = arith.constant dense<0.000000e+00> : vector<256x4xf32>
    %55 = tpu.matmul %52, %54, %cst_27 {dimension_numbers = #tpu.dot_dimension_numbers<[1], [0], [0], [1], [0, 0, 1, 1], [], []>} : vector<256x4xf32>, vector<4x4xf32>, vector<256x4xf32> -> vector<256x4xf32>
    %56 = arith.addf %50, %55 : vector<256x4xf32>
    %57 = vector.extract_strided_slice %7 {offsets = [2, 2, 0], sizes = [16, 16, 4], strides = [1, 1, 1]} : vector<18x18x4xf32> to vector<16x16x4xf32>
    %58 = vector.shape_cast %57 : vector<16x16x4xf32> to vector<256x4xf32>
    %c8 = arith.constant 8 : index
    %c0_28 = arith.constant 0 : index
    %c0_29 = arith.constant 0 : index
    %59 = vector.load %arg2[%c8, %c0_28, %c0_29] : memref<9x4x4xf32, #tpu.memory_space<vmem>>, vector<1x4x4xf32>
    %60 = vector.shape_cast %59 : vector<1x4x4xf32> to vector<4x4xf32>
    %cst_30 = arith.constant dense<0.000000e+00> : vector<256x4xf32>
    %61 = tpu.matmul %58, %60, %cst_30 {dimension_numbers = #tpu.dot_dimension_numbers<[1], [0], [0], [1], [0, 0, 1, 1], [], []>} : vector<256x4xf32>, vector<4x4xf32>, vector<256x4xf32> -> vector<256x4xf32>
    %62 = arith.addf %56, %61 : vector<256x4xf32>
    %c0_31 = arith.constant 0 : index
    %c0_32 = arith.constant 0 : index
    %63 = vector.load %arg3[%c0_31, %c0_32] : memref<1x4xf32, #tpu.memory_space<vmem>>, vector<1x4xf32>
    %64 = vector.broadcast %63 : vector<1x4xf32> to vector<256x4xf32>
    %65 = arith.addf %62, %64 : vector<256x4xf32>
    %cst_33 = arith.constant dense<0.000000e+00> : vector<4xf32>
    %66 = vector.multi_reduction <add>, %65, %cst_33 [0] : vector<256x4xf32> to vector<4xf32>
    %67 = vector.shape_cast %66 : vector<4xf32> to vector<1x4xf32>
    %cst_34 = arith.constant 2.560000e+02 : f32
    %68 = vector.broadcast %cst_34 : f32 to vector<1x4xf32>
    %69 = arith.divf %67, %68 : vector<1x4xf32>
    %70 = vector.broadcast %69 : vector<1x4xf32> to vector<256x4xf32>
    %71 = arith.subf %65, %70 : vector<256x4xf32>
    %72 = arith.mulf %71, %71 : vector<256x4xf32>
    %cst_35 = arith.constant dense<0.000000e+00> : vector<4xf32>
    %73 = vector.multi_reduction <add>, %72, %cst_35 [0] : vector<256x4xf32> to vector<4xf32>
    %74 = vector.shape_cast %73 : vector<4xf32> to vector<1x4xf32>
    %cst_36 = arith.constant 2.560000e+02 : f32
    %75 = vector.broadcast %cst_36 : f32 to vector<1x4xf32>
    %76 = arith.divf %74, %75 : vector<1x4xf32>
    %77 = vector.broadcast %69 : vector<1x4xf32> to vector<256x4xf32>
    %78 = arith.subf %65, %77 : vector<256x4xf32>
    %cst_37 = arith.constant 9.99999974E-6 : f32
    %79 = vector.broadcast %cst_37 : f32 to vector<1x4xf32>
    %80 = arith.addf %76, %79 : vector<1x4xf32>
    %81 = math.rsqrt %80 : vector<1x4xf32>
    %82 = vector.broadcast %81 : vector<1x4xf32> to vector<256x4xf32>
    %83 = arith.mulf %78, %82 : vector<256x4xf32>
    %cst_38 = arith.constant 0.000000e+00 : f32
    %84 = vector.broadcast %cst_38 : f32 to vector<256x4xf32>
    %85 = arith.maximumf %83, %84 : vector<256x4xf32>
    %86 = vector.shape_cast %85 : vector<256x4xf32> to vector<16x16x4xf32>
    %87 = vector.extract_strided_slice %86 {offsets = [1, 0, 0], sizes = [1, 16, 4], strides = [1, 1, 1]} : vector<16x16x4xf32> to vector<1x16x4xf32>
    %88 = vector.extract_strided_slice %86 {offsets = [14, 0, 0], sizes = [1, 16, 4], strides = [1, 1, 1]} : vector<16x16x4xf32> to vector<1x16x4xf32>
    %89 = tpu.concatenate %87, %86, %88 in 0 : vector<1x16x4xf32>, vector<16x16x4xf32>, vector<1x16x4xf32> -> vector<18x16x4xf32>
    %90 = vector.extract_strided_slice %89 {offsets = [0, 1, 0], sizes = [18, 1, 4], strides = [1, 1, 1]} : vector<18x16x4xf32> to vector<18x1x4xf32>
    %91 = vector.extract_strided_slice %89 {offsets = [0, 14, 0], sizes = [18, 1, 4], strides = [1, 1, 1]} : vector<18x16x4xf32> to vector<18x1x4xf32>
    %92 = tpu.concatenate %90, %89, %91 in 1 : vector<18x1x4xf32>, vector<18x16x4xf32>, vector<18x1x4xf32> -> vector<18x18x4xf32>
    %cst_39 = arith.constant 0.000000e+00 : f32
    %93 = vector.broadcast %cst_39 : f32 to vector<256x4xf32>
    %94 = vector.extract_strided_slice %92 {offsets = [0, 0, 0], sizes = [16, 16, 4], strides = [1, 1, 1]} : vector<18x18x4xf32> to vector<16x16x4xf32>
    %95 = vector.shape_cast %94 : vector<16x16x4xf32> to vector<256x4xf32>
    %c0_40 = arith.constant 0 : index
    %c0_41 = arith.constant 0 : index
    %c0_42 = arith.constant 0 : index
    %96 = vector.load %arg4[%c0_40, %c0_41, %c0_42] : memref<9x4x4xf32, #tpu.memory_space<vmem>>, vector<1x4x4xf32>
    %97 = vector.shape_cast %96 : vector<1x4x4xf32> to vector<4x4xf32>
    %cst_43 = arith.constant dense<0.000000e+00> : vector<256x4xf32>
    %98 = tpu.matmul %95, %97, %cst_43 {dimension_numbers = #tpu.dot_dimension_numbers<[1], [0], [0], [1], [0, 0, 1, 1], [], []>} : vector<256x4xf32>, vector<4x4xf32>, vector<256x4xf32> -> vector<256x4xf32>
    %99 = arith.addf %93, %98 : vector<256x4xf32>
    %100 = vector.extract_strided_slice %92 {offsets = [0, 1, 0], sizes = [16, 16, 4], strides = [1, 1, 1]} : vector<18x18x4xf32> to vector<16x16x4xf32>
    %101 = vector.shape_cast %100 : vector<16x16x4xf32> to vector<256x4xf32>
    %c1_44 = arith.constant 1 : index
    %c0_45 = arith.constant 0 : index
    %c0_46 = arith.constant 0 : index
    %102 = vector.load %arg4[%c1_44, %c0_45, %c0_46] : memref<9x4x4xf32, #tpu.memory_space<vmem>>, vector<1x4x4xf32>
    %103 = vector.shape_cast %102 : vector<1x4x4xf32> to vector<4x4xf32>
    %cst_47 = arith.constant dense<0.000000e+00> : vector<256x4xf32>
    %104 = tpu.matmul %101, %103, %cst_47 {dimension_numbers = #tpu.dot_dimension_numbers<[1], [0], [0], [1], [0, 0, 1, 1], [], []>} : vector<256x4xf32>, vector<4x4xf32>, vector<256x4xf32> -> vector<256x4xf32>
    %105 = arith.addf %99, %104 : vector<256x4xf32>
    %106 = vector.extract_strided_slice %92 {offsets = [0, 2, 0], sizes = [16, 16, 4], strides = [1, 1, 1]} : vector<18x18x4xf32> to vector<16x16x4xf32>
    %107 = vector.shape_cast %106 : vector<16x16x4xf32> to vector<256x4xf32>
    %c2_48 = arith.constant 2 : index
    %c0_49 = arith.constant 0 : index
    %c0_50 = arith.constant 0 : index
    %108 = vector.load %arg4[%c2_48, %c0_49, %c0_50] : memref<9x4x4xf32, #tpu.memory_space<vmem>>, vector<1x4x4xf32>
    %109 = vector.shape_cast %108 : vector<1x4x4xf32> to vector<4x4xf32>
    %cst_51 = arith.constant dense<0.000000e+00> : vector<256x4xf32>
    %110 = tpu.matmul %107, %109, %cst_51 {dimension_numbers = #tpu.dot_dimension_numbers<[1], [0], [0], [1], [0, 0, 1, 1], [], []>} : vector<256x4xf32>, vector<4x4xf32>, vector<256x4xf32> -> vector<256x4xf32>
    %111 = arith.addf %105, %110 : vector<256x4xf32>
    %112 = vector.extract_strided_slice %92 {offsets = [1, 0, 0], sizes = [16, 16, 4], strides = [1, 1, 1]} : vector<18x18x4xf32> to vector<16x16x4xf32>
    %113 = vector.shape_cast %112 : vector<16x16x4xf32> to vector<256x4xf32>
    %c3_52 = arith.constant 3 : index
    %c0_53 = arith.constant 0 : index
    %c0_54 = arith.constant 0 : index
    %114 = vector.load %arg4[%c3_52, %c0_53, %c0_54] : memref<9x4x4xf32, #tpu.memory_space<vmem>>, vector<1x4x4xf32>
    %115 = vector.shape_cast %114 : vector<1x4x4xf32> to vector<4x4xf32>
    %cst_55 = arith.constant dense<0.000000e+00> : vector<256x4xf32>
    %116 = tpu.matmul %113, %115, %cst_55 {dimension_numbers = #tpu.dot_dimension_numbers<[1], [0], [0], [1], [0, 0, 1, 1], [], []>} : vector<256x4xf32>, vector<4x4xf32>, vector<256x4xf32> -> vector<256x4xf32>
    %117 = arith.addf %111, %116 : vector<256x4xf32>
    %118 = vector.extract_strided_slice %92 {offsets = [1, 1, 0], sizes = [16, 16, 4], strides = [1, 1, 1]} : vector<18x18x4xf32> to vector<16x16x4xf32>
    %119 = vector.shape_cast %118 : vector<16x16x4xf32> to vector<256x4xf32>
    %c4_56 = arith.constant 4 : index
    %c0_57 = arith.constant 0 : index
    %c0_58 = arith.constant 0 : index
    %120 = vector.load %arg4[%c4_56, %c0_57, %c0_58] : memref<9x4x4xf32, #tpu.memory_space<vmem>>, vector<1x4x4xf32>
    %121 = vector.shape_cast %120 : vector<1x4x4xf32> to vector<4x4xf32>
    %cst_59 = arith.constant dense<0.000000e+00> : vector<256x4xf32>
    %122 = tpu.matmul %119, %121, %cst_59 {dimension_numbers = #tpu.dot_dimension_numbers<[1], [0], [0], [1], [0, 0, 1, 1], [], []>} : vector<256x4xf32>, vector<4x4xf32>, vector<256x4xf32> -> vector<256x4xf32>
    %123 = arith.addf %117, %122 : vector<256x4xf32>
    %124 = vector.extract_strided_slice %92 {offsets = [1, 2, 0], sizes = [16, 16, 4], strides = [1, 1, 1]} : vector<18x18x4xf32> to vector<16x16x4xf32>
    %125 = vector.shape_cast %124 : vector<16x16x4xf32> to vector<256x4xf32>
    %c5_60 = arith.constant 5 : index
    %c0_61 = arith.constant 0 : index
    %c0_62 = arith.constant 0 : index
    %126 = vector.load %arg4[%c5_60, %c0_61, %c0_62] : memref<9x4x4xf32, #tpu.memory_space<vmem>>, vector<1x4x4xf32>
    %127 = vector.shape_cast %126 : vector<1x4x4xf32> to vector<4x4xf32>
    %cst_63 = arith.constant dense<0.000000e+00> : vector<256x4xf32>
    %128 = tpu.matmul %125, %127, %cst_63 {dimension_numbers = #tpu.dot_dimension_numbers<[1], [0], [0], [1], [0, 0, 1, 1], [], []>} : vector<256x4xf32>, vector<4x4xf32>, vector<256x4xf32> -> vector<256x4xf32>
    %129 = arith.addf %123, %128 : vector<256x4xf32>
    %130 = vector.extract_strided_slice %92 {offsets = [2, 0, 0], sizes = [16, 16, 4], strides = [1, 1, 1]} : vector<18x18x4xf32> to vector<16x16x4xf32>
    %131 = vector.shape_cast %130 : vector<16x16x4xf32> to vector<256x4xf32>
    %c6_64 = arith.constant 6 : index
    %c0_65 = arith.constant 0 : index
    %c0_66 = arith.constant 0 : index
    %132 = vector.load %arg4[%c6_64, %c0_65, %c0_66] : memref<9x4x4xf32, #tpu.memory_space<vmem>>, vector<1x4x4xf32>
    %133 = vector.shape_cast %132 : vector<1x4x4xf32> to vector<4x4xf32>
    %cst_67 = arith.constant dense<0.000000e+00> : vector<256x4xf32>
    %134 = tpu.matmul %131, %133, %cst_67 {dimension_numbers = #tpu.dot_dimension_numbers<[1], [0], [0], [1], [0, 0, 1, 1], [], []>} : vector<256x4xf32>, vector<4x4xf32>, vector<256x4xf32> -> vector<256x4xf32>
    %135 = arith.addf %129, %134 : vector<256x4xf32>
    %136 = vector.extract_strided_slice %92 {offsets = [2, 1, 0], sizes = [16, 16, 4], strides = [1, 1, 1]} : vector<18x18x4xf32> to vector<16x16x4xf32>
    %137 = vector.shape_cast %136 : vector<16x16x4xf32> to vector<256x4xf32>
    %c7_68 = arith.constant 7 : index
    %c0_69 = arith.constant 0 : index
    %c0_70 = arith.constant 0 : index
    %138 = vector.load %arg4[%c7_68, %c0_69, %c0_70] : memref<9x4x4xf32, #tpu.memory_space<vmem>>, vector<1x4x4xf32>
    %139 = vector.shape_cast %138 : vector<1x4x4xf32> to vector<4x4xf32>
    %cst_71 = arith.constant dense<0.000000e+00> : vector<256x4xf32>
    %140 = tpu.matmul %137, %139, %cst_71 {dimension_numbers = #tpu.dot_dimension_numbers<[1], [0], [0], [1], [0, 0, 1, 1], [], []>} : vector<256x4xf32>, vector<4x4xf32>, vector<256x4xf32> -> vector<256x4xf32>
    %141 = arith.addf %135, %140 : vector<256x4xf32>
    %142 = vector.extract_strided_slice %92 {offsets = [2, 2, 0], sizes = [16, 16, 4], strides = [1, 1, 1]} : vector<18x18x4xf32> to vector<16x16x4xf32>
    %143 = vector.shape_cast %142 : vector<16x16x4xf32> to vector<256x4xf32>
    %c8_72 = arith.constant 8 : index
    %c0_73 = arith.constant 0 : index
    %c0_74 = arith.constant 0 : index
    %144 = vector.load %arg4[%c8_72, %c0_73, %c0_74] : memref<9x4x4xf32, #tpu.memory_space<vmem>>, vector<1x4x4xf32>
    %145 = vector.shape_cast %144 : vector<1x4x4xf32> to vector<4x4xf32>
    %cst_75 = arith.constant dense<0.000000e+00> : vector<256x4xf32>
    %146 = tpu.matmul %143, %145, %cst_75 {dimension_numbers = #tpu.dot_dimension_numbers<[1], [0], [0], [1], [0, 0, 1, 1], [], []>} : vector<256x4xf32>, vector<4x4xf32>, vector<256x4xf32> -> vector<256x4xf32>
    %147 = arith.addf %141, %146 : vector<256x4xf32>
    %c0_76 = arith.constant 0 : index
    %c0_77 = arith.constant 0 : index
    %148 = vector.load %arg5[%c0_76, %c0_77] : memref<1x4xf32, #tpu.memory_space<vmem>>, vector<1x4xf32>
    %149 = vector.broadcast %148 : vector<1x4xf32> to vector<256x4xf32>
    %150 = arith.addf %147, %149 : vector<256x4xf32>
    %cst_78 = arith.constant dense<0.000000e+00> : vector<4xf32>
    %151 = vector.multi_reduction <add>, %150, %cst_78 [0] : vector<256x4xf32> to vector<4xf32>
    %152 = vector.shape_cast %151 : vector<4xf32> to vector<1x4xf32>
    %cst_79 = arith.constant 2.560000e+02 : f32
    %153 = vector.broadcast %cst_79 : f32 to vector<1x4xf32>
    %154 = arith.divf %152, %153 : vector<1x4xf32>
    %155 = vector.broadcast %154 : vector<1x4xf32> to vector<256x4xf32>
    %156 = arith.subf %150, %155 : vector<256x4xf32>
    %157 = arith.mulf %156, %156 : vector<256x4xf32>
    %cst_80 = arith.constant dense<0.000000e+00> : vector<4xf32>
    %158 = vector.multi_reduction <add>, %157, %cst_80 [0] : vector<256x4xf32> to vector<4xf32>
    %159 = vector.shape_cast %158 : vector<4xf32> to vector<1x4xf32>
    %cst_81 = arith.constant 2.560000e+02 : f32
    %160 = vector.broadcast %cst_81 : f32 to vector<1x4xf32>
    %161 = arith.divf %159, %160 : vector<1x4xf32>
    %162 = vector.broadcast %154 : vector<1x4xf32> to vector<256x4xf32>
    %163 = arith.subf %150, %162 : vector<256x4xf32>
    %cst_82 = arith.constant 9.99999974E-6 : f32
    %164 = vector.broadcast %cst_82 : f32 to vector<1x4xf32>
    %165 = arith.addf %161, %164 : vector<1x4xf32>
    %166 = math.rsqrt %165 : vector<1x4xf32>
    %167 = vector.broadcast %166 : vector<1x4xf32> to vector<256x4xf32>
    %168 = arith.mulf %163, %167 : vector<256x4xf32>
    %169 = vector.shape_cast %1 : vector<16x16x4xf32> to vector<256x4xf32>
    %170 = arith.addf %169, %168 : vector<256x4xf32>
    %171 = vector.shape_cast %170 : vector<256x4xf32> to vector<16x16x4xf32>
    %c0_83 = arith.constant 0 : index
    %c0_84 = arith.constant 0 : index
    %c0_85 = arith.constant 0 : index
    %c0_86 = arith.constant 0 : index
    %172 = vector.load %arg6[%c0_83, %c0_84, %c0_85, %c0_86] : memref<1x16x16x4xf32, #tpu.memory_space<vmem>>, vector<1x16x16x4xf32>
    %173 = vector.shape_cast %172 : vector<1x16x16x4xf32> to vector<16x16x4xf32>
    %174 = vector.shape_cast %171 : vector<16x16x4xf32> to vector<1x16x16x4xf32>
    tpu.vector_store %arg6[%c0_83, %c0_84, %c0_85, %c0_86], %174 {strides = array<i32>} : memref<1x16x16x4xf32, #tpu.memory_space<vmem>>, vector<1x16x16x4xf32>,
    return
  }
  func.func @transform_0(%arg0: i32) -> (i32, i32, i32, i32) {
    %c0_i32 = arith.constant 0 : i32
    %c0_i32_0 = arith.constant 0 : i32
    %c0_i32_1 = arith.constant 0 : i32
    %c0_i32_2 = arith.constant 0 : i32
    return %arg0, %c0_i32, %c0_i32_0, %c0_i32_1 : i32, i32, i32, i32
  }
  func.func @transform_1(%arg0: i32) -> (i32, i32, i32) {
    %c0_i32 = arith.constant 0 : i32
    %c0_i32_0 = arith.constant 0 : i32
    %c0_i32_1 = arith.constant 0 : i32
    %c0_i32_2 = arith.constant 0 : i32
    return %c0_i32, %c0_i32_0, %c0_i32_1 : i32, i32, i32
  }
  func.func @transform_2(%arg0: i32) -> (i32, i32) {
    %c0_i32 = arith.constant 0 : i32
    %c0_i32_0 = arith.constant 0 : i32
    %c0_i32_1 = arith.constant 0 : i32
    return %c0_i32, %c0_i32_0 : i32, i32
  }
  func.func @transform_3(%arg0: i32) -> (i32, i32, i32) {
    %c0_i32 = arith.constant 0 : i32
    %c0_i32_0 = arith.constant 0 : i32
    %c0_i32_1 = arith.constant 0 : i32
    %c0_i32_2 = arith.constant 0 : i32
    return %c0_i32, %c0_i32_0, %c0_i32_1 : i32, i32, i32
  }
  func.func @transform_4(%arg0: i32) -> (i32, i32) {
    %c0_i32 = arith.constant 0 : i32
    %c0_i32_0 = arith.constant 0 : i32
    %c0_i32_1 = arith.constant 0 : i32
    return %c0_i32, %c0_i32_0 : i32, i32
  }
  func.func @transform_5(%arg0: i32) -> (i32, i32, i32, i32) {
    %c0_i32 = arith.constant 0 : i32
    %c0_i32_0 = arith.constant 0 : i32
    %c0_i32_1 = arith.constant 0 : i32
    %c0_i32_2 = arith.constant 0 : i32
    return %arg0, %c0_i32, %c0_i32_0, %c0_i32_1 : i32, i32, i32, i32
  }
}

</mosaic_0001>

<bundles_post_ra>
// kernel: tpu_custom_call.1
= control target key start
LH: loop header
LB: loop body
LE: loop exit
PB: predicated region body
PF: predicated region fallthrough
CT: control target
= control target key end

     0   :  { %s5453_s18 = smov 0   ;;  %s9319_s0 = inlined_call_operand.vmem [shape: f32[2,16,16,4], index: 0, kind: input, shape index: {}]   ;;  %s9320_s1 = inlined_call_operand.vmem [shape: f32[9,4,4], index: 1, kind: input, shape index: {}]   ;;  %s9321_s2 = inlined_call_operand.vmem [shape: f32[1,4], index: 2, kind: input, shape index: {}]   ;;  %s9322_s3 = inlined_call_operand.vmem [shape: f32[9,4,4], index: 3, kind: input, shape index: {}]   ;;  %s9323_s4 = inlined_call_operand.vmem [shape: f32[1,4], index: 4, kind: input, shape index: {}]   ;;  %s9324_s5 = inlined_call_operand.vmem [shape: f32[2,16,16,4], index: 5, kind: output, shape index: {}]  }
   0x1 LB: > { %s4740_s19 = sadd.s32 4294967295, %s5420_s18   ;;  %p4744_p0 = scmp.ge.s32.totalorder %s5420_s18, 1  ;;  %s5420_s18 = sphi %s5453_s18, %s15_s18  }
   0x2   : > { %p187_p1 = scmp.lt.s32.totalorder %s5420_s18, 3 }
   0x4   : > { %p188_p2 = pnand %p4744_p0, %p187_p1 }
   0x6   : > { %191 = sbr.rel (%p188_p2) target bundleno = 1969 (0x7b1), region = 40 }
   0xb   : > { %v4749_v0 = vld [vmem:[%s9320_s1 + $0x4] sm:$0xf]  ;;  %vm636_vm0 = vcmask 1043456   ;;  %v466_v1 = vld [vmem:[%s9320_s1] sm:$0xf]  ;;  %p215_p3 = scmp.lt.s32.totalorder %s4740_s19, 1 }
   0xc   : > { %5363 = vmatpush.msk.msra.mxu2 %vm636_vm0, %v4749_v0  ;;  %5364 = vmatpush.msk.msra.mxu3 %vm636_vm0, %v466_v1  ;;  %v4816_v2 = vld [vmem:[%s9320_s1 + $0x8] sm:$0xf]  ;;  %v4850_v3 = vld [vmem:[%s9320_s1 + $0xc] sm:$0xf]  ;;  %v4884_v4 = vld [vmem:[%s9320_s1 + $0x10] sm:$0xf] }
   0xd   : > { %s9943_s19 = smov (!%p215_p3, %s4740_s19), 1  ;;  %4750 = vmatpush.msk.msra.mxu0 %vm636_vm0, %v4749_v0  ;;  %4783 = vmatpush.msk.msra.mxu1 %vm636_vm0, %v466_v1  ;;  %vm321_vm1 = vcmask 1040384   ;;  %vm575_vm2 = vcmask 31744   ;;  %vm497_vm3 = vcmask 1046528   ;;  %vm929_vm4 = vcmask 1045504  }
   0xe   : > { %4817 = vmatpush.msk.msrb.mxu2 %vm636_vm0, %v4816_v2  ;;  %4851 = vmatpush.msk.msrb.mxu3 %vm636_vm0, %v4850_v3  ;;  %s5361_s30 = sshll.u32 %s9943_s19, 8 }
   0xf   : > { %4885 = vmatpush.msk.msrb.mxu0 %vm636_vm0, %v4884_v4  ;;  %s5491_s8 = scalar_lea.vmem %s9319_s0, %s5361_s30  ;;  %s9164_s22 = scalar_lea.vmem %s9324_s5, %s5361_s30 }
  0x10   : > { %v239_v5 = vld [vmem:[%s5491_s8 + $0x70] sm:$0xff]  ;;  %v240_v6 = vld [vmem:[%s5491_s8 + $0x78] sm:$0xff]  ;;  %v241_v26 = vld [vmem:[%s5491_s8 + $0x80] sm:$0xff] }
  0x11   : > { %v227_v7 = vld [vmem:[%s5491_s8 + $0x10] sm:$0xff]  ;;  %v280_v8 = vrot.slane %v239_v5, 1  ;;  %v343_v9 = vrot.slane %v239_v5, 7  ;;  %v344_v10 = vrot.slane %v240_v6, 7  ;;  %v409_v11 = vrot.slane %v240_v6, 5  ;;  %v228_v12 = vld [vmem:[%s5491_s8 + $0x18] sm:$0xff] }
  0x12   : > { %v273_v13 = vrot.slane %v227_v7, 1  ;;  %v322_v14 = vrot.slane %v227_v7, 7  ;;  %v323_v15 = vrot.slane %v228_v12, 7  ;;  %v242_v27 = vld [vmem:[%s5491_s8 + $0x88] sm:$0xff]  ;;  %v402_v28 = vrot.slane %v228_v12, 5  ;;  %v225_v31 = vld [vmem:[%s5491_s8] sm:$0xff] }
  0x13   : > { %v5498_v16 = vsel %vm321_vm1, %v343_v9, %v344_v10  ;;  %v5501_v17 = vsel %vm321_vm1, %v280_v8, %v343_v9  ;;  %v5511_v21 = vsel %vm321_vm1, %v344_v10, %v409_v11  ;;  %v226_v32 = vld [vmem:[%s5491_s8 + $0x8] sm:$0xff]  ;;  %v281_v33 = vrot.slane %v241_v26, 1  ;;  %v243_v56 = vld [vmem:[%s5491_s8 + $0x90] sm:$0xff]  ;;  %v244_v57 = vld [vmem:[%s5491_s8 + $0x98] sm:$0xff] }
  0x14   : > { %9519 = vst [vmem:[#allocation2_spill] sm:$0xff] %v5498_v16  ;;  %v533_v18 = vrot.slane %v5501_v17, 1  ;;  %v534_v19 = vrot.slane %v5498_v16, 1  ;;  %4800 = vmatmul.msk.f32.vlgmr.msra.gmra.mxu3 %vm575_vm2, %v5501_v17  ;;  %v5508_v20 = vsel %vm321_vm1, %v322_v14, %v323_v15  ;;  %v5514_v22 = vsel %vm321_vm1, %v273_v13, %v322_v14  ;;  %v245_v9 = vld [vmem:[%s5491_s8 + $0xa0] sm:$0xff]  ;;  %v246_v10 = vld [vmem:[%s5491_s8 + $0xa8] sm:$0xff] }
  0x15   : > { %9520 = vst [vmem:[#allocation3_spill] sm:$0xff] %v5501_v17  ;;  %v499_v23 = vrot.slane %v5508_v20, 1  ;;  %v498_v25 = vrot.slane %v5514_v22, 1  ;;  %4784 = vmatmul.msk.f32.vlgmr.msra.gmra.mxu1 %vm575_vm2, %v5514_v22  ;;  %v536_v29 = vrot.slane %v5511_v21, 1  ;;  %v346_v34 = vrot.slane %v241_v26, 7  ;;  %v229_v12 = vld [vmem:[%s5491_s8 + $0x20] sm:$0xff] }
  0x16   : > { %9521 = vst [vmem:[#allocation4_spill] sm:$0xff] %v5508_v20  ;;  %v5518_v24 = vsel %vm497_vm3, %v533_v18, %v534_v19  ;;  %v347_v35 = vrot.slane %v242_v27, 7  ;;  %v5536_v36 = vsel %vm321_vm1, %v323_v15, %v402_v28  ;;  %v274_v38 = vrot.slane %v225_v31, 1  ;;  %v230_v13 = vld [vmem:[%s5491_s8 + $0x28] sm:$0xff] }
  0x17   : > { %9522 = vst [vmem:[#allocation5_spill] sm:$0xff] %v5518_v24  ;;  %4767 = vmatmul.msk.f32.vlgmr.msra.gmra.mxu2 %vm575_vm2, %v5518_v24  ;;  %v5529_v30 = vsel %vm497_vm3, %v498_v25, %v499_v23  ;;  %v501_v37 = vrot.slane %v5536_v36, 1  ;;  %v325_v39 = vrot.slane %v225_v31, 7  ;;  %v326_v40 = vrot.slane %v226_v32, 7 }
  0x18   : > { %4751 = vmatmul.msk.f32.vlgmr.msra.gmra.mxu0 %vm575_vm2, %v5529_v30  ;;  %v5540_v41 = vsel %vm497_vm3, %v534_v19, %v536_v29  ;;  %v5545_v42 = vsel %vm321_vm1, %v346_v34, %v347_v35  ;;  %v5548_v43 = vsel %vm321_vm1, %v281_v33, %v346_v34  ;;  %v410_v49 = vrot.slane %v242_v27, 5 }
  0x19   : > { %9523 = vst [vmem:[#allocation6_spill] sm:$0xff] %v5540_v41  ;;  %v5551_v44 = vsel %vm497_vm3, %v499_v23, %v501_v37  ;;  %v5558_v45 = vsel %vm321_vm1, %v325_v39, %v326_v40  ;;  %v5561_v46 = vsel %vm321_vm1, %v274_v38, %v325_v39  ;;  %v538_v47 = vrot.slane %v5548_v43, 1 }
  0x1a   : > { %9524 = vst [vmem:[#allocation7_spill] sm:$0xff] %v5545_v42  ;;  %v539_v48 = vrot.slane %v5545_v42, 1  ;;  %v503_v50 = vrot.slane %v5561_v46, 1  ;;  %v504_v51 = vrot.slane %v5558_v45, 1  ;;  %v403_v52 = vrot.slane %v226_v32, 5 }
  0x1b   : > { %9525 = vst [vmem:[#allocation8_spill] sm:$0xff] %v5548_v43  ;;  %v5575_v54 = vsel %vm321_vm1, %v347_v35, %v410_v49  ;;  %v282_v60 = vrot.slane %v243_v56, 1  ;;  %v349_v61 = vrot.slane %v243_v56, 7  ;;  %v350_v62 = vrot.slane %v244_v57, 7  ;;  %v248_v49 = vld [vmem:[%s5491_s8 + $0xb8] sm:$0xff] }
  0x1c   : > { %4801 = vmatmul.msk.f32.gmra.mxu3 %vm575_vm2, %v5498_v16  ;;  %v5570_v53 = vsel %vm497_vm3, %v538_v47, %v539_v48  ;;  %v5578_v55 = vsel %vm497_vm3, %v503_v50, %v504_v51  ;;  %v5587_v58 = vsel %vm321_vm1, %v326_v40, %v403_v52  ;;  %v541_v59 = vrot.slane %v5575_v54, 1  ;;  %v231_v52 = vld [vmem:[%s5491_s8 + $0x30] sm:$0xff]  ;;  %v232_v56 = vld [vmem:[%s5491_s8 + $0x38] sm:$0xff] }
  0x1d   : > { %4785 = vmatmul.msk.f32.gmra.mxu1 %vm575_vm2, %v5508_v20  ;;  %v506_v63 = vrot.slane %v5587_v58, 1  ;;  %v5599_v1 = vsel %vm321_vm1, %v349_v61, %v350_v62  ;;  %v5602_v2 = vsel %vm321_vm1, %v282_v60, %v349_v61  ;;  %v411_v6 = vrot.slane %v244_v57, 5 }
  0x1e   : > { %v5594_v0 = vsel %vm497_vm3, %v539_v48, %v541_v59  ;;  %v543_v4 = vrot.slane %v5602_v2, 1  ;;  %v544_v5 = vrot.slane %v5599_v1, 1  ;;  %v283_v14 = vrot.slane %v245_v9, 1  ;;  %v247_v48 = vld [vmem:[%s5491_s8 + $0xb0] sm:$0xff] }
  0x1f   : > { %4768 = vmatmul.msk.f32.gmra.mxu2 %vm575_vm2, %v5540_v41  ;;  %v5605_v3 = vsel %vm497_vm3, %v504_v51, %v506_v63  ;;  %v5621_v8 = vsel %vm321_vm1, %v350_v62, %v411_v6  ;;  %v352_v15 = vrot.slane %v245_v9, 7  ;;  %v353_v18 = vrot.slane %v246_v10, 7 }
  0x20   : > { %4752 = vmatmul.msk.f32.gmra.mxu0 %vm575_vm2, %v5551_v44  ;;  %v5616_v7 = vsel %vm497_vm3, %v543_v4, %v544_v5  ;;  %v546_v11 = vrot.slane %v5621_v8, 1  ;;  %v275_v19 = vrot.slane %v229_v12, 1  ;;  %v328_v23 = vrot.slane %v229_v12, 7 }
  0x21   : > { %v329_v25 = vrot.slane %v230_v13, 7  ;;  %v5640_v27 = vsel %vm321_vm1, %v352_v15, %v353_v18  ;;  %v5643_v28 = vsel %vm321_vm1, %v283_v14, %v352_v15  ;;  %v412_v34 = vrot.slane %v246_v10, 5 }
  0x22   : > { %v5635_v26 = vsel %vm497_vm3, %v544_v5, %v546_v11  ;;  %9527 = vst [vmem:[#allocation10_spill] sm:$0xff] %v5640_v27  ;;  %v5653_v31 = vsel %vm321_vm1, %v275_v19, %v328_v23  ;;  %v548_v32 = vrot.slane %v5643_v28, 1  ;;  %v549_v33 = vrot.slane %v5640_v27, 1 }
  0x23   : > { %9526 = vst [vmem:[#allocation9_spill] sm:$0xff] %v5635_v26  ;;  %v5650_v29 = vsel %vm321_vm1, %v328_v23, %v329_v25  ;;  %v508_v35 = vrot.slane %v5653_v31, 1  ;;  %v404_v38 = vrot.slane %v230_v13, 5  ;;  %v5667_v40 = vsel %vm321_vm1, %v353_v18, %v412_v34  ;;  %v249_v34 = vld [vmem:[%s5491_s8 + $0xc0] sm:$0xff] }
  0x24   : > { %4802 = vmatmul.msk.f32.gmra.mxu3 %vm575_vm2, %v5548_v43  ;;  %9528 = vst [vmem:[#allocation11_spill] sm:$0xff] %v5650_v29  ;;  %v509_v37 = vrot.slane %v5650_v29, 1  ;;  %v5662_v39 = vsel %vm497_vm3, %v548_v32, %v549_v33  ;;  %v551_v51 = vrot.slane %v5667_v40, 1  ;;  %v284_v57 = vrot.slane %v247_v48, 1 }
  0x25   : > { %4786 = vmatmul.msk.f32.gmra.mxu1 %vm575_vm2, %v5561_v46  ;;  %9529 = vst [vmem:[#allocation12_spill] sm:$0xff] %v5653_v31  ;;  %v5679_v50 = vsel %vm321_vm1, %v329_v25, %v404_v38  ;;  %v355_v59 = vrot.slane %v247_v48, 7  ;;  %v356_v60 = vrot.slane %v248_v49, 7  ;;  %v276_v62 = vrot.slane %v231_v52, 1  ;;  %v233_v48 = vld [vmem:[%s5491_s8 + $0x40] sm:$0xff] }
  0x26   : > { %9530 = vst [vmem:[#allocation13_spill] sm:$0xff] %v5662_v39  ;;  %v5670_v47 = vsel %vm497_vm3, %v508_v35, %v509_v37  ;;  %v511_v61 = vrot.slane %v5679_v50, 1  ;;  %v331_v63 = vrot.slane %v231_v52, 7  ;;  %v332_v4 = vrot.slane %v232_v56, 7  ;;  %v250_v35 = vld [vmem:[%s5491_s8 + $0xc8] sm:$0xff] }
  0x27   : > { %4769 = vmatmul.msk.f32.gmra.mxu2 %vm575_vm2, %v5570_v53  ;;  %9531 = vst [vmem:[#allocation14_spill] sm:$0xff] %v5667_v40  ;;  %v5688_v5 = vsel %vm497_vm3, %v549_v33, %v551_v51  ;;  %v5693_v6 = vsel %vm321_vm1, %v355_v59, %v356_v60  ;;  %v5696_v9 = vsel %vm321_vm1, %v284_v57, %v355_v59  ;;  %v413_v15 = vrot.slane %v248_v49, 5  ;;  %v234_v49 = vld [vmem:[%s5491_s8 + $0x48] sm:$0xff] }
  0x28   : > { %4753 = vmatmul.msk.f32.gmra.mxu0 %vm575_vm2, %v5578_v55  ;;  %9532 = vst [vmem:[#allocation15_spill] sm:$0xff] %v5670_v47  ;;  %v5699_v10 = vsel %vm497_vm3, %v509_v37, %v511_v61  ;;  %v5706_v11 = vsel %vm321_vm1, %v331_v63, %v332_v4  ;;  %v5709_v12 = vsel %vm321_vm1, %v276_v62, %v331_v63  ;;  %v553_v13 = vrot.slane %v5696_v9, 1 }
  0x29   : > { %9533 = vst [vmem:[#allocation16_spill] sm:$0xff] %v5688_v5  ;;  %v554_v14 = vrot.slane %v5693_v6, 1  ;;  %v513_v18 = vrot.slane %v5709_v12, 1  ;;  %v514_v19 = vrot.slane %v5706_v11, 1  ;;  %v405_v23 = vrot.slane %v232_v56, 5 }
  0x2a   : > { %9534 = vst [vmem:[#allocation17_spill] sm:$0xff] %v5693_v6  ;;  %v5723_v32 = vsel %vm321_vm1, %v356_v60, %v413_v15  ;;  %v285_v51 = vrot.slane %v249_v34, 1  ;;  %v358_v52 = vrot.slane %v249_v34, 7  ;;  %v359_v56 = vrot.slane %v250_v35, 7 }
  0x2b   : > { %9535 = vst [vmem:[#allocation18_spill] sm:$0xff] %v5696_v9  ;;  %v5718_v25 = vsel %vm497_vm3, %v553_v13, %v554_v14  ;;  %v5726_v33 = vsel %vm497_vm3, %v513_v18, %v514_v19  ;;  %v5735_v37 = vsel %vm321_vm1, %v332_v4, %v405_v23  ;;  %v556_v38 = vrot.slane %v5723_v32, 1 }
  0x2c   : > { %4803 = vmatmul.msk.f32.gmra.mxu3 %vm575_vm2, %v5545_v42  ;;  %9536 = vst [vmem:[#allocation19_spill] sm:$0xff] %v5699_v10  ;;  %v516_v57 = vrot.slane %v5735_v37, 1  ;;  %v277_v59 = vrot.slane %v233_v48, 1  ;;  %v334_v60 = vrot.slane %v233_v48, 7  ;;  %v335_v61 = vrot.slane %v234_v49, 7 }
  0x2d   : > { %4787 = vmatmul.msk.f32.gmra.mxu1 %vm575_vm2, %v5558_v45  ;;  %9537 = vst [vmem:[#allocation20_spill] sm:$0xff] %v5706_v11  ;;  %v5744_v62 = vsel %vm497_vm3, %v554_v14, %v556_v38  ;;  %v5749_v63 = vsel %vm321_vm1, %v358_v52, %v359_v56  ;;  %v5752_v4 = vsel %vm321_vm1, %v285_v51, %v358_v52  ;;  %v406_v48 = vrot.slane %v234_v49, 5 }
  0x2e   : > { %9538 = vst [vmem:[#allocation21_spill] sm:$0xff] %v5709_v12  ;;  %v5755_v13 = vsel %vm497_vm3, %v514_v19, %v516_v57  ;;  %v5762_v14 = vsel %vm321_vm1, %v334_v60, %v335_v61  ;;  %v5765_v15 = vsel %vm321_vm1, %v277_v59, %v334_v60  ;;  %v558_v18 = vrot.slane %v5752_v4, 1  ;;  %v252_v59 = vld [vmem:[%s5491_s8 + $0xd8] sm:$0xff] }
  0x2f   : > { %4770 = vmatmul.msk.f32.gmra.mxu2 %vm575_vm2, %v5594_v0  ;;  %9539 = vst [vmem:[#allocation22_spill] sm:$0xff] %v5718_v25  ;;  %v559_v23 = vrot.slane %v5749_v63, 1  ;;  %v414_v19 = vrot.slane %v250_v35, 5  ;;  %v518_v34 = vrot.slane %v5765_v15, 1  ;;  %v519_v38 = vrot.slane %v5762_v14, 1  ;;  %v251_v35 = vld [vmem:[%s5491_s8 + $0xd0] sm:$0xff] }
  0x30   : > { %4754 = vmatmul.msk.f32.gmra.mxu0 %vm575_vm2, %v5605_v3  ;;  %9540 = vst [vmem:[#allocation23_spill] sm:$0xff] %v5723_v32  ;;  %v5791_v49 = vsel %vm321_vm1, %v335_v61, %v406_v48 }
  0x31   : > { %9541 = vst [vmem:[#allocation24_spill] sm:$0xff] %v5726_v33  ;;  %v5774_v51 = vsel %vm497_vm3, %v558_v18, %v559_v23  ;;  %v5779_v52 = vsel %vm321_vm1, %v359_v56, %v414_v19  ;;  %v5782_v57 = vsel %vm497_vm3, %v518_v34, %v519_v38  ;;  %v235_v18 = vld [vmem:[%s5491_s8 + $0x50] sm:$0xff]  ;;  %v286_v56 = vrot.slane %v251_v35, 1 }
  0x32   : > { %9542 = vst [vmem:[#allocation25_spill] sm:$0xff] %v5744_v62  ;;  %v561_v60 = vrot.slane %v5779_v52, 1  ;;  %v361_v19 = vrot.slane %v251_v35, 7  ;;  %v362_v34 = vrot.slane %v252_v59, 7  ;;  %v337_v32 = vrot.slane %v235_v18, 7 }
  0x33   : > { %9543 = vst [vmem:[#allocation26_spill] sm:$0xff] %v5749_v63 }
  0x34   : > { %4804 = vmatmul.msk.f32.gmra.mxu3 %vm575_vm2, %v5602_v2  ;;  %9544 = vst [vmem:[#allocation27_spill] sm:$0xff] %v5752_v4  ;;  %v5805_v61 = vsel %vm321_vm1, %v361_v19, %v362_v34  ;;  %v5808_v48 = vsel %vm321_vm1, %v286_v56, %v361_v19 }
  0x35   : > { %4788 = vmatmul.msk.f32.gmra.mxu1 %vm575_vm2, %v5514_v22  ;;  %9545 = vst [vmem:[#allocation28_spill] sm:$0xff] %v5755_v13  ;;  %v564_v56 = vrot.slane %v5805_v61, 1 }
  0x36   : > { %9546 = vst [vmem:[#allocation29_spill] sm:$0xff] %v5762_v14 }
  0x37   : > { %4771 = vmatmul.msk.f32.gmra.mxu2 %vm575_vm2, %v5616_v7  ;;  %9547 = vst [vmem:[#allocation30_spill] sm:$0xff] %v5765_v15 }
  0x38   : > { %4755 = vmatmul.msk.f32.gmra.mxu0 %vm575_vm2, %v5529_v30  ;;  %9548 = vst [vmem:[#allocation31_spill] sm:$0xff] %v5774_v51 }
  0x39   : > { %9549 = vst [vmem:[#allocation32_spill] sm:$0xff] %v5779_v52 }
  0x3a   : > { %9550 = vst [vmem:[#allocation33_spill] sm:$0xff] %v5782_v57 }
  0x3b   : > { %9552 = vst [vmem:[#allocation35_spill] sm:$0xff] %v5805_v61 }
  0x3c   : > { %4805 = vmatmul.msk.f32.gmra.mxu3 %vm575_vm2, %v5599_v1  ;;  %9553 = vst [vmem:[#allocation36_spill] sm:$0xff] %v5808_v48 }
  0x3d   : > { %4789 = vmatmul.msk.f32.gmra.mxu1 %vm575_vm2, %v5508_v20 }
  0x3f   : > { %4772 = vmatmul.msk.f32.gmra.mxu2 %vm575_vm2, %v5635_v26 }
  0x40   : > { %4756 = vmatmul.msk.f32.gmra.mxu0 %vm575_vm2, %v5551_v44 }
  0x44   : > { %4806 = vmatmul.msk.f32.gmra.mxu3 %vm575_vm2, %v5643_v28 }
  0x45   : > { %4790 = vmatmul.msk.f32.gmra.mxu1 %vm575_vm2, %v5653_v31 }
  0x47   : > { %4773 = vmatmul.msk.f32.gmra.mxu2 %vm575_vm2, %v5662_v39 }
  0x48   : > { %4757 = vmatmul.msk.f32.gmra.mxu0 %vm575_vm2, %v5670_v47 }
  0x4c   : > { %4807 = vmatmul.msk.f32.gmra.mxu3 %vm575_vm2, %v5640_v27 }
  0x4d   : > { %4791 = vmatmul.msk.f32.gmra.mxu1 %vm575_vm2, %v5650_v29 }
  0x4f   : > { %4774 = vmatmul.msk.f32.gmra.mxu2 %vm575_vm2, %v5688_v5 }
  0x50   : > { %4758 = vmatmul.msk.f32.gmra.mxu0 %vm575_vm2, %v5699_v10 }
  0x54   : > { %4808 = vmatmul.msk.f32.gmra.mxu3 %vm575_vm2, %v5696_v9 }
  0x55   : > { %4792 = vmatmul.msk.f32.gmra.mxu1 %vm575_vm2, %v5709_v12 }
  0x57   : > { %4775 = vmatmul.msk.f32.gmra.mxu2 %vm575_vm2, %v5718_v25  ;;  %v278_v25 = vrot.slane %v235_v18, 1  ;;  %v563_v18 = vrot.slane %v5808_v48, 1 }
  0x58   : > { %4759 = vmatmul.msk.f32.gmra.mxu0 %vm575_vm2, %v5726_v33 }
  0x59   : > { %v5830_v52 = vsel %vm497_vm3, %v563_v18, %v564_v56  ;;  %v4952_v18 = vld [vmem:[%s9320_s1 + $0x18] sm:$0xf] }
  0x5a   : > { %9557 = vst [vmem:[#allocation40_spill] sm:$0xff] %v5830_v52  ;;  %4953 = vmatpush.msk.msra.mxu2 %vm636_vm0, %v4952_v18 }
  0x5c   : > { %4809 = vmatmul.msk.f32.gmra.mxu3 %vm575_vm2, %v5693_v6 }
  0x5d   : > { %4793 = vmatmul.msk.f32.gmra.mxu1 %vm575_vm2, %v5706_v11 }
  0x5f   : > { %4776 = vmatmul.msk.f32.gmra.mxu2 %vm575_vm2, %v5744_v62  ;;  %v236_v62 = vld [vmem:[%s5491_s8 + $0x58] sm:$0xff] }
  0x60   : > { %4760 = vmatmul.msk.f32.gmra.mxu0 %vm575_vm2, %v5755_v13  ;;  %v338_v5 = vrot.slane %v236_v62, 7 }
  0x64   : > { %4810 = vmatmul.msk.f32.gmra.mxu3 %vm575_vm2, %v5752_v4  ;;  %v521_v4 = vrot.slane %v5791_v49, 1 }
  0x65   : > { %4794 = vmatmul.msk.f32.gmra.mxu1 %vm575_vm2, %v5765_v15 }
  0x66   : > { %v5811_v35 = vsel %vm497_vm3, %v519_v38, %v521_v4  ;;  %v415_v4 = vrot.slane %v252_v59, 5  ;;  %v253_v59 = vld [vmem:[%s5491_s8 + $0xe0] sm:$0xff] }
  0x67   : > { %4777 = vmatmul.msk.f32.gmra.mxu2 %vm575_vm2, %v5774_v51  ;;  %v5800_v51 = vsel %vm497_vm3, %v559_v23, %v561_v60  ;;  %9554 = vst [vmem:[#allocation37_spill] sm:$0xff] %v5811_v35  ;;  %v5818_v23 = vsel %vm321_vm1, %v337_v32, %v338_v5  ;;  %v5821_v60 = vsel %vm321_vm1, %v278_v25, %v337_v32 }
  0x68   : > { %4761 = vmatmul.msk.f32.gmra.mxu0 %vm575_vm2, %v5782_v57  ;;  %9551 = vst [vmem:[#allocation34_spill] sm:$0xff] %v5800_v51  ;;  %v523_v38 = vrot.slane %v5821_v60, 1  ;;  %v524_v19 = vrot.slane %v5818_v23, 1  ;;  %v5835_v25 = vsel %vm321_vm1, %v362_v34, %v415_v4  ;;  %v4986_v34 = vld [vmem:[%s9320_s1 + $0x1c] sm:$0xf] }
  0x69   : > { %9555 = vst [vmem:[#allocation38_spill] sm:$0xff] %v5818_v23  ;;  %v566_v4 = vrot.slane %v5835_v25, 1  ;;  %4987 = vmatpush.msk.msra.mxu3 %vm636_vm0, %v4986_v34 }
  0x6a   : > { %9556 = vst [vmem:[#allocation39_spill] sm:$0xff] %v5821_v60  ;;  %v5838_v32 = vsel %vm497_vm3, %v523_v38, %v524_v19  ;;  %v237_v38 = vld [vmem:[%s5491_s8 + $0x60] sm:$0xff] }
  0x6b   : > { %9558 = vst [vmem:[#allocation41_spill] sm:$0xff] %v5835_v25  ;;  %v279_v9 = vrot.slane %v237_v38, 1  ;;  %v340_v39 = vrot.slane %v237_v38, 7  ;;  %v5864_v26 = vsel %vm497_vm3, %v564_v56, %v566_v4  ;;  %v5020_v38 = vld [vmem:[%s9320_s1 + $0x20] sm:$0xf] }
  0x6c   : > { %4811 = vmatmul.msk.f32.gmra.mxu3 %vm575_vm2, %v5749_v63  ;;  %9559 = vst [vmem:[#allocation42_spill] sm:$0xff] %v5838_v32  ;;  %v254_v63 = vld [vmem:[%s5491_s8 + $0xe8] sm:$0xff]  ;;  %5021 = vmatpush.msk.msra.mxu0 %vm636_vm0, %v5020_v38 }
  0x6d   : > { %4795 = vmatmul.msk.f32.gmra.mxu1 %vm575_vm2, %v5762_v14  ;;  %9560 = vst [vmem:[#allocation43_spill] sm:$0xff] %v5864_v26  ;;  %v5885_v4 = vsel %vm321_vm1, %v279_v9, %v340_v39 }
  0x6e   : > { %9565 = vst [vmem:[#allocation48_spill] sm:$0xff] %v5885_v4 }
  0x6f   : > { %4778 = vmatmul.msk.f32.gmra.mxu2 %vm575_vm2, %v5800_v51  ;;  %v407_v51 = vrot.slane %v236_v62, 5 }
  0x70   : > { %4762 = vmatmul.msk.f32.gmra.mxu0 %vm575_vm2, %v5811_v35 }
  0x71   : > { %v5847_v62 = vsel %vm321_vm1, %v338_v5, %v407_v51  ;;  %v287_v5 = vrot.slane %v253_v59, 1  ;;  %v364_v51 = vrot.slane %v253_v59, 7 }
  0x72   : > { %v526_v6 = vrot.slane %v5847_v62, 1 }
  0x73   : > { %v5872_v34 = vsel %vm321_vm1, %v287_v5, %v364_v51 }
  0x74   : > { %4812 = vmatmul.msk.f32.gmra.mxu3 %vm575_vm2, %v5808_v48  ;;  %v238_v48 = vld [vmem:[%s5491_s8 + $0x68] sm:$0xff]  ;;  %9562 = vst [vmem:[#allocation45_spill] sm:$0xff] %v5872_v34  ;;  %v5875_v59 = vsel %vm497_vm3, %v524_v19, %v526_v6  ;;  %v568_v5 = vrot.slane %v5872_v34, 1  ;;  %v416_v19 = vrot.slane %v254_v63, 5 }
  0x75   : > { %4796 = vmatmul.msk.f32.gmra.mxu1 %vm575_vm2, %v5821_v60  ;;  %v341_v40 = vrot.slane %v238_v48, 7  ;;  %9563 = vst [vmem:[#allocation46_spill] sm:$0xff] %v5875_v59 }
  0x77   : > { %4779 = vmatmul.msk.f32.gmra.mxu2 %vm575_vm2, %v5830_v52  ;;  %v365_v52 = vrot.slane %v254_v63, 7  ;;  %v5882_v56 = vsel %vm321_vm1, %v340_v39, %v341_v40  ;;  %v528_v39 = vrot.slane %v5885_v4, 1 }
  0x78   : > { %4763 = vmatmul.msk.f32.gmra.mxu0 %vm575_vm2, %v5838_v32  ;;  %9564 = vst [vmem:[#allocation47_spill] sm:$0xff] %v5882_v56  ;;  %v529_v9 = vrot.slane %v5882_v56, 1 }
  0x79   : > { %v5869_v18 = vsel %vm321_vm1, %v364_v51, %v365_v52  ;;  %v4918_v51 = vld [vmem:[%s9320_s1 + $0x14] sm:$0xf]  ;;  %v5907_v38 = vsel %vm321_vm1, %v365_v52, %v416_v19 }
  0x7a   : > { %9561 = vst [vmem:[#allocation44_spill] sm:$0xff] %v5869_v18  ;;  %v569_v6 = vrot.slane %v5869_v18, 1  ;;  %4919 = vmatpush.msk.msrb.mxu1 %vm636_vm0, %v4918_v51  ;;  %v5910_v63 = vsel %vm497_vm3, %v528_v39, %v529_v9  ;;  %v930_v39 = vrot.slane %v5514_v22, 2 }
  0x7b   : > { %9567 = vst [vmem:[#allocation50_spill] sm:$0xff] %v5907_v38 }
  0x7c   : > { %4813 = vmatmul.msk.f32.gmra.mxu3 %vm575_vm2, %v5805_v61  ;;  %v5902_v25 = vsel %vm497_vm3, %v568_v5, %v569_v6  ;;  %9568 = vst [vmem:[#allocation51_spill] sm:$0xff] %v5910_v63  ;;  %v571_v5 = vrot.slane %v5907_v38, 1  ;;  %v938_v38 = vrot.slane %v5587_v58, 2 }
  0x7d   : > { %4797 = vmatmul.msk.f32.gmra.mxu1 %vm575_vm2, %v5818_v23  ;;  %9566 = vst [vmem:[#allocation49_spill] sm:$0xff] %v5902_v25 }
  0x7e   : > { %v5924_v19 = vsel %vm497_vm3, %v569_v6, %v571_v5  ;;  %v931_v6 = vrot.slane %v5508_v20, 2 }
  0x7f   : > { %4780 = vmatmul.msk.f32.gmra.mxu2 %vm575_vm2, %v5864_v26  ;;  %v408_v26 = vrot.slane %v238_v48, 5  ;;  %9569 = vst [vmem:[#allocation52_spill] sm:$0xff] %v5924_v19 }
  0x80   : > { %4764 = vmatmul.msk.f32.gmra.mxu0 %vm575_vm2, %v5875_v59 }
  0x81   : > { %v5917_v48 = vsel %vm321_vm1, %v341_v40, %v408_v26  ;;  %v935_v26 = vrot.slane %v5561_v46, 2  ;;  %v936_v40 = vrot.slane %v5558_v45, 2 }
  0x82   : > { %v531_v52 = vrot.slane %v5917_v48, 1 }
  0x83   : > { %v937_v5 = vsel %vm929_vm4, %v935_v26, %v936_v40 }
  0x84   : > { %4814 = vmatmul.msk.f32.gmra.mxu3 %vm575_vm2, %v5872_v34  ;;  %v5929_v51 = vsel %vm497_vm3, %v529_v9, %v531_v52  ;;  %v5945_v52 = vsel %vm929_vm4, %v930_v39, %v931_v6 }
  0x85   : > { %4798 = vmatmul.msk.f32.gmra.mxu1 %vm575_vm2, %v5885_v4  ;;  %9570 = vst [vmem:[#allocation53_spill] sm:$0xff] %v5929_v51 }
  0x87   : > { %4781 = vmatmul.msk.f32.gmra.mxu2 %vm575_vm2, %v5902_v25 }
  0x88   : > { %4765 = vmatmul.msk.f32.gmra.mxu0 %vm575_vm2, %v5910_v63 }
  0x8c   : > { %4815 = vmatmul.msk.f32.gmra.mxu3 %vm575_vm2, %v5869_v18  ;;  %v933_v18 = vrot.slane %v5536_v36, 2 }
  0x8d   : > { %4799 = vmatmul.msk.f32.gmra.mxu1 %vm575_vm2, %v5882_v56 }
  0x8e   : > { %v5964_v61 = vsel %vm929_vm4, %v931_v6, %v933_v18 }
  0x8f   : > { %4782 = vmatmul.msk.f32.gmra.mxu2 %vm575_vm2, %v5924_v19  ;;  %9571 = vst [vmem:[#allocation54_spill] sm:$0xff] %v5964_v61 }
  0x90   : > { %4766 = vmatmul.msk.f32.gmra.mxu0 %vm575_vm2, %v5929_v51 }
  0x92   : > { %v5941_v9 = vpop.f32.mrf.mxu1 }
  0x94   : > { %4852 = vmatmul.msk.f32.vlgmr.msrb.gmra.mxu3 %vm575_vm2, %v5561_v46  ;;  %v939_v46 = vsel %vm929_vm4, %v936_v40, %v938_v38 }
  0x95   : > { %v5949_v19 = vpop.f32.mrf.mxu0  ;;  %4920 = vmatmul.msk.f32.vlgmr.msrb.gmra.mxu1 %vm575_vm2, %v937_v5 }
  0x97   : > { %4818 = vmatmul.msk.f32.vlgmr.msrb.gmra.mxu2 %vm575_vm2, %v5945_v52  ;;  %v881_v25 = vpop.f32.mrf.mxu3 }
  0x98   : > { %4886 = vmatmul.msk.f32.vlgmr.msrb.gmra.mxu0 %vm575_vm2, %v5578_v55 }
  0x9a   : > { %v705_v26 = vpop.f32.mrf.mxu2  ;;  %v5960_v34 = vpop.f32.mrf.mxu1 }
  0x9b   : > { %v5958_v39 = vadd.f32 %v881_v25, %v705_v26  ;;  %v940_v26 = vrot.slane %v5653_v31, 2 }
  0x9c   : > { %4853 = vmatmul.msk.f32.gmra.mxu3 %vm575_vm2, %v5558_v45 }
  0x9d   : > { %v5968_v27 = vpop.f32.mrf.mxu0  ;;  %4921 = vmatmul.msk.f32.gmra.mxu1 %vm575_vm2, %v939_v46 }
  0x9f   : > { %4819 = vmatmul.msk.f32.gmra.mxu2 %vm575_vm2, %v5964_v61  ;;  %v884_v36 = vpop.f32.mrf.mxu3 }
  0xa0   : > { %4887 = vmatmul.msk.f32.gmra.mxu0 %vm575_vm2, %v5605_v3 }
  0xa2   : > { %v708_v55 = vpop.f32.mrf.mxu2  ;;  %v5977_v25 = vpop.f32.mrf.mxu1 }
  0xa3   : > { %v5975_v58 = vadd.f32 %v884_v36, %v708_v55  ;;  %v941_v36 = vrot.slane %v5650_v29, 2 }
  0xa4   : > { %4854 = vmatmul.msk.f32.gmra.mxu3 %vm575_vm2, %v5514_v22 }
  0xa5   : > { %9572 = vst [vmem:[#allocation55_spill] sm:$0xff] %v5975_v58  ;;  %v5981_v45 = vpop.f32.mrf.mxu0  ;;  %4922 = vmatmul.msk.f32.gmra.mxu1 %vm575_vm2, %v5945_v52 }
  0xa7   : > { %4820 = vmatmul.msk.f32.gmra.mxu2 %vm575_vm2, %v937_v5  ;;  %v887_v18 = vpop.f32.mrf.mxu3 }
  0xa8   : > { %4888 = vmatmul.msk.f32.gmra.mxu0 %vm575_vm2, %v5529_v30 }
  0xaa   : > { %v711_v3 = vpop.f32.mrf.mxu2  ;;  %v5990_v40 = vpop.f32.mrf.mxu1 }
  0xab   : > { %v5988_v38 = vadd.f32 %v887_v18, %v711_v3 }
  0xac   : > { %4855 = vmatmul.msk.f32.gmra.mxu3 %vm575_vm2, %v5508_v20 }
  0xad   : > { %9573 = vst [vmem:[#allocation56_spill] sm:$0xff] %v5988_v38  ;;  %v5994_v6 = vpop.f32.mrf.mxu0  ;;  %4923 = vmatmul.msk.f32.gmra.mxu1 %vm575_vm2, %v5964_v61  ;;  %v6008_v38 = vsel %vm929_vm4, %v940_v26, %v941_v36 }
  0xaf   : > { %4821 = vmatmul.msk.f32.gmra.mxu2 %vm575_vm2, %v939_v46  ;;  %v890_v5 = vpop.f32.mrf.mxu3 }
  0xb0   : > { %4889 = vmatmul.msk.f32.gmra.mxu0 %vm575_vm2, %v5551_v44 }
  0xb2   : > { %v714_v55 = vpop.f32.mrf.mxu2  ;;  %v6005_v3 = vpop.f32.mrf.mxu1 }
  0xb3   : > { %v6003_v18 = vadd.f32 %v890_v5, %v714_v55  ;;  %v943_v5 = vrot.slane %v5679_v50, 2 }
  0xb4   : > { %4856 = vmatmul.msk.f32.gmra.mxu3 %vm575_vm2, %v5653_v31 }
  0xb5   : > { %9574 = vst [vmem:[#allocation57_spill] sm:$0xff] %v6003_v18  ;;  %v6012_v46 = vpop.f32.mrf.mxu0  ;;  %4924 = vmatmul.msk.f32.gmra.mxu1 %vm575_vm2, %v6008_v38  ;;  %v6026_v31 = vsel %vm929_vm4, %v941_v36, %v943_v5 }
  0xb6   : > { %9576 = vst [vmem:[#allocation59_spill] sm:$0xff] %v6026_v31 }
  0xb7   : > { %4822 = vmatmul.msk.f32.gmra.mxu2 %vm575_vm2, %v5945_v52  ;;  %v893_v58 = vpop.f32.mrf.mxu3 }
  0xb8   : > { %4890 = vmatmul.msk.f32.gmra.mxu0 %vm575_vm2, %v5670_v47 }
  0xba   : > { %v717_v55 = vpop.f32.mrf.mxu2  ;;  %v6023_v18 = vpop.f32.mrf.mxu1 }
  0xbb   : > { %v6021_v26 = vadd.f32 %v893_v58, %v717_v55  ;;  %v945_v58 = vrot.slane %v5709_v12, 2  ;;  %v946_v55 = vrot.slane %v5706_v11, 2 }
  0xbc   : > { %4857 = vmatmul.msk.f32.gmra.mxu3 %vm575_vm2, %v5650_v29 }
  0xbd   : > { %9575 = vst [vmem:[#allocation58_spill] sm:$0xff] %v6021_v26  ;;  %v6030_v20 = vpop.f32.mrf.mxu0  ;;  %4925 = vmatmul.msk.f32.gmra.mxu1 %vm575_vm2, %v6026_v31  ;;  %v6045_v29 = vsel %vm929_vm4, %v945_v58, %v946_v55 }
  0xbf   : > { %4823 = vmatmul.msk.f32.gmra.mxu2 %vm575_vm2, %v5964_v61  ;;  %v896_v50 = vpop.f32.mrf.mxu3 }
  0xc0   : > { %4891 = vmatmul.msk.f32.gmra.mxu0 %vm575_vm2, %v5699_v10 }
  0xc2   : > { %v720_v36 = vpop.f32.mrf.mxu2  ;;  %v6042_v26 = vpop.f32.mrf.mxu1 }
  0xc3   : > { %v6040_v5 = vadd.f32 %v896_v50, %v720_v36  ;;  %v948_v50 = vrot.slane %v5735_v37, 2 }
  0xc4   : > { %4858 = vmatmul.msk.f32.gmra.mxu3 %vm575_vm2, %v5709_v12 }
  0xc5   : > { %9577 = vst [vmem:[#allocation60_spill] sm:$0xff] %v6040_v5  ;;  %v6049_v47 = vpop.f32.mrf.mxu0  ;;  %4926 = vmatmul.msk.f32.gmra.mxu1 %vm575_vm2, %v6045_v29  ;;  %v6063_v12 = vsel %vm929_vm4, %v946_v55, %v948_v50 }
  0xc6   : > { %9579 = vst [vmem:[#allocation62_spill] sm:$0xff] %v6063_v12 }
  0xc7   : > { %4824 = vmatmul.msk.f32.gmra.mxu2 %vm575_vm2, %v6008_v38  ;;  %v899_v10 = vpop.f32.mrf.mxu3 }
  0xc8   : > { %4892 = vmatmul.msk.f32.gmra.mxu0 %vm575_vm2, %v5726_v33 }
  0xca   : > { %v723_v36 = vpop.f32.mrf.mxu2  ;;  %v6060_v5 = vpop.f32.mrf.mxu1 }
  0xcb   : > { %v6058_v58 = vadd.f32 %v899_v10, %v723_v36  ;;  %v950_v10 = vrot.slane %v5765_v15, 2  ;;  %v951_v36 = vrot.slane %v5762_v14, 2 }
  0xcc   : > { %4859 = vmatmul.msk.f32.gmra.mxu3 %vm575_vm2, %v5706_v11 }
  0xcd   : > { %9578 = vst [vmem:[#allocation61_spill] sm:$0xff] %v6058_v58  ;;  %v6067_v61 = vpop.f32.mrf.mxu0  ;;  %4927 = vmatmul.msk.f32.gmra.mxu1 %vm575_vm2, %v6063_v12  ;;  %v6082_v11 = vsel %vm929_vm4, %v950_v10, %v951_v36 }
  0xcf   : > { %4825 = vmatmul.msk.f32.gmra.mxu2 %vm575_vm2, %v6026_v31  ;;  %v902_v37 = vpop.f32.mrf.mxu3 }
  0xd0   : > { %4893 = vmatmul.msk.f32.gmra.mxu0 %vm575_vm2, %v5755_v13 }
  0xd2   : > { %v726_v55 = vpop.f32.mrf.mxu2  ;;  %v6079_v58 = vpop.f32.mrf.mxu1 }
  0xd3   : > { %v6077_v50 = vadd.f32 %v902_v37, %v726_v55  ;;  %v953_v37 = vrot.slane %v5791_v49, 2 }
  0xd4   : > { %4860 = vmatmul.msk.f32.gmra.mxu3 %vm575_vm2, %v5765_v15 }
  0xd5   : > { %9580 = vst [vmem:[#allocation63_spill] sm:$0xff] %v6077_v50  ;;  %v6086_v33 = vpop.f32.mrf.mxu0  ;;  %4928 = vmatmul.msk.f32.gmra.mxu1 %vm575_vm2, %v6082_v11  ;;  %v6100_v15 = vsel %vm929_vm4, %v951_v36, %v953_v37 }
  0xd6   : > { %9582 = vst [vmem:[#allocation65_spill] sm:$0xff] %v6100_v15 }
  0xd7   : > { %4826 = vmatmul.msk.f32.gmra.mxu2 %vm575_vm2, %v6045_v29  ;;  %v905_v13 = vpop.f32.mrf.mxu3 }
  0xd8   : > { %4894 = vmatmul.msk.f32.gmra.mxu0 %vm575_vm2, %v5782_v57 }
  0xda   : > { %v729_v55 = vpop.f32.mrf.mxu2  ;;  %v6097_v50 = vpop.f32.mrf.mxu1 }
  0xdb   : > { %v6095_v10 = vadd.f32 %v905_v13, %v729_v55  ;;  %v955_v13 = vrot.slane %v5821_v60, 2  ;;  %v956_v55 = vrot.slane %v5818_v23, 2 }
  0xdc   : > { %4861 = vmatmul.msk.f32.gmra.mxu3 %vm575_vm2, %v5762_v14 }
  0xdd   : > { %9581 = vst [vmem:[#allocation64_spill] sm:$0xff] %v6095_v10  ;;  %v6104_v31 = vpop.f32.mrf.mxu0  ;;  %4929 = vmatmul.msk.f32.gmra.mxu1 %vm575_vm2, %v6100_v15  ;;  %v6119_v14 = vsel %vm929_vm4, %v955_v13, %v956_v55 }
  0xdf   : > { %4827 = vmatmul.msk.f32.gmra.mxu2 %vm575_vm2, %v6063_v12  ;;  %v908_v49 = vpop.f32.mrf.mxu3 }
  0xe0   : > { %4895 = vmatmul.msk.f32.gmra.mxu0 %vm575_vm2, %v5811_v35 }
  0xe2   : > { %v732_v36 = vpop.f32.mrf.mxu2  ;;  %v6116_v10 = vpop.f32.mrf.mxu1 }
  0xe3   : > { %v6114_v37 = vadd.f32 %v908_v49, %v732_v36  ;;  %v958_v49 = vrot.slane %v5847_v62, 2 }
  0xe4   : > { %4862 = vmatmul.msk.f32.gmra.mxu3 %vm575_vm2, %v5821_v60 }
  0xe5   : > { %9583 = vst [vmem:[#allocation66_spill] sm:$0xff] %v6114_v37  ;;  %v6123_v57 = vpop.f32.mrf.mxu0  ;;  %4930 = vmatmul.msk.f32.gmra.mxu1 %vm575_vm2, %v6119_v14  ;;  %v6137_v60 = vsel %vm929_vm4, %v956_v55, %v958_v49 }
  0xe6   : > { %9585 = vst [vmem:[#allocation68_spill] sm:$0xff] %v6137_v60 }
  0xe7   : > { %4828 = vmatmul.msk.f32.gmra.mxu2 %vm575_vm2, %v6082_v11  ;;  %v911_v35 = vpop.f32.mrf.mxu3 }
  0xe8   : > { %4896 = vmatmul.msk.f32.gmra.mxu0 %vm575_vm2, %v5838_v32 }
  0xea   : > { %v735_v36 = vpop.f32.mrf.mxu2  ;;  %v6134_v37 = vpop.f32.mrf.mxu1 }
  0xeb   : > { %v6132_v13 = vadd.f32 %v911_v35, %v735_v36  ;;  %v960_v35 = vrot.slane %v5885_v4, 2  ;;  %v961_v36 = vrot.slane %v5882_v56, 2 }
  0xec   : > { %4863 = vmatmul.msk.f32.gmra.mxu3 %vm575_vm2, %v5818_v23 }
  0xed   : > { %9584 = vst [vmem:[#allocation67_spill] sm:$0xff] %v6132_v13  ;;  %v6141_v12 = vpop.f32.mrf.mxu0  ;;  %4931 = vmatmul.msk.f32.gmra.mxu1 %vm575_vm2, %v6137_v60  ;;  %v6156_v23 = vsel %vm929_vm4, %v960_v35, %v961_v36 }
  0xee   : > { %9587 = vst [vmem:[#allocation70_spill] sm:$0xff] %v6156_v23 }
  0xef   : > { %4829 = vmatmul.msk.f32.gmra.mxu2 %vm575_vm2, %v6100_v15  ;;  %v914_v62 = vpop.f32.mrf.mxu3 }
  0xf0   : > { %4897 = vmatmul.msk.f32.gmra.mxu0 %vm575_vm2, %v5875_v59 }
  0xf2   : > { %v738_v55 = vpop.f32.mrf.mxu2  ;;  %v6153_v13 = vpop.f32.mrf.mxu1 }
  0xf3   : > { %v6151_v49 = vadd.f32 %v914_v62, %v738_v55  ;;  %v963_v62 = vrot.slane %v5917_v48, 2 }
  0xf4   : > { %4864 = vmatmul.msk.f32.gmra.mxu3 %vm575_vm2, %v5885_v4 }
  0xf5   : > { %9586 = vst [vmem:[#allocation69_spill] sm:$0xff] %v6151_v49  ;;  %v6160_v32 = vpop.f32.mrf.mxu0  ;;  %4932 = vmatmul.msk.f32.gmra.mxu1 %vm575_vm2, %v6156_v23  ;;  %v6174_v4 = vsel %vm929_vm4, %v961_v36, %v963_v62 }
  0xf6   : > { %9589 = vst [vmem:[#allocation72_spill] sm:$0xff] %v6174_v4 }
  0xf7   : > { %4830 = vmatmul.msk.f32.gmra.mxu2 %vm575_vm2, %v6119_v14  ;;  %v917_v59 = vpop.f32.mrf.mxu3 }
  0xf8   : > { %4898 = vmatmul.msk.f32.gmra.mxu0 %vm575_vm2, %v5910_v63 }
  0xfa   : > { %v741_v55 = vpop.f32.mrf.mxu2  ;;  %v6171_v49 = vpop.f32.mrf.mxu1 }
  0xfb   : > { %v6169_v35 = vadd.f32 %v917_v59, %v741_v55  ;;  %v965_v59 = vrot.slane %v5501_v17, 2  ;;  %v966_v55 = vrot.slane %v5498_v16, 2 }
  0xfc   : > { %4865 = vmatmul.msk.f32.gmra.mxu3 %vm575_vm2, %v5882_v56 }
  0xfd   : > { %9588 = vst [vmem:[#allocation71_spill] sm:$0xff] %v6169_v35  ;;  %v6178_v15 = vpop.f32.mrf.mxu0  ;;  %4933 = vmatmul.msk.f32.gmra.mxu1 %vm575_vm2, %v6174_v4  ;;  %v6193_v56 = vsel %vm929_vm4, %v965_v59, %v966_v55 }
  0xfe   : > { %9591 = vst [vmem:[#allocation74_spill] sm:$0xff] %v6193_v56 }
  0xff   : > { %4831 = vmatmul.msk.f32.gmra.mxu2 %vm575_vm2, %v6137_v60  ;;  %v920_v48 = vpop.f32.mrf.mxu3 }
 0x100   : > { %4899 = vmatmul.msk.f32.gmra.mxu0 %vm575_vm2, %v5929_v51 }
 0x102   : > { %v744_v36 = vpop.f32.mrf.mxu2  ;;  %v6190_v35 = vpop.f32.mrf.mxu1 }
 0x103   : > { %v6188_v62 = vadd.f32 %v920_v48, %v744_v36  ;;  %v968_v48 = vrot.slane %v5511_v21, 2 }
 0x104   : > { %4866 = vmatmul.msk.f32.gmra.mxu3 %vm575_vm2, %v5501_v17 }
 0x105   : > { %9590 = vst [vmem:[#allocation73_spill] sm:$0xff] %v6188_v62  ;;  %v6197_v63 = vpop.f32.mrf.mxu0  ;;  %4934 = vmatmul.msk.f32.gmra.mxu1 %vm575_vm2, %v6193_v56  ;;  %v6211_v17 = vsel %vm929_vm4, %v966_v55, %v968_v48 }
 0x107   : > { %4832 = vmatmul.msk.f32.gmra.mxu2 %vm575_vm2, %v6156_v23  ;;  %v923_v51 = vpop.f32.mrf.mxu3 }
 0x108   : > { %4900 = vmatmul.msk.f32.gmra.mxu0 %vm575_vm2, %v5518_v24 }
 0x10a   : > { %v747_v36 = vpop.f32.mrf.mxu2  ;;  %v6208_v62 = vpop.f32.mrf.mxu1 }
 0x10b   : > { %v6206_v59 = vadd.f32 %v923_v51, %v747_v36  ;;  %v970_v51 = vrot.slane %v5548_v43, 2  ;;  %v971_v36 = vrot.slane %v5545_v42, 2 }
 0x10c   : > { %4867 = vmatmul.msk.f32.gmra.mxu3 %vm575_vm2, %v5498_v16 }
 0x10d   : > { %9592 = vst [vmem:[#allocation75_spill] sm:$0xff] %v6206_v59  ;;  %v6215_v60 = vpop.f32.mrf.mxu0  ;;  %4935 = vmatmul.msk.f32.gmra.mxu1 %vm575_vm2, %v6211_v17  ;;  %v6228_v16 = vsel %vm929_vm4, %v970_v51, %v971_v36 }
 0x10f   : > { %4833 = vmatmul.msk.f32.gmra.mxu2 %vm575_vm2, %v6174_v4  ;;  %v926_v21 = vpop.f32.mrf.mxu3 }
 0x110   : > { %4901 = vmatmul.msk.f32.gmra.mxu0 %vm575_vm2, %v5540_v41  ;;  %v973_v41 = vrot.slane %v5575_v54, 2 }
 0x112   : > { %v750_v55 = vpop.f32.mrf.mxu2  ;;  %v1561_v59 = vpop.f32.mrf.mxu1 }
 0x113   : > { %v6225_v48 = vadd.f32 %v926_v21, %v750_v55  ;;  %v834_v21 = vadd.f32 %v5941_v9, %v5949_v19  ;;  %v975_v9 = vrot.slane %v5602_v2, 2 }
 0x114   : > { %4868 = vmatmul.msk.f32.gmra.mxu3 %vm575_vm2, %v5548_v43  ;;  %v6242_v43 = vsel %vm929_vm4, %v971_v36, %v973_v41  ;;  %v837_v41 = vadd.f32 %v5960_v34, %v5968_v27 }
 0x115   : > { %9593 = vst [vmem:[#allocation76_spill] sm:$0xff] %v6225_v48  ;;  %v1402_v24 = vpop.f32.mrf.mxu0  ;;  %4936 = vmatmul.msk.f32.gmra.mxu1 %vm575_vm2, %v6228_v16 }
 0x117   : > { %4834 = vmatmul.msk.f32.gmra.mxu2 %vm575_vm2, %v6193_v56  ;;  %v1242_v4 = vpop.f32.mrf.mxu3 }
 0x118   : > { %4902 = vmatmul.msk.f32.gmra.mxu0 %vm575_vm2, %v5570_v53 }
 0x11a   : > { %v1087_v51 = vpop.f32.mrf.mxu2  ;;  %v1564_v48 = vpop.f32.mrf.mxu1 }
 0x11b   : > { %v1183_v55 = vadd.f32 %v1087_v51, %v834_v21  ;;  %v976_v21 = vrot.slane %v5599_v1, 2 }
 0x11c   : > { %4869 = vmatmul.msk.f32.gmra.mxu3 %vm575_vm2, %v5545_v42 }
 0x11d   : > { %v1338_v23 = vadd.f32 %v1242_v4, %v1183_v55  ;;  %v1405_v56 = vpop.f32.mrf.mxu0  ;;  %4937 = vmatmul.msk.f32.gmra.mxu1 %vm575_vm2, %v6242_v43 }
 0x11f   : > { %v1498_v54 = vadd.f32 %v1402_v24, %v1338_v23  ;;  %4835 = vmatmul.msk.f32.gmra.mxu2 %vm575_vm2, %v6211_v17  ;;  %v1245_v19 = vpop.f32.mrf.mxu3  ;;  %v6259_v24 = vsel %vm929_vm4, %v975_v9, %v976_v21 }
 0x120   : > { %4903 = vmatmul.msk.f32.gmra.mxu0 %vm575_vm2, %v5594_v0 }
 0x121   : > { %v6254_v36 = vadd.f32 %v1561_v59, %v1498_v54  ;;  %v978_v59 = vrot.slane %v5621_v8, 2  ;;  %v840_v54 = vadd.f32 %v5977_v25, %v5981_v45  ;;  %v980_v45 = vrot.slane %v5643_v28, 2 }
 0x122   : > { %v1090_v4 = vpop.f32.mrf.mxu2  ;;  %v1567_v23 = vpop.f32.mrf.mxu1 }
 0x123   : > { %v1184_v51 = vadd.f32 %v1090_v4, %v837_v41  ;;  %v6275_v4 = vsel %vm929_vm4, %v976_v21, %v978_v59  ;;  %v843_v21 = vadd.f32 %v5990_v40, %v5994_v6  ;;  %v9598_v6 = vld [vmem:[#allocation14_spill] sm:$0xff] }
 0x124   : > { %4870 = vmatmul.msk.f32.gmra.mxu3 %vm575_vm2, %v5602_v2 }
 0x125   : > { %v1339_v55 = vadd.f32 %v1245_v19, %v1184_v51  ;;  %v1408_v42 = vpop.f32.mrf.mxu0  ;;  %4938 = vmatmul.msk.f32.gmra.mxu1 %vm575_vm2, %v6259_v24 }
 0x127   : > { %v1499_v27 = vadd.f32 %v1405_v56, %v1339_v55  ;;  %4836 = vmatmul.msk.f32.gmra.mxu2 %vm575_vm2, %v6228_v16  ;;  %v1248_v34 = vpop.f32.mrf.mxu3 }
 0x128   : > { %4904 = vmatmul.msk.f32.gmra.mxu0 %vm575_vm2, %v5616_v7 }
 0x129   : > { %v6270_v9 = vadd.f32 %v1564_v48, %v1499_v27  ;;  %v9595_v48 = vld [vmem:[#allocation10_spill] sm:$0xff] }
 0x12a   : > { %v1093_v19 = vpop.f32.mrf.mxu2  ;;  %v1570_v55 = vpop.f32.mrf.mxu1  ;;  %v981_v27 = vrot.slane %v9595_v48, 2 }
 0x12b   : > { %9594 = vst [vmem:[#allocation77_spill] sm:$0xff] %v6270_v9  ;;  %v1185_v41 = vadd.f32 %v1093_v19, %v840_v54 }
 0x12c   : > { %4871 = vmatmul.msk.f32.gmra.mxu3 %vm575_vm2, %v5599_v1 }
 0x12d   : > { %v1340_v56 = vadd.f32 %v1248_v34, %v1185_v41  ;;  %v1411_v51 = vpop.f32.mrf.mxu0  ;;  %4939 = vmatmul.msk.f32.gmra.mxu1 %vm575_vm2, %v6275_v4  ;;  %v9597_v34 = vld [vmem:[#allocation9_spill] sm:$0xff] }
 0x12f   : > { %v1500_v8 = vadd.f32 %v1408_v42, %v1340_v56  ;;  %4837 = vmatmul.msk.f32.gmra.mxu2 %vm575_vm2, %v6242_v43  ;;  %v1251_v25 = vpop.f32.mrf.mxu3  ;;  %v6292_v42 = vsel %vm929_vm4, %v980_v45, %v981_v27  ;;  %v846_v45 = vadd.f32 %v6005_v3, %v6012_v46  ;;  %v9601_v46 = vld [vmem:[#allocation18_spill] sm:$0xff] }
 0x130   : > { %4905 = vmatmul.msk.f32.gmra.mxu0 %vm575_vm2, %v9597_v34 }
 0x131   : > { %v6287_v59 = vadd.f32 %v1567_v23, %v1500_v8  ;;  %v983_v23 = vrot.slane %v9598_v6, 2 }
 0x132   : > { %v1096_v54 = vpop.f32.mrf.mxu2  ;;  %v1573_v8 = vpop.f32.mrf.mxu1 }
 0x133   : > { %9596 = vst [vmem:[#allocation78_spill] sm:$0xff] %v6287_v59  ;;  %v1186_v19 = vadd.f32 %v1096_v54, %v843_v21  ;;  %v9600_v54 = vld [vmem:[#allocation13_spill] sm:$0xff]  ;;  %v6308_v59 = vsel %vm929_vm4, %v981_v27, %v983_v23  ;;  %v849_v27 = vadd.f32 %v6023_v18, %v6030_v20 }
 0x134   : > { %4872 = vmatmul.msk.f32.gmra.mxu3 %vm575_vm2, %v5643_v28 }
 0x135   : > { %v1341_v41 = vadd.f32 %v1251_v25, %v1186_v19  ;;  %v1414_v56 = vpop.f32.mrf.mxu0  ;;  %4940 = vmatmul.msk.f32.gmra.mxu1 %vm575_vm2, %v6292_v42 }
 0x137   : > { %v1501_v9 = vadd.f32 %v1411_v51, %v1341_v41  ;;  %4838 = vmatmul.msk.f32.gmra.mxu2 %vm575_vm2, %v6259_v24  ;;  %v1254_v40 = vpop.f32.mrf.mxu3 }
 0x138   : > { %4906 = vmatmul.msk.f32.gmra.mxu0 %vm575_vm2, %v9600_v54 }
 0x139   : > { %v6303_v21 = vadd.f32 %v1570_v55, %v1501_v9  ;;  %v985_v9 = vrot.slane %v9601_v46, 2  ;;  %v9602_v55 = vld [vmem:[#allocation17_spill] sm:$0xff] }
 0x13a   : > { %v1099_v25 = vpop.f32.mrf.mxu2 }
 0x13b   : > { %9599 = vst [vmem:[#allocation9_spill] sm:$0xff] %v6303_v21  ;;  %v1187_v19 = vadd.f32 %v1099_v25, %v846_v45  ;;  %v986_v45 = vrot.slane %v9602_v55, 2  ;;  %v9604_v25 = vld [vmem:[#allocation16_spill] sm:$0xff] }
 0x13c   : > { %4873 = vmatmul.msk.f32.gmra.mxu3 %vm575_vm2, %v9595_v48 }
 0x13d   : > { %v1342_v51 = vadd.f32 %v1254_v40, %v1187_v19  ;;  %v1417_v41 = vpop.f32.mrf.mxu0  ;;  %4941 = vmatmul.msk.f32.gmra.mxu1 %vm575_vm2, %v6308_v59  ;;  %v1576_v19 = vpop.f32.mrf.mxu1 }
 0x13f   : > { %v1502_v6 = vadd.f32 %v1414_v56, %v1342_v51  ;;  %4839 = vmatmul.msk.f32.gmra.mxu2 %vm575_vm2, %v6275_v4  ;;  %v1257_v3 = vpop.f32.mrf.mxu3  ;;  %v6325_v56 = vsel %vm929_vm4, %v985_v9, %v986_v45 }
 0x140   : > { %4907 = vmatmul.msk.f32.gmra.mxu0 %vm575_vm2, %v9604_v25 }
 0x141   : > { %v6320_v23 = vadd.f32 %v1573_v8, %v1502_v6  ;;  %v9605_v8 = vld [vmem:[#allocation23_spill] sm:$0xff] }
 0x142   : > { %v1102_v40 = vpop.f32.mrf.mxu2  ;;  %v988_v6 = vrot.slane %v9605_v8, 2  ;;  %v9609_v8 = vld [vmem:[#allocation26_spill] sm:$0xff] }
 0x143   : > { %9603 = vst [vmem:[#allocation14_spill] sm:$0xff] %v6320_v23  ;;  %v1188_v21 = vadd.f32 %v1102_v40, %v849_v27  ;;  %v852_v27 = vadd.f32 %v6042_v26, %v6049_v47  ;;  %v9607_v40 = vld [vmem:[#allocation22_spill] sm:$0xff] }
 0x144   : > { %4874 = vmatmul.msk.f32.gmra.mxu3 %vm575_vm2, %v9601_v46  ;;  %v6341_v23 = vsel %vm929_vm4, %v986_v45, %v988_v6  ;;  %v855_v45 = vadd.f32 %v6060_v5, %v6067_v61 }
 0x145   : > { %v1343_v51 = vadd.f32 %v1257_v3, %v1188_v21  ;;  %v1420_v48 = vpop.f32.mrf.mxu0  ;;  %4942 = vmatmul.msk.f32.gmra.mxu1 %vm575_vm2, %v6325_v56 }
 0x147   : > { %v1503_v20 = vadd.f32 %v1417_v41, %v1343_v51  ;;  %4840 = vmatmul.msk.f32.gmra.mxu2 %vm575_vm2, %v6292_v42  ;;  %v1260_v18 = vpop.f32.mrf.mxu3  ;;  %v1579_v41 = vpop.f32.mrf.mxu1 }
 0x148   : > { %4908 = vmatmul.msk.f32.gmra.mxu0 %vm575_vm2, %v9607_v40 }
 0x149   : > { %v6336_v9 = vadd.f32 %v1576_v19, %v1503_v20  ;;  %v9608_v19 = vld [vmem:[#allocation27_spill] sm:$0xff] }
 0x14a   : > { %v1105_v21 = vpop.f32.mrf.mxu2  ;;  %v990_v20 = vrot.slane %v9608_v19, 2 }
 0x14b   : > { %9606 = vst [vmem:[#allocation13_spill] sm:$0xff] %v6336_v9  ;;  %v1189_v3 = vadd.f32 %v1105_v21, %v852_v27  ;;  %v991_v27 = vrot.slane %v9609_v8, 2  ;;  %v9611_v21 = vld [vmem:[#allocation25_spill] sm:$0xff] }
 0x14c   : > { %4875 = vmatmul.msk.f32.gmra.mxu3 %vm575_vm2, %v9602_v55 }
 0x14d   : > { %v1344_v51 = vadd.f32 %v1260_v18, %v1189_v3  ;;  %v1423_v46 = vpop.f32.mrf.mxu0  ;;  %4943 = vmatmul.msk.f32.gmra.mxu1 %vm575_vm2, %v6341_v23 }
 0x14f   : > { %v1504_v47 = vadd.f32 %v1420_v48, %v1344_v51  ;;  %4841 = vmatmul.msk.f32.gmra.mxu2 %vm575_vm2, %v6308_v59  ;;  %v1263_v26 = vpop.f32.mrf.mxu3  ;;  %v6358_v48 = vsel %vm929_vm4, %v990_v20, %v991_v27  ;;  %v1582_v9 = vpop.f32.mrf.mxu1  ;;  %v858_v20 = vadd.f32 %v6079_v58, %v6086_v33  ;;  %v9616_v58 = vld [vmem:[#allocation36_spill] sm:$0xff] }
 0x150   : > { %4909 = vmatmul.msk.f32.gmra.mxu0 %vm575_vm2, %v9611_v21 }
 0x151   : > { %v6353_v6 = vadd.f32 %v1579_v41, %v1504_v47  ;;  %v9612_v41 = vld [vmem:[#allocation32_spill] sm:$0xff] }
 0x152   : > { %v1108_v18 = vpop.f32.mrf.mxu2  ;;  %v993_v47 = vrot.slane %v9612_v41, 2 }
 0x153   : > { %9610 = vst [vmem:[#allocation16_spill] sm:$0xff] %v6353_v6  ;;  %v1190_v3 = vadd.f32 %v1108_v18, %v855_v45  ;;  %v9614_v18 = vld [vmem:[#allocation31_spill] sm:$0xff] }
 0x154   : > { %4876 = vmatmul.msk.f32.gmra.mxu3 %vm575_vm2, %v9608_v19  ;;  %v6374_v6 = vsel %vm929_vm4, %v991_v27, %v993_v47  ;;  %v861_v27 = vadd.f32 %v6097_v50, %v6104_v31  ;;  %v9618_v47 = vld [vmem:[#allocation34_spill] sm:$0xff]  ;;  %v9621_v50 = vld [vmem:[#allocation41_spill] sm:$0xff] }
 0x155   : > { %v1345_v51 = vadd.f32 %v1263_v26, %v1190_v3  ;;  %v1426_v55 = vpop.f32.mrf.mxu0  ;;  %4944 = vmatmul.msk.f32.gmra.mxu1 %vm575_vm2, %v6358_v48 }
 0x157   : > { %v1505_v61 = vadd.f32 %v1423_v46, %v1345_v51  ;;  %4842 = vmatmul.msk.f32.gmra.mxu2 %vm575_vm2, %v6325_v56  ;;  %v1266_v5 = vpop.f32.mrf.mxu3 }
 0x158   : > { %4910 = vmatmul.msk.f32.gmra.mxu0 %vm575_vm2, %v9614_v18 }
 0x159   : > { %v6369_v45 = vadd.f32 %v1582_v9, %v1505_v61  ;;  %v995_v9 = vrot.slane %v9616_v58, 2  ;;  %v9617_v61 = vld [vmem:[#allocation35_spill] sm:$0xff] }
 0x15a   : > { %v1111_v26 = vpop.f32.mrf.mxu2 }
 0x15b   : > { %9613 = vst [vmem:[#allocation23_spill] sm:$0xff] %v6369_v45  ;;  %v1191_v3 = vadd.f32 %v1111_v26, %v858_v20  ;;  %v996_v20 = vrot.slane %v9617_v61, 2  ;;  %v998_v45 = vrot.slane %v9621_v50, 2 }
 0x15c   : > { %4877 = vmatmul.msk.f32.gmra.mxu3 %vm575_vm2, %v9609_v8 }
 0x15d   : > { %v1346_v46 = vadd.f32 %v1266_v5, %v1191_v3  ;;  %v1429_v51 = vpop.f32.mrf.mxu0  ;;  %4945 = vmatmul.msk.f32.gmra.mxu1 %vm575_vm2, %v6374_v6  ;;  %v6391_v3 = vsel %vm929_vm4, %v995_v9, %v996_v20  ;;  %v864_v9 = vadd.f32 %v6116_v10, %v6123_v57  ;;  %v9624_v10 = vld [vmem:[#allocation45_spill] sm:$0xff] }
 0x15e   : > { %9619 = vst [vmem:[#allocation27_spill] sm:$0xff] %v6391_v3 }
 0x15f   : > { %v6380_v41 = vadd.f32 %v1426_v55, %v1346_v46  ;;  %4843 = vmatmul.msk.f32.gmra.mxu2 %vm575_vm2, %v6341_v23  ;;  %v1269_v33 = vpop.f32.mrf.mxu3 }
 0x160   : > { %4911 = vmatmul.msk.f32.gmra.mxu0 %vm575_vm2, %v9618_v47 }
 0x161   : > { %9615 = vst [vmem:[#allocation22_spill] sm:$0xff] %v6380_v41 }
 0x162   : > { %v1114_v5 = vpop.f32.mrf.mxu2 }
 0x163   : > { %v1192_v26 = vadd.f32 %v1114_v5, %v861_v27  ;;  %v9622_v27 = vld [vmem:[#allocation40_spill] sm:$0xff] }
 0x164   : > { %4878 = vmatmul.msk.f32.gmra.mxu3 %vm575_vm2, %v9616_v58  ;;  %v9629_v58 = vld [vmem:[#allocation49_spill] sm:$0xff] }
 0x165   : > { %v1347_v55 = vadd.f32 %v1269_v33, %v1192_v26  ;;  %v1432_v46 = vpop.f32.mrf.mxu0  ;;  %4946 = vmatmul.msk.f32.gmra.mxu1 %vm575_vm2, %v6391_v3  ;;  %v6407_v26 = vsel %vm929_vm4, %v996_v20, %v998_v45  ;;  %v867_v20 = vadd.f32 %v6134_v37, %v6141_v12  ;;  %v255_v37 = vld [vmem:[%s5491_s8 + $0xf0] sm:$0xff] }
 0x167   : > { %v6397_v41 = vadd.f32 %v1429_v51, %v1347_v55  ;;  %4844 = vmatmul.msk.f32.gmra.mxu2 %vm575_vm2, %v6358_v48  ;;  %v1272_v31 = vpop.f32.mrf.mxu3 }
 0x168   : > { %4912 = vmatmul.msk.f32.gmra.mxu0 %vm575_vm2, %v9622_v27 }
 0x169   : > { %9620 = vst [vmem:[#allocation26_spill] sm:$0xff] %v6397_v41 }
 0x16a   : > { %v1117_v5 = vpop.f32.mrf.mxu2 }
 0x16b   : > { %v1193_v33 = vadd.f32 %v1117_v5, %v864_v9  ;;  %v1000_v9 = vrot.slane %v9624_v10, 2  ;;  %v9625_v5 = vld [vmem:[#allocation44_spill] sm:$0xff] }
 0x16c   : > { %4879 = vmatmul.msk.f32.gmra.mxu3 %vm575_vm2, %v9617_v61  ;;  %v1001_v45 = vrot.slane %v9625_v5, 2 }
 0x16d   : > { %v1348_v51 = vadd.f32 %v1272_v31, %v1193_v33  ;;  %v1435_v55 = vpop.f32.mrf.mxu0  ;;  %4947 = vmatmul.msk.f32.gmra.mxu1 %vm575_vm2, %v6407_v26  ;;  %v9626_v31 = vld [vmem:[#allocation43_spill] sm:$0xff] }
 0x16f   : > { %v6413_v50 = vadd.f32 %v1432_v46, %v1348_v51  ;;  %4845 = vmatmul.msk.f32.gmra.mxu2 %vm575_vm2, %v6374_v6  ;;  %v1275_v57 = vpop.f32.mrf.mxu3  ;;  %v6424_v46 = vsel %vm929_vm4, %v1000_v9, %v1001_v45  ;;  %v870_v9 = vadd.f32 %v6153_v13, %v6160_v32 }
 0x170   : > { %4913 = vmatmul.msk.f32.gmra.mxu0 %vm575_vm2, %v9626_v31  ;;  %v9628_v31 = vld [vmem:[#allocation50_spill] sm:$0xff] }
 0x171   : > { %9623 = vst [vmem:[#allocation25_spill] sm:$0xff] %v6413_v50 }
 0x172   : > { %v1120_v33 = vpop.f32.mrf.mxu2 }
 0x173   : > { %v1194_v41 = vadd.f32 %v1120_v33, %v867_v20  ;;  %v1003_v20 = vrot.slane %v9628_v31, 2  ;;  %v256_v33 = vld [vmem:[%s5491_s8 + $0xf8] sm:$0xff] }
 0x174   : > { %4880 = vmatmul.msk.f32.gmra.mxu3 %vm575_vm2, %v9624_v10  ;;  %v367_v10 = vrot.slane %v255_v37, 7  ;;  %v368_v27 = vrot.slane %v256_v33, 7 }
 0x175   : > { %v1349_v51 = vadd.f32 %v1275_v57, %v1194_v41  ;;  %v1438_v50 = vpop.f32.mrf.mxu0  ;;  %4948 = vmatmul.msk.f32.gmra.mxu1 %vm575_vm2, %v6424_v46  ;;  %v288_v57 = vrot.slane %v255_v37, 1 }
 0x176   : > { %v6452_v32 = vsel %vm321_vm1, %v367_v10, %v368_v27 }
 0x177   : > { %v6430_v61 = vadd.f32 %v1435_v55, %v1349_v51  ;;  %4846 = vmatmul.msk.f32.gmra.mxu2 %vm575_vm2, %v6391_v3  ;;  %v1278_v12 = vpop.f32.mrf.mxu3  ;;  %v6442_v51 = vsel %vm929_vm4, %v1001_v45, %v1003_v20  ;;  %v6447_v3 = vsel %vm321_vm1, %v288_v57, %v367_v10  ;;  %v873_v20 = vadd.f32 %v6171_v49, %v6178_v15 }
 0x178   : > { %4914 = vmatmul.msk.f32.gmra.mxu0 %vm575_vm2, %v9629_v58  ;;  %v1530_v37 = vrot.slane %v6447_v3, 2  ;;  %v1371_v10 = vrot.slane %v6447_v3, 1  ;;  %v417_v57 = vrot.slane %v256_v33, 5 }
 0x179   : > { %9627 = vst [vmem:[#allocation32_spill] sm:$0xff] %v6430_v61 }
 0x17a   : > { %v1123_v41 = vpop.f32.mrf.mxu2  ;;  %v465_v49 = vsel %vm321_vm1, %v368_v27, %v417_v57 }
 0x17b   : > { %v1195_v55 = vadd.f32 %v1123_v41, %v870_v9  ;;  %v9631_v9 = vld [vmem:[#allocation52_spill] sm:$0xff] }
 0x17c   : > { %4881 = vmatmul.msk.f32.gmra.mxu3 %vm575_vm2, %v9625_v5 }
 0x17d   : > { %v1350_v61 = vadd.f32 %v1278_v12, %v1195_v55  ;;  %v1441_v31 = vpop.f32.mrf.mxu0  ;;  %4949 = vmatmul.msk.f32.gmra.mxu1 %vm575_vm2, %v6442_v51  ;;  %v1531_v12 = vrot.slane %v6452_v32, 2 }
 0x17f   : > { %v6454_v13 = vadd.f32 %v1438_v50, %v1350_v61  ;;  %4847 = vmatmul.msk.f32.gmra.mxu2 %vm575_vm2, %v6407_v26  ;;  %v1281_v45 = vpop.f32.mrf.mxu3  ;;  %v1372_v61 = vrot.slane %v6452_v32, 1  ;;  %v6467_v55 = vsel %vm929_vm4, %v1530_v37, %v1531_v12 }
 0x180   : > { %4915 = vmatmul.msk.f32.gmra.mxu0 %vm575_vm2, %v9631_v9  ;;  %9632 = vst [vmem:[#allocation34_spill] sm:$0xff] %v6467_v55 }
 0x181   : > { %9630 = vst [vmem:[#allocation31_spill] sm:$0xff] %v6454_v13  ;;  %v6472_v15 = vsel %vm497_vm3, %v1371_v10, %v1372_v61  ;;  %v1374_v10 = vrot.slane %v465_v49, 1 }
 0x182   : > { %v1126_v41 = vpop.f32.mrf.mxu2 }
 0x183   : > { %v1196_v50 = vadd.f32 %v1126_v41, %v873_v20  ;;  %v1533_v20 = vrot.slane %v465_v49, 2  ;;  %v876_v41 = vadd.f32 %v6190_v35, %v6197_v63 }
 0x184   : > { %4882 = vmatmul.msk.f32.gmra.mxu3 %vm575_vm2, %v6447_v3 }
 0x185   : > { %v1351_v13 = vadd.f32 %v1281_v45, %v1196_v50  ;;  %v1444_v5 = vpop.f32.mrf.mxu0  ;;  %4950 = vmatmul.msk.f32.gmra.mxu1 %vm575_vm2, %v6467_v55  ;;  %v6486_v55 = vsel %vm929_vm4, %v1531_v12, %v1533_v20  ;;  %v879_v12 = vadd.f32 %v6208_v62, %v6215_v60 }
 0x187   : > { %v6477_v33 = vadd.f32 %v1441_v31, %v1351_v13  ;;  %4848 = vmatmul.msk.f32.gmra.mxu2 %vm575_vm2, %v6424_v46  ;;  %v1284_v37 = vpop.f32.mrf.mxu3  ;;  %v6491_v13 = vsel %vm497_vm3, %v1372_v61, %v1374_v10  ;;  %v9633_v10 = vld [vmem:[#allocation4_spill] sm:$0xff] }
 0x188   : > { %4916 = vmatmul.msk.f32.gmra.mxu0 %vm575_vm2, %v6472_v15 }
 0x18a   : > { %v1129_v45 = vpop.f32.mrf.mxu2 }
 0x18b   : > { %v1197_v50 = vadd.f32 %v1129_v45, %v876_v41 }
 0x18c   : > { %4883 = vmatmul.msk.f32.gmra.mxu3 %vm575_vm2, %v6452_v32 }
 0x18d   : > { %v1352_v27 = vadd.f32 %v1284_v37, %v1197_v50  ;;  %v1447_v31 = vpop.f32.mrf.mxu0  ;;  %4951 = vmatmul.msk.f32.gmra.mxu1 %vm575_vm2, %v6486_v55 }
 0x18f   : > { %v6495_v63 = vadd.f32 %v1444_v5, %v1352_v27  ;;  %4849 = vmatmul.msk.f32.gmra.mxu2 %vm575_vm2, %v6442_v51  ;;  %v1287_v35 = vpop.f32.mrf.mxu3  ;;  %v9634_v27 = vld [vmem:[#allocation54_spill] sm:$0xff] }
 0x190   : > { %4917 = vmatmul.msk.f32.gmra.mxu0 %vm575_vm2, %v6491_v13 }
 0x192   : > { %v1132_v57 = vpop.f32.mrf.mxu2 }
 0x193   : > { %v1198_v49 = vadd.f32 %v1132_v57, %v879_v12  ;;  %v9637_v57 = vld [vmem:[#allocation12_spill] sm:$0xff] }
 0x194   : > { %4988 = vmatmul.msk.f32.vlgmr.msra.gmra.mxu3 %vm575_vm2, %v5529_v30 }
 0x195   : > { %v1353_v61 = vadd.f32 %v1287_v35, %v1198_v49  ;;  %v1450_v37 = vpop.f32.mrf.mxu0  ;;  %v9636_v35 = vld [vmem:[#allocation15_spill] sm:$0xff] }
 0x197   : > { %v6505_v20 = vadd.f32 %v1447_v31, %v1353_v61  ;;  %4954 = vmatmul.msk.f32.vlgmr.msra.gmra.mxu2 %vm575_vm2, %v5514_v22  ;;  %v1290_v5 = vpop.f32.mrf.mxu3  ;;  %v9635_v31 = vld [vmem:[#allocation55_spill] sm:$0xff] }
 0x198   : > { %5022 = vmatmul.msk.f32.vlgmr.msra.gmra.mxu0 %vm575_vm2, %v5945_v52 }
 0x19a   : > { %v1135_v60 = vpop.f32.mrf.mxu2 }
 0x19b   : > { %v1199_v62 = vadd.f32 %v1135_v60, %v5958_v39  ;;  %v9639_v60 = vld [vmem:[#allocation19_spill] sm:$0xff] }
 0x19c   : > { %4989 = vmatmul.msk.f32.gmra.mxu3 %vm575_vm2, %v5551_v44 }
 0x19d   : > { %v1354_v41 = vadd.f32 %v1290_v5, %v1199_v62  ;;  %v1453_v45 = vpop.f32.mrf.mxu0 }
 0x19f   : > { %v6514_v30 = vadd.f32 %v1450_v37, %v1354_v41  ;;  %4955 = vmatmul.msk.f32.gmra.mxu2 %vm575_vm2, %v9633_v10  ;;  %v1293_v50 = vpop.f32.mrf.mxu3  ;;  %v9638_v37 = vld [vmem:[#allocation56_spill] sm:$0xff] }
 0x1a0   : > { %5023 = vmatmul.msk.f32.gmra.mxu0 %vm575_vm2, %v9634_v27  ;;  %v9641_v27 = vld [vmem:[#allocation59_spill] sm:$0xff] }
 0x1a2   : > { %v1138_v22 = vpop.f32.mrf.mxu2 }
 0x1a3   : > { %v1200_v52 = vadd.f32 %v1138_v22, %v9635_v31  ;;  %v9642_v31 = vld [vmem:[#allocation57_spill] sm:$0xff] }
 0x1a4   : > { %4990 = vmatmul.msk.f32.gmra.mxu3 %vm575_vm2, %v9636_v35 }
 0x1a5   : > { %v1355_v39 = vadd.f32 %v1293_v50, %v1200_v52  ;;  %v1456_v12 = vpop.f32.mrf.mxu0  ;;  %v9640_v50 = vld [vmem:[#allocation11_spill] sm:$0xff]  ;;  %v9643_v52 = vld [vmem:[#allocation24_spill] sm:$0xff] }
 0x1a7   : > { %v6523_v44 = vadd.f32 %v1453_v45, %v1355_v39  ;;  %4956 = vmatmul.msk.f32.gmra.mxu2 %vm575_vm2, %v9637_v57  ;;  %v1296_v49 = vpop.f32.mrf.mxu3 }
 0x1a8   : > { %5024 = vmatmul.msk.f32.gmra.mxu0 %vm575_vm2, %v6008_v38 }
 0x1aa   : > { %v1141_v61 = vpop.f32.mrf.mxu2 }
 0x1ab   : > { %v1201_v5 = vadd.f32 %v1141_v61, %v9638_v37  ;;  %v9645_v37 = vld [vmem:[#allocation58_spill] sm:$0xff] }
 0x1ac   : > { %4991 = vmatmul.msk.f32.gmra.mxu3 %vm575_vm2, %v9639_v60  ;;  %v9646_v60 = vld [vmem:[#allocation28_spill] sm:$0xff] }
 0x1ad   : > { %v1356_v62 = vadd.f32 %v1296_v49, %v1201_v5  ;;  %v1459_v41 = vpop.f32.mrf.mxu0  ;;  %v9644_v49 = vld [vmem:[#allocation21_spill] sm:$0xff] }
 0x1af   : > { %v6532_v10 = vadd.f32 %v1456_v12, %v1356_v62  ;;  %4957 = vmatmul.msk.f32.gmra.mxu2 %vm575_vm2, %v9640_v50  ;;  %v1299_v45 = vpop.f32.mrf.mxu3 }
 0x1b0   : > { %5025 = vmatmul.msk.f32.gmra.mxu0 %vm575_vm2, %v9641_v27 }
 0x1b2   : > { %v1144_v22 = vpop.f32.mrf.mxu2 }
 0x1b3   : > { %v1202_v38 = vadd.f32 %v1144_v22, %v9642_v31  ;;  %v9649_v22 = vld [vmem:[#allocation62_spill] sm:$0xff] }
 0x1b4   : > { %4992 = vmatmul.msk.f32.gmra.mxu3 %vm575_vm2, %v9643_v52  ;;  %v9651_v52 = vld [vmem:[#allocation33_spill] sm:$0xff] }
 0x1b5   : > { %v1357_v35 = vadd.f32 %v1299_v45, %v1202_v38  ;;  %v1462_v39 = vpop.f32.mrf.mxu0  ;;  %v9648_v45 = vld [vmem:[#allocation20_spill] sm:$0xff] }
 0x1b6   : > { %v9650_v38 = vld [vmem:[#allocation60_spill] sm:$0xff] }
 0x1b7   : > { %v6541_v57 = vadd.f32 %v1459_v41, %v1357_v35  ;;  %4958 = vmatmul.msk.f32.gmra.mxu2 %vm575_vm2, %v9644_v49  ;;  %v1302_v12 = vpop.f32.mrf.mxu3 }
 0x1b8   : > { %5026 = vmatmul.msk.f32.gmra.mxu0 %vm575_vm2, %v6045_v29 }
 0x1ba   : > { %v1147_v61 = vpop.f32.mrf.mxu2 }
 0x1bb   : > { %v1203_v5 = vadd.f32 %v1147_v61, %v9645_v37 }
 0x1bc   : > { %4993 = vmatmul.msk.f32.gmra.mxu3 %vm575_vm2, %v9646_v60 }
 0x1bd   : > { %v1358_v62 = vadd.f32 %v1302_v12, %v1203_v5  ;;  %v1465_v50 = vpop.f32.mrf.mxu0  ;;  %v9653_v12 = vld [vmem:[#allocation30_spill] sm:$0xff]  ;;  %v9654_v5 = vld [vmem:[#allocation61_spill] sm:$0xff] }
 0x1bf   : > { %v6550_v27 = vadd.f32 %v1462_v39, %v1358_v62  ;;  %4959 = vmatmul.msk.f32.gmra.mxu2 %vm575_vm2, %v9648_v45  ;;  %v1305_v41 = vpop.f32.mrf.mxu3  ;;  %v9655_v62 = vld [vmem:[#allocation37_spill] sm:$0xff] }
 0x1c0   : > { %5027 = vmatmul.msk.f32.gmra.mxu0 %vm575_vm2, %v9649_v22 }
 0x1c1   : > { %9647 = vst [vmem:[#allocation41_spill] sm:$0xff] %v6550_v27 }
 0x1c2   : > { %v1150_v31 = vpop.f32.mrf.mxu2 }
 0x1c3   : > { %v1204_v29 = vadd.f32 %v1150_v31, %v9650_v38  ;;  %v9658_v38 = vld [vmem:[#allocation65_spill] sm:$0xff] }
 0x1c4   : > { %4994 = vmatmul.msk.f32.gmra.mxu3 %vm575_vm2, %v9651_v52  ;;  %v9659_v52 = vld [vmem:[#allocation63_spill] sm:$0xff] }
 0x1c5   : > { %v1359_v35 = vadd.f32 %v1305_v41, %v1204_v29  ;;  %v1468_v49 = vpop.f32.mrf.mxu0  ;;  %v9657_v41 = vld [vmem:[#allocation29_spill] sm:$0xff] }
 0x1c7   : > { %v6559_v61 = vadd.f32 %v1465_v50, %v1359_v35  ;;  %4960 = vmatmul.msk.f32.gmra.mxu2 %vm575_vm2, %v9653_v12  ;;  %v1308_v39 = vpop.f32.mrf.mxu3  ;;  %v9660_v35 = vld [vmem:[#allocation42_spill] sm:$0xff] }
 0x1c8   : > { %5028 = vmatmul.msk.f32.gmra.mxu0 %vm575_vm2, %v6082_v11 }
 0x1c9   : > { %9652 = vst [vmem:[#allocation50_spill] sm:$0xff] %v6559_v61 }
 0x1ca   : > { %v1153_v37 = vpop.f32.mrf.mxu2 }
 0x1cb   : > { %v1205_v60 = vadd.f32 %v1153_v37, %v9654_v5 }
 0x1cc   : > { %4995 = vmatmul.msk.f32.gmra.mxu3 %vm575_vm2, %v9655_v62  ;;  %v9663_v62 = vld [vmem:[#allocation64_spill] sm:$0xff] }
 0x1cd   : > { %v1360_v45 = vadd.f32 %v1308_v39, %v1205_v60  ;;  %v1471_v22 = vpop.f32.mrf.mxu0  ;;  %v9662_v39 = vld [vmem:[#allocation39_spill] sm:$0xff] }
 0x1cf   : > { %v6568_v31 = vadd.f32 %v1468_v49, %v1360_v45  ;;  %4961 = vmatmul.msk.f32.gmra.mxu2 %vm575_vm2, %v9657_v41  ;;  %v1311_v50 = vpop.f32.mrf.mxu3  ;;  %v9664_v41 = vld [vmem:[#allocation46_spill] sm:$0xff] }
 0x1d0   : > { %5029 = vmatmul.msk.f32.gmra.mxu0 %vm575_vm2, %v9658_v38 }
 0x1d1   : > { %9656 = vst [vmem:[#allocation49_spill] sm:$0xff] %v6568_v31 }
 0x1d2   : > { %v1156_v29 = vpop.f32.mrf.mxu2 }
 0x1d3   : > { %v1206_v11 = vadd.f32 %v1156_v29, %v9659_v52 }
 0x1d4   : > { %4996 = vmatmul.msk.f32.gmra.mxu3 %vm575_vm2, %v9660_v35 }
 0x1d5   : > { %v1361_v12 = vadd.f32 %v1311_v50, %v1206_v11  ;;  %v1474_v37 = vpop.f32.mrf.mxu0  ;;  %v9666_v50 = vld [vmem:[#allocation38_spill] sm:$0xff]  ;;  %v9667_v11 = vld [vmem:[#allocation68_spill] sm:$0xff] }
 0x1d7   : > { %v6577_v5 = vadd.f32 %v1471_v22, %v1361_v12  ;;  %4962 = vmatmul.msk.f32.gmra.mxu2 %vm575_vm2, %v9662_v39  ;;  %v1314_v49 = vpop.f32.mrf.mxu3  ;;  %v9668_v12 = vld [vmem:[#allocation66_spill] sm:$0xff]  ;;  %v9669_v39 = vld [vmem:[#allocation51_spill] sm:$0xff] }
 0x1d8   : > { %5030 = vmatmul.msk.f32.gmra.mxu0 %vm575_vm2, %v6119_v14 }
 0x1d9   : > { %9661 = vst [vmem:[#allocation52_spill] sm:$0xff] %v6577_v5 }
 0x1da   : > { %v1159_v60 = vpop.f32.mrf.mxu2 }
 0x1db   : > { %v1207_v45 = vadd.f32 %v1159_v60, %v9663_v62 }
 0x1dc   : > { %4997 = vmatmul.msk.f32.gmra.mxu3 %vm575_vm2, %v9664_v41 }
 0x1dd   : > { %v1362_v38 = vadd.f32 %v1314_v49, %v1207_v45  ;;  %v1477_v29 = vpop.f32.mrf.mxu0  ;;  %v9671_v49 = vld [vmem:[#allocation48_spill] sm:$0xff]  ;;  %v9672_v45 = vld [vmem:[#allocation70_spill] sm:$0xff] }
 0x1df   : > { %v6586_v52 = vadd.f32 %v1474_v37, %v1362_v38  ;;  %4963 = vmatmul.msk.f32.gmra.mxu2 %vm575_vm2, %v9666_v50  ;;  %v1317_v22 = vpop.f32.mrf.mxu3  ;;  %v9673_v50 = vld [vmem:[#allocation67_spill] sm:$0xff] }
 0x1e0   : > { %5031 = vmatmul.msk.f32.gmra.mxu0 %vm575_vm2, %v9667_v11 }
 0x1e1   : > { %9665 = vst [vmem:[#allocation4_spill] sm:$0xff] %v6586_v52  ;;  %v9674_v52 = vld [vmem:[#allocation53_spill] sm:$0xff] }
 0x1e2   : > { %v1162_v35 = vpop.f32.mrf.mxu2 }
 0x1e3   : > { %v1208_v14 = vadd.f32 %v1162_v35, %v9668_v12 }
 0x1e4   : > { %4998 = vmatmul.msk.f32.gmra.mxu3 %vm575_vm2, %v9669_v39 }
 0x1e5   : > { %v1363_v60 = vadd.f32 %v1317_v22, %v1208_v14  ;;  %v1480_v62 = vpop.f32.mrf.mxu0  ;;  %v9676_v22 = vld [vmem:[#allocation47_spill] sm:$0xff]  ;;  %v9677_v14 = vld [vmem:[#allocation72_spill] sm:$0xff] }
 0x1e7   : > { %v6595_v41 = vadd.f32 %v1477_v29, %v1363_v60  ;;  %4964 = vmatmul.msk.f32.gmra.mxu2 %vm575_vm2, %v9671_v49  ;;  %v1320_v37 = vpop.f32.mrf.mxu3  ;;  %v9678_v49 = vld [vmem:[#allocation69_spill] sm:$0xff] }
 0x1e8   : > { %5032 = vmatmul.msk.f32.gmra.mxu0 %vm575_vm2, %v9672_v45 }
 0x1e9   : > { %9670 = vst [vmem:[#allocation54_spill] sm:$0xff] %v6595_v41  ;;  %v9679_v41 = vld [vmem:[#allocation5_spill] sm:$0xff] }
 0x1ea   : > { %v1165_v38 = vpop.f32.mrf.mxu2 }
 0x1eb   : > { %v1209_v11 = vadd.f32 %v1165_v38, %v9673_v50 }
 0x1ec   : > { %4999 = vmatmul.msk.f32.gmra.mxu3 %vm575_vm2, %v9674_v52 }
 0x1ed   : > { %v1364_v35 = vadd.f32 %v1320_v37, %v1209_v11  ;;  %v1483_v12 = vpop.f32.mrf.mxu0  ;;  %v9681_v37 = vld [vmem:[#allocation3_spill] sm:$0xff]  ;;  %v9682_v11 = vld [vmem:[#allocation74_spill] sm:$0xff] }
 0x1ef   : > { %v6604_v39 = vadd.f32 %v1480_v62, %v1364_v35  ;;  %4965 = vmatmul.msk.f32.gmra.mxu2 %vm575_vm2, %v9676_v22  ;;  %v1323_v29 = vpop.f32.mrf.mxu3  ;;  %v9683_v22 = vld [vmem:[#allocation71_spill] sm:$0xff] }
 0x1f0   : > { %5033 = vmatmul.msk.f32.gmra.mxu0 %vm575_vm2, %v9677_v14 }
 0x1f1   : > { %9675 = vst [vmem:[#allocation55_spill] sm:$0xff] %v6604_v39  ;;  %v9684_v39 = vld [vmem:[#allocation6_spill] sm:$0xff] }
 0x1f2   : > { %v1168_v60 = vpop.f32.mrf.mxu2 }
 0x1f3   : > { %v1210_v45 = vadd.f32 %v1168_v60, %v9678_v49 }
 0x1f4   : > { %5000 = vmatmul.msk.f32.gmra.mxu3 %vm575_vm2, %v9679_v41 }
 0x1f5   : > { %v1365_v38 = vadd.f32 %v1323_v29, %v1210_v45  ;;  %v1486_v50 = vpop.f32.mrf.mxu0  ;;  %v9686_v29 = vld [vmem:[#allocation2_spill] sm:$0xff] }
 0x1f7   : > { %v6613_v52 = vadd.f32 %v1483_v12, %v1365_v38  ;;  %4966 = vmatmul.msk.f32.gmra.mxu2 %vm575_vm2, %v9681_v37  ;;  %v1326_v62 = vpop.f32.mrf.mxu3  ;;  %v9687_v38 = vld [vmem:[#allocation73_spill] sm:$0xff] }
 0x1f8   : > { %5034 = vmatmul.msk.f32.gmra.mxu0 %vm575_vm2, %v9682_v11 }
 0x1f9   : > { %9680 = vst [vmem:[#allocation15_spill] sm:$0xff] %v6613_v52 }
 0x1fa   : > { %v1171_v35 = vpop.f32.mrf.mxu2 }
 0x1fb   : > { %v1211_v14 = vadd.f32 %v1171_v35, %v9683_v22 }
 0x1fc   : > { %5001 = vmatmul.msk.f32.gmra.mxu3 %vm575_vm2, %v9684_v39 }
 0x1fd   : > { %v1366_v60 = vadd.f32 %v1326_v62, %v1211_v14  ;;  %v1489_v49 = vpop.f32.mrf.mxu0  ;;  %v9689_v62 = vld [vmem:[#allocation8_spill] sm:$0xff]  ;;  %v9690_v14 = vld [vmem:[#allocation75_spill] sm:$0xff] }
 0x1ff   : > { %v6622_v41 = vadd.f32 %v1486_v50, %v1366_v60  ;;  %4967 = vmatmul.msk.f32.gmra.mxu2 %vm575_vm2, %v9686_v29  ;;  %v1329_v12 = vpop.f32.mrf.mxu3 }
 0x200   : > { %5035 = vmatmul.msk.f32.gmra.mxu0 %vm575_vm2, %v6211_v17 }
 0x201   : > { %9685 = vst [vmem:[#allocation12_spill] sm:$0xff] %v6622_v41 }
 0x202   : > { %v1174_v45 = vpop.f32.mrf.mxu2 }
 0x203   : > { %v1212_v37 = vadd.f32 %v1174_v45, %v9687_v38  ;;  %v9693_v38 = vld [vmem:[#allocation76_spill] sm:$0xff] }
 0x204   : > { %5002 = vmatmul.msk.f32.gmra.mxu3 %vm575_vm2, %v5570_v53 }
 0x205   : > { %v1367_v11 = vadd.f32 %v1329_v12, %v1212_v37  ;;  %v1492_v35 = vpop.f32.mrf.mxu0  ;;  %v9692_v12 = vld [vmem:[#allocation7_spill] sm:$0xff] }
 0x207   : > { %v6631_v39 = vadd.f32 %v1489_v49, %v1367_v11  ;;  %4968 = vmatmul.msk.f32.gmra.mxu2 %vm575_vm2, %v9689_v62  ;;  %v1332_v50 = vpop.f32.mrf.mxu3 }
 0x208   : > { %5036 = vmatmul.msk.f32.gmra.mxu0 %vm575_vm2, %v6228_v16 }
 0x209   : > { %9688 = vst [vmem:[#allocation56_spill] sm:$0xff] %v6631_v39 }
 0x20a   : > { %v1177_v22 = vpop.f32.mrf.mxu2 }
 0x20b   : > { %v1213_v17 = vadd.f32 %v1177_v22, %v9690_v14 }
 0x20c   : > { %5003 = vmatmul.msk.f32.gmra.mxu3 %vm575_vm2, %v5594_v0 }
 0x20d   : > { %v1368_v60 = vadd.f32 %v1332_v50, %v1213_v17  ;;  %v1495_v29 = vpop.f32.mrf.mxu0  ;;  %v9695_v17 = vld [vmem:[#allocation77_spill] sm:$0xff] }
 0x20f   : > { %v6640_v53 = vadd.f32 %v1492_v35, %v1368_v60  ;;  %4969 = vmatmul.msk.f32.gmra.mxu2 %vm575_vm2, %v9692_v12  ;;  %v1335_v49 = vpop.f32.mrf.mxu3  ;;  %v6671_v12 = vpop.f32.mrf.mxu1 }
 0x210   : > { %5037 = vmatmul.msk.f32.gmra.mxu0 %vm575_vm2, %v6242_v43 }
 0x211   : > { %9691 = vst [vmem:[#allocation19_spill] sm:$0xff] %v6640_v53 }
 0x212   : > { %v1180_v45 = vpop.f32.mrf.mxu2 }
 0x213   : > { %v1214_v16 = vadd.f32 %v1180_v45, %v9693_v38 }
 0x214   : > { %5004 = vmatmul.msk.f32.gmra.mxu3 %vm575_vm2, %v5616_v7 }
 0x215   : > { %v1369_v37 = vadd.f32 %v1335_v49, %v1214_v16  ;;  %v2011_v11 = vpop.f32.mrf.mxu0  ;;  %v9697_v16 = vld [vmem:[#allocation10_spill] sm:$0xff] }
 0x217   : > { %v6649_v0 = vadd.f32 %v1495_v29, %v1369_v37  ;;  %4970 = vmatmul.msk.f32.gmra.mxu2 %vm575_vm2, %v5602_v2  ;;  %v1861_v35 = vpop.f32.mrf.mxu3  ;;  %v6684_v37 = vpop.f32.mrf.mxu1 }
 0x218   : > { %5038 = vmatmul.msk.f32.gmra.mxu0 %vm575_vm2, %v6259_v24 }
 0x219   : > { %9694 = vst [vmem:[#allocation11_spill] sm:$0xff] %v6649_v0 }
 0x21a   : > { %v1711_v62 = vpop.f32.mrf.mxu2 }
 0x21b   : > { %v1807_v43 = vadd.f32 %v1711_v62, %v6254_v36 }
 0x21c   : > { %5005 = vmatmul.msk.f32.gmra.mxu3 %vm575_vm2, %v9597_v34 }
 0x21d   : > { %v1957_v50 = vadd.f32 %v1861_v35, %v1807_v43  ;;  %v2014_v22 = vpop.f32.mrf.mxu0 }
 0x21f   : > { %v6658_v7 = vadd.f32 %v2011_v11, %v1957_v50  ;;  %4971 = vmatmul.msk.f32.gmra.mxu2 %vm575_vm2, %v5599_v1  ;;  %v1864_v14 = vpop.f32.mrf.mxu3  ;;  %v9698_v11 = vld [vmem:[#allocation9_spill] sm:$0xff]  ;;  %v9699_v50 = vld [vmem:[#allocation18_spill] sm:$0xff] }
 0x220   : > { %5039 = vmatmul.msk.f32.gmra.mxu0 %vm575_vm2, %v6275_v4  ;;  %v9696_v4 = vld [vmem:[#allocation78_spill] sm:$0xff] }
 0x222   : > { %v1714_v2 = vpop.f32.mrf.mxu2 }
 0x223   : > { %v1808_v24 = vadd.f32 %v1714_v2, %v9695_v17  ;;  %v6696_v17 = vpop.f32.mrf.mxu1 }
 0x224   : > { %5006 = vmatmul.msk.f32.gmra.mxu3 %vm575_vm2, %v9600_v54 }
 0x225   : > { %v1958_v36 = vadd.f32 %v1864_v14, %v1808_v24  ;;  %v2017_v60 = vpop.f32.mrf.mxu0  ;;  %v9700_v14 = vld [vmem:[#allocation14_spill] sm:$0xff] }
 0x227   : > { %v6667_v34 = vadd.f32 %v2014_v22, %v1958_v36  ;;  %4972 = vmatmul.msk.f32.gmra.mxu2 %vm575_vm2, %v5643_v28  ;;  %v1867_v29 = vpop.f32.mrf.mxu3 }
 0x228   : > { %5040 = vmatmul.msk.f32.gmra.mxu0 %vm575_vm2, %v6292_v42 }
 0x22a   : > { %v1717_v1 = vpop.f32.mrf.mxu2 }
 0x22b   : > { %v1809_v49 = vadd.f32 %v1717_v1, %v9696_v4  ;;  %v9702_v1 = vld [vmem:[#allocation13_spill] sm:$0xff] }
 0x22c   : > { %5007 = vmatmul.msk.f32.gmra.mxu3 %vm575_vm2, %v9604_v25 }
 0x22d   : > { %v1959_v54 = vadd.f32 %v1867_v29, %v1809_v49  ;;  %v2020_v45 = vpop.f32.mrf.mxu0 }
 0x22f   : > { %v6678_v38 = vadd.f32 %v2017_v60, %v1959_v54  ;;  %4973 = vmatmul.msk.f32.gmra.mxu2 %vm575_vm2, %v9697_v16  ;;  %v1870_v28 = vpop.f32.mrf.mxu3  ;;  %v9701_v60 = vld [vmem:[#allocation17_spill] sm:$0xff]  ;;  %v6709_v54 = vpop.f32.mrf.mxu1 }
 0x230   : > { %5041 = vmatmul.msk.f32.gmra.mxu0 %vm575_vm2, %v6308_v59 }
 0x232   : > { %v1720_v42 = vpop.f32.mrf.mxu2 }
 0x233   : > { %v1810_v35 = vadd.f32 %v1720_v42, %v9698_v11 }
 0x234   : > { %5008 = vmatmul.msk.f32.gmra.mxu3 %vm575_vm2, %v9607_v40 }
 0x235   : > { %v1960_v25 = vadd.f32 %v1870_v28, %v1810_v35  ;;  %v2023_v62 = vpop.f32.mrf.mxu0  ;;  %v9703_v28 = vld [vmem:[#allocation16_spill] sm:$0xff] }
 0x237   : > { %v6689_v43 = vadd.f32 %v2020_v45, %v1960_v25  ;;  %4974 = vmatmul.msk.f32.gmra.mxu2 %vm575_vm2, %v9699_v50  ;;  %v1873_v22 = vpop.f32.mrf.mxu3 }
 0x238   : > { %5042 = vmatmul.msk.f32.gmra.mxu0 %vm575_vm2, %v6325_v56 }
 0x23a   : > { %v1723_v59 = vpop.f32.mrf.mxu2 }
 0x23b   : > { %v1811_v2 = vadd.f32 %v1723_v59, %v9700_v14 }
 0x23c   : > { %5009 = vmatmul.msk.f32.gmra.mxu3 %vm575_vm2, %v9611_v21 }
 0x23d   : > { %v1961_v40 = vadd.f32 %v1873_v22, %v1811_v2  ;;  %v2026_v24 = vpop.f32.mrf.mxu0  ;;  %v9705_v22 = vld [vmem:[#allocation40_spill] sm:$0xff] }
 0x23e   : > { %v9706_v2 = vld [vmem:[#allocation36_spill] sm:$0xff] }
 0x23f   : > { %v6700_v36 = vadd.f32 %v2023_v62, %v1961_v40  ;;  %4975 = vmatmul.msk.f32.gmra.mxu2 %vm575_vm2, %v9701_v60  ;;  %v1876_v29 = vpop.f32.mrf.mxu3  ;;  %v6724_v62 = vpop.f32.mrf.mxu1  ;;  %v9707_v40 = vld [vmem:[#allocation27_spill] sm:$0xff] }
 0x240   : > { %5043 = vmatmul.msk.f32.gmra.mxu0 %vm575_vm2, %v6341_v23  ;;  %v9708_v60 = vld [vmem:[#allocation43_spill] sm:$0xff] }
 0x242   : > { %v1726_v56 = vpop.f32.mrf.mxu2 }
 0x243   : > { %v1812_v4 = vadd.f32 %v1726_v56, %v9702_v1  ;;  %v9709_v56 = vld [vmem:[#allocation35_spill] sm:$0xff] }
 0x244   : > { %5010 = vmatmul.msk.f32.gmra.mxu3 %vm575_vm2, %v9614_v18 }
 0x245   : > { %v1962_v49 = vadd.f32 %v1876_v29, %v1812_v4  ;;  %v2029_v21 = vpop.f32.mrf.mxu0 }
 0x247   : > { %v6711_v45 = vadd.f32 %v2026_v24, %v1962_v49  ;;  %4976 = vmatmul.msk.f32.gmra.mxu2 %vm575_vm2, %v9608_v19  ;;  %v1879_v16 = vpop.f32.mrf.mxu3 }
 0x248   : > { %5044 = vmatmul.msk.f32.gmra.mxu0 %vm575_vm2, %v6358_v48  ;;  %v9704_v48 = vld [vmem:[#allocation23_spill] sm:$0xff] }
 0x24a   : > { %v1729_v23 = vpop.f32.mrf.mxu2 }
 0x24b   : > { %v1813_v42 = vadd.f32 %v1729_v23, %v9703_v28 }
 0x24c   : > { %5011 = vmatmul.msk.f32.gmra.mxu3 %vm575_vm2, %v9618_v47 }
 0x24d   : > { %v1963_v18 = vadd.f32 %v1879_v16, %v1813_v42  ;;  %v2032_v11 = vpop.f32.mrf.mxu0  ;;  %v9710_v16 = vld [vmem:[#allocation45_spill] sm:$0xff] }
 0x24f   : > { %v6720_v35 = vadd.f32 %v2029_v21, %v1963_v18  ;;  %4977 = vmatmul.msk.f32.gmra.mxu2 %vm575_vm2, %v9609_v8  ;;  %v1882_v25 = vpop.f32.mrf.mxu3  ;;  %v9711_v18 = vld [vmem:[#allocation44_spill] sm:$0xff] }
 0x250   : > { %5045 = vmatmul.msk.f32.gmra.mxu0 %vm575_vm2, %v6374_v6  ;;  %v6741_v6 = vpop.f32.mrf.mxu1 }
 0x252   : > { %v1732_v19 = vpop.f32.mrf.mxu2 }
 0x253   : > { %v1814_v50 = vadd.f32 %v1732_v19, %v9704_v48 }
 0x254   : > { %5012 = vmatmul.msk.f32.gmra.mxu3 %vm575_vm2, %v9705_v22  ;;  %v9712_v22 = vld [vmem:[#allocation34_spill] sm:$0xff] }
 0x255   : > { %v1964_v47 = vadd.f32 %v1882_v25, %v1814_v50  ;;  %v6731_v59 = vpop.f32.mrf.mxu0 }
 0x257   : > { %v6733_v14 = vadd.f32 %v2032_v11, %v1964_v47  ;;  %4978 = vmatmul.msk.f32.gmra.mxu2 %vm575_vm2, %v9706_v2  ;;  %v6737_v8 = vpop.f32.mrf.mxu3 }
 0x258   : > { %5046 = vmatmul.msk.f32.gmra.mxu0 %vm575_vm2, %v9707_v40  ;;  %v6757_v49 = vpop.f32.mrf.mxu1 }
 0x25a   : > { %v6743_v24 = vpop.f32.mrf.mxu2 }
 0x25c   : > { %5013 = vmatmul.msk.f32.gmra.mxu3 %vm575_vm2, %v9708_v60 }
 0x25d   : > { %v6747_v29 = vpop.f32.mrf.mxu0 }
 0x25f   : > { %4979 = vmatmul.msk.f32.gmra.mxu2 %vm575_vm2, %v9709_v56  ;;  %v6751_v1 = vpop.f32.mrf.mxu3 }
 0x260   : > { %5047 = vmatmul.msk.f32.gmra.mxu0 %vm575_vm2, %v6407_v26  ;;  %v6773_v26 = vpop.f32.mrf.mxu1 }
 0x262   : > { %v6755_v4 = vpop.f32.mrf.mxu2 }
 0x264   : > { %5014 = vmatmul.msk.f32.gmra.mxu3 %vm575_vm2, %v9629_v58 }
 0x265   : > { %v6761_v21 = vpop.f32.mrf.mxu0 }
 0x267   : > { %4980 = vmatmul.msk.f32.gmra.mxu2 %vm575_vm2, %v9710_v16  ;;  %v6765_v23 = vpop.f32.mrf.mxu3 }
 0x268   : > { %5048 = vmatmul.msk.f32.gmra.mxu0 %vm575_vm2, %v6424_v46  ;;  %v6793_v50 = vpop.f32.mrf.mxu1 }
 0x26a   : > { %v6769_v28 = vpop.f32.mrf.mxu2 }
 0x26c   : > { %5015 = vmatmul.msk.f32.gmra.mxu3 %vm575_vm2, %v9631_v9 }
 0x26d   : > { %v6775_v42 = vpop.f32.mrf.mxu0 }
 0x26f   : > { %4981 = vmatmul.msk.f32.gmra.mxu2 %vm575_vm2, %v9711_v18  ;;  %v6779_v11 = vpop.f32.mrf.mxu3 }
 0x270   : > { %5049 = vmatmul.msk.f32.gmra.mxu0 %vm575_vm2, %v6442_v51  ;;  %v6813_v40 = vpop.f32.mrf.mxu1 }
 0x272   : > { %v6783_v25 = vpop.f32.mrf.mxu2 }
 0x274   : > { %5016 = vmatmul.msk.f32.gmra.mxu3 %vm575_vm2, %v6472_v15  ;;  %v5054_v15 = vld [vmem:[%s9322_s3 + $0x4] sm:$0xf] }
 0x275   : > { %v6787_v19 = vpop.f32.mrf.mxu0  ;;  %5055 = vmatpush.msk.msra.mxu1 %vm636_vm0, %v5054_v15 }
 0x277   : > { %4982 = vmatmul.msk.f32.gmra.mxu2 %vm575_vm2, %v6447_v3  ;;  %v6791_v48 = vpop.f32.mrf.mxu3 }
 0x278   : > { %5050 = vmatmul.msk.f32.gmra.mxu0 %vm575_vm2, %v9712_v22 }
 0x27a   : > { %v6797_v47 = vpop.f32.mrf.mxu2 }
 0x27c   : > { %5017 = vmatmul.msk.f32.gmra.mxu3 %vm575_vm2, %v6491_v13 }
 0x27d   : > { %v6805_v2 = vpop.f32.mrf.mxu0 }
 0x27f   : > { %4983 = vmatmul.msk.f32.gmra.mxu2 %vm575_vm2, %v6452_v32  ;;  %v6809_v3 = vpop.f32.mrf.mxu3 }
 0x280   : > { %5051 = vmatmul.msk.f32.gmra.mxu0 %vm575_vm2, %v6486_v55  ;;  %v6829_v55 = vpop.f32.mrf.mxu1 }
 0x282   : > { %v6815_v60 = vpop.f32.mrf.mxu2 }
 0x284   : > { %5018 = vmatmul.msk.f32.gmra.mxu3 %vm575_vm2, %v9629_v58 }
 0x285   : > { %v6819_v13 = vpop.f32.mrf.mxu0 }
 0x287   : > { %4984 = vmatmul.msk.f32.gmra.mxu2 %vm575_vm2, %v9710_v16  ;;  %v6823_v56 = vpop.f32.mrf.mxu3 }
 0x288   : > { %5052 = vmatmul.msk.f32.gmra.mxu0 %vm575_vm2, %v6424_v46  ;;  %v6843_v46 = vpop.f32.mrf.mxu1 }
 0x28a   : > { %v6827_v32 = vpop.f32.mrf.mxu2 }
 0x28c   : > { %5019 = vmatmul.msk.f32.gmra.mxu3 %vm575_vm2, %v9631_v9 }
 0x28d   : > { %v6833_v22 = vpop.f32.mrf.mxu0 }
 0x28e   : > { %9713 = vst [vmem:[#allocation59_spill] sm:$0xff] %v6833_v22 }
 0x28f   : > { %4985 = vmatmul.msk.f32.gmra.mxu2 %vm575_vm2, %v9711_v18  ;;  %v6837_v58 = vpop.f32.mrf.mxu3 }
 0x290   : > { %5053 = vmatmul.msk.f32.gmra.mxu0 %vm575_vm2, %v6442_v51  ;;  %v6855_v18 = vpop.f32.mrf.mxu1 }
 0x291   : > { %9717 = vst [vmem:[#allocation58_spill] sm:$0xff] %v6855_v18 }
 0x292   : > { %v6841_v16 = vpop.f32.mrf.mxu2 }
 0x295   : > { %v6845_v15 = vpop.f32.mrf.mxu0 }
 0x296   : > { %9714 = vst [vmem:[#allocation57_spill] sm:$0xff] %v6845_v15 }
 0x297   : > { %v6847_v0 = vpop.f32.mrf.mxu3 }
 0x298   : > { %v6863_v5 = vpop.f32.mrf.mxu1 }
 0x299   : > { %9720 = vst [vmem:[#allocation62_spill] sm:$0xff] %v6863_v5  ;;  %v9732_v5 = vld [vmem:[#allocation22_spill] sm:$0xff] }
 0x29a   : > { %v6849_v53 = vpop.f32.mrf.mxu2 }
 0x29d   : > { %v6851_v9 = vpop.f32.mrf.mxu0 }
 0x29e   : > { %9715 = vst [vmem:[#allocation24_spill] sm:$0xff] %v6851_v9 }
 0x29f   : > { %v6853_v39 = vpop.f32.mrf.mxu3 }
 0x2a0   : > { %9716 = vst [vmem:[#allocation21_spill] sm:$0xff] %v6853_v39  ;;  %v6873_v9 = vpop.f32.mrf.mxu1 }
 0x2a1   : > { %9725 = vst [vmem:[#allocation37_spill] sm:$0xff] %v6873_v9  ;;  %v1665_v9 = vadd.f32 %v6671_v12, %v9732_v5  ;;  %v9737_v5 = vld [vmem:[#allocation25_spill] sm:$0xff] }
 0x2a2   : > { %v6857_v41 = vpop.f32.mrf.mxu2  ;;  %v1667_v12 = vadd.f32 %v6696_v17, %v9737_v5 }
 0x2a5   : > { %v6859_v52 = vpop.f32.mrf.mxu0 }
 0x2a6   : > { %9718 = vst [vmem:[#allocation28_spill] sm:$0xff] %v6859_v52 }
 0x2a7   : > { %v6861_v51 = vpop.f32.mrf.mxu3 }
 0x2a8   : > { %9719 = vst [vmem:[#allocation20_spill] sm:$0xff] %v6861_v51  ;;  %v6881_v52 = vpop.f32.mrf.mxu1  ;;  %v6886_v51 = vld [vmem:[%s9321_s2] ss:$0 sm:$0xff] }
 0x2a9   : > { %9729 = vst [vmem:[#allocation42_spill] sm:$0xff] %v6881_v52 }
 0x2aa   : > { %v6865_v31 = vpop.f32.mrf.mxu2 }
 0x2ab   : > { %9721 = vst [vmem:[#allocation60_spill] sm:$0xff] %v6865_v31  ;;  %v9738_v31 = vld [vmem:[#allocation32_spill] sm:$0xff] }
 0x2ad   : > { %v6867_v15 = vpop.f32.mrf.mxu0 }
 0x2ae   : > { %9722 = vst [vmem:[#allocation33_spill] sm:$0xff] %v6867_v15 }
 0x2af   : > { %v6869_v61 = vpop.f32.mrf.mxu3 }
 0x2b0   : > { %9723 = vst [vmem:[#allocation30_spill] sm:$0xff] %v6869_v61 }
 0x2b2   : > { %v6871_v22 = vpop.f32.mrf.mxu2 }
 0x2b3   : > { %9724 = vst [vmem:[#allocation61_spill] sm:$0xff] %v6871_v22 }
 0x2b5   : > { %v6875_v39 = vpop.f32.mrf.mxu0 }
 0x2b6   : > { %9726 = vst [vmem:[#allocation29_spill] sm:$0xff] %v6875_v39  ;;  %v6896_v39 = vadd.f32 %v6886_v51, %v6667_v34 }
 0x2b7   : > { %v6877_v18 = vpop.f32.mrf.mxu3 }
 0x2b8   : > { %9727 = vst [vmem:[#allocation65_spill] sm:$0xff] %v6877_v18  ;;  %v6900_v18 = vadd.f32 %v6886_v51, %v6658_v7  ;;  %v2176_v34 = vsel %vm575_vm2, %v6896_v39, 0.0  ;;  %v6917_v7 = vadd.f32 %v6886_v51, %v6689_v43 }
 0x2b9   : > { %9733 = vst [vmem:[#allocation46_spill] sm:$0xff] %v6896_v39 }
 0x2ba   : > { %v6879_v27 = vpop.f32.mrf.mxu2  ;;  %v2180_v39 = vsel %vm575_vm2, %v6917_v7, 0.0 }
 0x2bb   : > { %9728 = vst [vmem:[#allocation63_spill] sm:$0xff] %v6879_v27  ;;  %v9735_v27 = vld [vmem:[#allocation26_spill] sm:$0xff] }
 0x2bc   : > { %v1666_v22 = vadd.f32 %v6684_v37, %v9735_v27  ;;  %v1668_v27 = vadd.f32 %v6709_v54, %v9738_v31  ;;  %v6938_v54 = vpop.f32.mrf.mxu1 }
 0x2bd   : > { %v6888_v15 = vpop.f32.mrf.mxu0 }
 0x2be   : > { %9730 = vst [vmem:[#allocation39_spill] sm:$0xff] %v6888_v15  ;;  %v6908_v15 = vadd.f32 %v6886_v51, %v6678_v38  ;;  %v2175_v38 = vsel %vm575_vm2, %v6900_v18, 0.0 }
 0x2bf   : > { %v6890_v61 = vpop.f32.mrf.mxu3  ;;  %v2177_v5 = vadd.f32 %v2176_v34, %v2175_v38 }
 0x2c0   : > { %9731 = vst [vmem:[#allocation64_spill] sm:$0xff] %v6890_v61  ;;  %v1815_v61 = vadd.f32 %v6743_v24, %v1665_v9  ;;  %v2178_v17 = vsel %vm575_vm2, %v6908_v15, 0.0  ;;  %v6930_v24 = vadd.f32 %v6886_v51, %v6700_v36  ;;  %v1817_v9 = vadd.f32 %v6769_v28, %v1667_v12 }
 0x2c1   : > { %9736 = vst [vmem:[#allocation68_spill] sm:$0xff] %v6908_v15  ;;  %v6944_v15 = vadd.f32 %v6886_v51, %v6711_v45  ;;  %v2179_v28 = vadd.f32 %v2178_v17, %v2177_v5 }
 0x2c2   : > { %v6902_v52 = vpop.f32.mrf.mxu2  ;;  %v1965_v43 = vadd.f32 %v6737_v8, %v1815_v61  ;;  %v1818_v61 = vadd.f32 %v6783_v25, %v1668_v27  ;;  %v1670_v8 = vadd.f32 %v6741_v6, %v6477_v33  ;;  %v2182_v34 = vsel %vm575_vm2, %v6930_v24, 0.0 }
 0x2c3   : > { %9734 = vst [vmem:[#allocation38_spill] sm:$0xff] %v6902_v52  ;;  %v1816_v52 = vadd.f32 %v6755_v4, %v1666_v22  ;;  %v9739_v22 = vld [vmem:[#allocation31_spill] sm:$0xff]  ;;  %v1967_v38 = vadd.f32 %v6765_v23, %v1817_v9  ;;  %v2181_v33 = vadd.f32 %v2180_v39, %v2179_v28  ;;  %v6965_v6 = vadd.f32 %v6886_v51, %v6733_v14 }
 0x2c4   : > { %v1669_v31 = vadd.f32 %v6724_v62, %v9739_v22  ;;  %v6952_v62 = vadd.f32 %v6886_v51, %v6720_v35  ;;  %v2115_v45 = vadd.f32 %v6731_v59, %v1965_v43  ;;  %v2184_v35 = vsel %vm575_vm2, %v6944_v15, 0.0  ;;  %v6998_v22 = vpop.f32.mrf.mxu1 }
 0x2c5   : > { %v6924_v37 = vpop.f32.mrf.mxu0  ;;  %v1966_v36 = vadd.f32 %v6751_v1, %v1816_v52  ;;  %v1671_v1 = vadd.f32 %v6757_v49, %v6495_v63  ;;  %v1968_v27 = vadd.f32 %v6779_v11, %v1818_v61  ;;  %v1820_v59 = vadd.f32 %v6815_v60, %v1670_v8 }
 0x2c6   : > { %v1819_v52 = vadd.f32 %v6797_v47, %v1669_v31  ;;  %v1672_v23 = vadd.f32 %v6773_v26, %v6505_v20  ;;  %v2183_v47 = vadd.f32 %v2182_v34, %v2181_v33  ;;  %v2186_v63 = vsel %vm575_vm2, %v6952_v62, 0.0 }
 0x2c7   : > { %v6934_v4 = vpop.f32.mrf.mxu3  ;;  %v2116_v25 = vadd.f32 %v6747_v29, %v1966_v36  ;;  %v6979_v14 = vadd.f32 %v6886_v51, %v2115_v45  ;;  %v2117_v49 = vadd.f32 %v6761_v21, %v1967_v38  ;;  %v1821_v11 = vadd.f32 %v6827_v32, %v1671_v1  ;;  %v9740_v38 = vld [vmem:[#allocation60_spill] sm:$0xff]  ;;  %v9742_v1 = vld [vmem:[#allocation58_spill] sm:$0xff] }
 0x2c8   : > { %v1969_v29 = vadd.f32 %v6791_v48, %v1819_v52  ;;  %v1673_v20 = vadd.f32 %v6793_v50, %v6514_v30  ;;  %v2185_v26 = vadd.f32 %v2184_v35, %v2183_v47  ;;  %v2188_v60 = vsel %vm575_vm2, %v6965_v6, 0.0 }
 0x2c9   : > { %v6991_v43 = vadd.f32 %v6886_v51, %v2116_v25  ;;  %v2118_v9 = vadd.f32 %v6775_v42, %v1968_v27  ;;  %v1970_v21 = vadd.f32 %v6809_v3, %v1820_v59  ;;  %v1822_v48 = vadd.f32 %v6841_v16, %v1672_v23  ;;  %v9744_v27 = vld [vmem:[#allocation59_spill] sm:$0xff]  ;;  %v9745_v23 = vld [vmem:[#allocation61_spill] sm:$0xff] }
 0x2ca   : > { %v6954_v12 = vpop.f32.mrf.mxu2  ;;  %v1674_v32 = vadd.f32 %v6813_v40, %v6523_v44  ;;  %v2187_v31 = vadd.f32 %v2186_v63, %v2185_v26  ;;  %v1823_v30 = vadd.f32 %v6849_v53, %v1673_v20  ;;  %v2190_v5 = vsel %vm575_vm2, %v6979_v14, 0.0  ;;  %v9747_v63 = vld [vmem:[#allocation62_spill] sm:$0xff] }
 0x2cb   : > { %v7004_v36 = vadd.f32 %v6886_v51, %v2117_v49  ;;  %v2119_v42 = vadd.f32 %v6787_v19, %v1969_v29  ;;  %v1971_v3 = vadd.f32 %v6823_v56, %v1821_v11  ;;  %v1675_v16 = vadd.f32 %v6829_v55, %v6532_v10  ;;  %v9748_v11 = vld [vmem:[#allocation57_spill] sm:$0xff] }
 0x2cc   : > { %v2189_v44 = vadd.f32 %v2188_v60, %v2187_v31  ;;  %v1824_v40 = vadd.f32 %v6857_v41, %v1674_v32  ;;  %v2192_v53 = vsel %vm575_vm2, %v6991_v43, 0.0  ;;  %v7014_v61 = vadd.f32 %v6886_v51, %v2118_v9  ;;  %v9750_v32 = vld [vmem:[#allocation63_spill] sm:$0xff] }
 0x2cd   : > { %v6976_v39 = vpop.f32.mrf.mxu0  ;;  %v2120_v8 = vadd.f32 %v6805_v2, %v1970_v21  ;;  %v1972_v28 = vadd.f32 %v6837_v58, %v1822_v48  ;;  %v1676_v19 = vadd.f32 %v6843_v46, %v6541_v57  ;;  %v1973_v34 = vadd.f32 %v6847_v0, %v1823_v30  ;;  %v9741_v58 = vld [vmem:[#allocation41_spill] sm:$0xff]  ;;  %v9749_v21 = vld [vmem:[#allocation20_spill] sm:$0xff] }
 0x2ce   : > { %v2191_v56 = vadd.f32 %v2190_v5, %v2189_v44  ;;  %v2194_v41 = vsel %vm575_vm2, %v7004_v36, 0.0  ;;  %v7026_v55 = vadd.f32 %v6886_v51, %v2119_v42  ;;  %v2121_v45 = vadd.f32 %v6819_v13, %v1971_v3  ;;  %v9743_v46 = vld [vmem:[#allocation21_spill] sm:$0xff]  ;;  %v9746_v13 = vld [vmem:[#allocation50_spill] sm:$0xff]  ;;  %v1639_v3 = vpop.f32.mrf.mxu1  ;;  %v9753_v44 = vld [vmem:[#allocation24_spill] sm:$0xff] }
 0x2cf   : > { %v6984_v17 = vpop.f32.mrf.mxu3  ;;  %v1825_v2 = vadd.f32 %v9740_v38, %v1675_v16  ;;  %v1677_v33 = vadd.f32 %v9742_v1, %v9741_v58  ;;  %v1974_v35 = vadd.f32 %v9743_v46, %v1824_v40  ;;  %v2196_v0 = vsel %vm575_vm2, %v7014_v61, 0.0  ;;  %v9751_v30 = vld [vmem:[#allocation49_spill] sm:$0xff] }
 0x2d0   : > { %v2193_v57 = vadd.f32 %v2192_v53, %v2191_v56  ;;  %v7036_v25 = vadd.f32 %v6886_v51, %v2120_v8  ;;  %v2122_v59 = vadd.f32 %v9744_v27, %v1972_v28  ;;  %v1826_v47 = vadd.f32 %v9745_v23, %v1676_v19  ;;  %v9752_v5 = vld [vmem:[#allocation37_spill] sm:$0xff]  ;;  %v9754_v28 = vld [vmem:[#allocation30_spill] sm:$0xff]  ;;  %v9760_v23 = vld [vmem:[#allocation4_spill] sm:$0xff] }
 0x2d1   : > { %v1678_v49 = vadd.f32 %v9747_v63, %v9746_v13  ;;  %v2123_v20 = vadd.f32 %v9748_v11, %v1973_v34  ;;  %v2198_v60 = vsel %vm575_vm2, %v7026_v55, 0.0  ;;  %v7046_v9 = vadd.f32 %v6886_v51, %v2121_v45  ;;  %v9755_v56 = vld [vmem:[#allocation38_spill] sm:$0xff] }
 0x2d2   : > { %v1780_v50 = vpop.f32.mrf.mxu2  ;;  %v2195_v29 = vadd.f32 %v2194_v41, %v2193_v57  ;;  %v1975_v48 = vadd.f32 %v9749_v21, %v1825_v2  ;;  %v1827_v31 = vadd.f32 %v9750_v32, %v1677_v33  ;;  %v1679_v42 = vadd.f32 %v9752_v5, %v9751_v30  ;;  %v9756_v41 = vld [vmem:[#allocation52_spill] sm:$0xff]  ;;  %v9757_v45 = vld [vmem:[#allocation42_spill] sm:$0xff]  ;;  %v9764_v5 = vld [vmem:[#allocation29_spill] sm:$0xff] }
 0x2d3   : > { %v2124_v40 = vadd.f32 %v9753_v44, %v1974_v35  ;;  %v2200_v53 = vsel %vm575_vm2, %v7036_v25, 0.0  ;;  %v7056_v8 = vadd.f32 %v6886_v51, %v2122_v59  ;;  %v1976_v19 = vadd.f32 %v9754_v28, %v1826_v47  ;;  %v9758_v57 = vld [vmem:[#allocation28_spill] sm:$0xff]  ;;  %v9759_v35 = vld [vmem:[#allocation65_spill] sm:$0xff] }
 0x2d4   : > { %v2197_v16 = vadd.f32 %v2196_v0, %v2195_v29  ;;  %v1828_v34 = vadd.f32 %v9755_v56, %v1678_v49  ;;  %v1680_v38 = vadd.f32 %v9757_v45, %v9756_v41  ;;  %v7063_v58 = vadd.f32 %v6886_v51, %v2123_v20  ;;  %v9761_v29 = vld [vmem:[#allocation33_spill] sm:$0xff]  ;;  %v9762_v20 = vld [vmem:[#allocation64_spill] sm:$0xff] }
 0x2d5   : > { %v7021_v10 = vpop.f32.mrf.mxu0  ;;  %v2202_v33 = vsel %vm575_vm2, %v7046_v9, 0.0  ;;  %v2125_v46 = vadd.f32 %v9758_v57, %v1975_v48  ;;  %v1977_v0 = vadd.f32 %v9759_v35, %v1827_v31  ;;  %v1829_v27 = vadd.f32 %v6954_v12, %v1679_v42  ;;  %v9763_v48 = vld [vmem:[#allocation54_spill] sm:$0xff]  ;;  %v9766_v57 = vld [vmem:[#allocation55_spill] sm:$0xff] }
 0x2d6   : > { %v2199_v2 = vadd.f32 %v2198_v60, %v2197_v16  ;;  %v1681_v47 = vadd.f32 %v6938_v54, %v9760_v23  ;;  %v7073_v63 = vadd.f32 %v6886_v51, %v2124_v40  ;;  %v2204_v49 = vsel %vm575_vm2, %v7056_v8, 0.0 }
 0x2d7   : > { %v1933_v52 = vpop.f32.mrf.mxu3  ;;  %v2126_v11 = vadd.f32 %v9761_v29, %v1976_v19  ;;  %v1978_v60 = vadd.f32 %v9762_v20, %v1828_v34  ;;  %v1830_v21 = vadd.f32 %v1780_v50, %v1680_v38  ;;  %v1682_v32 = vadd.f32 %v6998_v22, %v9763_v48  ;;  %v9765_v22 = vld [vmem:[#allocation39_spill] sm:$0xff]  ;;  %v1642_v34 = vpop.f32.mrf.mxu1 }
 0x2d8   : > { %v2201_v13 = vadd.f32 %v2200_v53, %v2199_v2  ;;  %v2206_v31 = vsel %vm575_vm2, %v7063_v58, 0.0  ;;  %v7084_v30 = vadd.f32 %v6886_v51, %v2125_v46  ;;  %v2127_v42 = vadd.f32 %v9764_v5, %v1977_v0  ;;  %v9767_v5 = vld [vmem:[#allocation15_spill] sm:$0xff] }
 0x2d9   : > { %v1979_v16 = vadd.f32 %v6934_v4, %v1829_v27  ;;  %v2208_v50 = vsel %vm575_vm2, %v7073_v63, 0.0  ;;  %v7091_v53 = vadd.f32 %v6886_v51, %v2126_v11  ;;  %v2128_v28 = vadd.f32 %v9765_v22, %v1978_v60 }
 0x2da   : > { %v1783_v26 = vpop.f32.mrf.mxu2  ;;  %v2203_v12 = vadd.f32 %v2202_v33, %v2201_v13  ;;  %v1980_v19 = vadd.f32 %v6984_v17, %v1830_v21  ;;  %v2210_v38 = vsel %vm575_vm2, %v7084_v30, 0.0  ;;  %v7098_v4 = vadd.f32 %v6886_v51, %v2127_v42 }
 0x2db   : > { %v1831_v44 = vadd.f32 %v1783_v26, %v1681_v47  ;;  %v2129_v26 = vadd.f32 %v6924_v37, %v1979_v16  ;;  %v1683_v46 = vadd.f32 %v1639_v3, %v9766_v57  ;;  %v2212_v17 = vsel %vm575_vm2, %v7091_v53, 0.0  ;;  %v9768_v57 = vld [vmem:[#allocation12_spill] sm:$0xff] }
 0x2dc   : > { %v2205_v40 = vadd.f32 %v2204_v49, %v2203_v12  ;;  %v7105_v0 = vadd.f32 %v6886_v51, %v2128_v28  ;;  %v2130_v27 = vadd.f32 %v6976_v39, %v1980_v19  ;;  %v2214_v49 = vsel %vm575_vm2, %v7098_v4, 0.0 }
 0x2dd   : > { %v2086_v1 = vpop.f32.mrf.mxu0  ;;  %v1981_v2 = vadd.f32 %v1933_v52, %v1831_v44  ;;  %v7111_v37 = vadd.f32 %v6886_v51, %v2129_v26  ;;  %v1684_v42 = vadd.f32 %v1642_v34, %v9767_v5 }
 0x2de   : > { %v2207_v41 = vadd.f32 %v2206_v31, %v2205_v40  ;;  %v2216_v11 = vsel %vm575_vm2, %v7105_v0, 0.0  ;;  %v7117_v20 = vadd.f32 %v6886_v51, %v2130_v27 }
 0x2df   : > { %v1936_v59 = vpop.f32.mrf.mxu3  ;;  %v2131_v52 = vadd.f32 %v7021_v10, %v1981_v2  ;;  %v2218_v48 = vsel %vm575_vm2, %v7111_v37, 0.0  ;;  %v1645_v31 = vpop.f32.mrf.mxu1 }
 0x2e0   : > { %v2209_v35 = vadd.f32 %v2208_v50, %v2207_v41  ;;  %v2220_v16 = vsel %vm575_vm2, %v7117_v20, 0.0 }
 0x2e2   : > { %v1786_v54 = vpop.f32.mrf.mxu2  ;;  %v2211_v47 = vadd.f32 %v2210_v38, %v2209_v35 }
 0x2e3   : > { %v1832_v56 = vadd.f32 %v1786_v54, %v1682_v32  ;;  %v7122_v32 = vadd.f32 %v6886_v51, %v2131_v52 }
 0x2e4   : > { %v2213_v29 = vadd.f32 %v2212_v17, %v2211_v47 }
 0x2e5   : > { %v2089_v45 = vpop.f32.mrf.mxu0  ;;  %v1982_v23 = vadd.f32 %v1936_v59, %v1832_v56  ;;  %v2222_v50 = vsel %vm575_vm2, %v7122_v32, 0.0 }
 0x2e6   : > { %v2215_v60 = vadd.f32 %v2214_v49, %v2213_v29 }
 0x2e7   : > { %v1939_v33 = vpop.f32.mrf.mxu3  ;;  %v2132_v39 = vadd.f32 %v2086_v1, %v1982_v23  ;;  %v1648_v17 = vpop.f32.mrf.mxu1 }
 0x2e8   : > { %v2217_v54 = vadd.f32 %v2216_v11, %v2215_v60 }
 0x2e9   : > { %v7128_v1 = vadd.f32 %v6886_v51, %v2132_v39  ;;  %v9769_v39 = vld [vmem:[#allocation56_spill] sm:$0xff] }
 0x2ea   : > { %v1789_v13 = vpop.f32.mrf.mxu2  ;;  %v2219_v44 = vadd.f32 %v2218_v48, %v2217_v54 }
 0x2eb   : > { %v1833_v3 = vadd.f32 %v1789_v13, %v1683_v46  ;;  %v2224_v56 = vsel %vm575_vm2, %v7128_v1, 0.0  ;;  %v1685_v46 = vadd.f32 %v1645_v31, %v9768_v57 }
 0x2ec   : > { %v2221_v19 = vadd.f32 %v2220_v16, %v2219_v44  ;;  %v9770_v16 = vld [vmem:[#allocation19_spill] sm:$0xff] }
 0x2ed   : > { %v1983_v59 = vadd.f32 %v1939_v33, %v1833_v3  ;;  %v2092_v21 = vpop.f32.mrf.mxu0 }
 0x2ee   : > { %v2223_v41 = vadd.f32 %v2222_v50, %v2221_v19 }
 0x2ef   : > { %v2133_v12 = vadd.f32 %v2089_v45, %v1983_v59  ;;  %v1942_v10 = vpop.f32.mrf.mxu3  ;;  %v1686_v59 = vadd.f32 %v1648_v17, %v9769_v39  ;;  %v5422_v17 = vmov 256.0  }
 0x2f0   : > { %v2225_v33 = vadd.f32 %v2224_v56, %v2223_v41  ;;  %5376 = vrcp.f32 %v5422_v17 }
 0x2f1   : > { %v7133_v22 = vadd.f32 %v6886_v51, %v2133_v12 }
 0x2f2   : > { %v1792_v40 = vpop.f32.mrf.mxu2 }
 0x2f3   : > { %v1834_v28 = vadd.f32 %v1792_v40, %v1684_v42  ;;  %v2226_v38 = vsel %vm575_vm2, %v7133_v22, 0.0 }
 0x2f4   : > { %v2227_v27 = vadd.f32 %v2226_v38, %v2225_v33 }
 0x2f5   : > { %v1984_v34 = vadd.f32 %v1942_v10, %v1834_v28  ;;  %v2095_v45 = vpop.f32.mrf.mxu0  ;;  %v1651_v10 = vpop.f32.mrf.mxu1 }
 0x2f6   : > { %v1687_v44 = vadd.f32 %v1651_v10, %v9770_v16 }
 0x2f7   : > { %v2134_v26 = vadd.f32 %v2092_v21, %v1984_v34  ;;  %v1945_v2 = vpop.f32.mrf.mxu3 }
 0x2f9   : > { %v2170_v35 = vadd.f32 %v6886_v51, %v2134_v26  ;;  %v9771_v26 = vld [vmem:[#allocation11_spill] sm:$0xff] }
 0x2fa   : > { %v1795_v23 = vpop.f32.mrf.mxu2 }
 0x2fb   : > { %v2228_v47 = vsel %vm575_vm2, %v2170_v35, 0.0  ;;  %v1835_v13 = vadd.f32 %v1795_v23, %v1685_v46 }
 0x2fc   : > { %v2229_v49 = vadd.f32 %v2228_v47, %v2227_v27 }
 0x2fd   : > { %v1985_v52 = vadd.f32 %v1945_v2, %v1835_v13  ;;  %v2098_v11 = vpop.f32.mrf.mxu0 }
 0x2ff   : > { %v2135_v3 = vadd.f32 %v2095_v45, %v1985_v52  ;;  %v1948_v29 = vpop.f32.mrf.mxu3  ;;  %v1654_v45 = vpop.f32.mrf.mxu1 }
 0x300   : > { %v1688_v2 = vadd.f32 %v1654_v45, %v9771_v26 }
 0x301   : > { %v2171_v60 = vadd.f32 %v6886_v51, %v2135_v3  ;;  %v5377_v3 = vpop.eup %5376 }
 0x302   : > { %v1798_v21 = vpop.f32.mrf.mxu2  ;;  %v2245_v39 = vmul.f32 256.0, %v5377_v3  ;;  %vm2249_vm5 = vweird.f32 %v5377_v3 }
 0x303   : > { %v2230_v48 = vsel %vm575_vm2, %v2171_v60, 0.0  ;;  %v1836_v12 = vadd.f32 %v1798_v21, %v1686_v59 }
 0x304   : > { %v2231_v31 = vadd.f32 %v2230_v48, %v2229_v49  ;;  %v2246_v48 = vsub.f32 1.0, %v2245_v39 }
 0x305   : > { %v1986_v54 = vadd.f32 %v1948_v29, %v1836_v12  ;;  %v2101_v28 = vpop.f32.mrf.mxu0 }
 0x307   : > { %v2136_v5 = vadd.f32 %v2098_v11, %v1986_v54  ;;  %v1951_v42 = vpop.f32.mrf.mxu3 }
 0x309   : > { %v2172_v40 = vadd.f32 %v6886_v51, %v2136_v5 }
 0x30a   : > { %v1801_v50 = vpop.f32.mrf.mxu2 }
 0x30b   : > { %v2232_v19 = vsel %vm575_vm2, %v2172_v40, 0.0  ;;  %v1837_v56 = vadd.f32 %v1801_v50, %v1687_v44 }
 0x30c   : > { %v2233_v34 = vadd.f32 %v2232_v19, %v2231_v31  ;;  %v2247_v31 = vmul.f32 %v5377_v3, %v2246_v48 }
 0x30d   : > { %v1987_v41 = vadd.f32 %v1951_v42, %v1837_v56  ;;  %v2104_v13 = vpop.f32.mrf.mxu0 }
 0x30e   : > { %v2248_v42 = vadd.f32 %v5377_v3, %v2247_v31 }
 0x30f   : > { %v2137_v38 = vadd.f32 %v2101_v28, %v1987_v41  ;;  %v1954_v46 = vpop.f32.mrf.mxu3 }
 0x310   : > { %v7153_v44 = vsel %vm2249_vm5, %v5377_v3, %v2248_v42 }
 0x311   : > { %v2173_v33 = vadd.f32 %v6886_v51, %v2137_v38  ;;  %9772 = vst [vmem:[#allocation66_spill] sm:$0xff] %v7153_v44 }
 0x312   : > { %v1804_v57 = vpop.f32.mrf.mxu2 }
 0x313   : > { %v2234_v27 = vsel %vm575_vm2, %v2173_v33, 0.0  ;;  %v1838_v23 = vadd.f32 %v1804_v57, %v1688_v2 }
 0x314   : > { %v2235_v47 = vadd.f32 %v2234_v27, %v2233_v34 }
 0x315   : > { %v1988_v49 = vadd.f32 %v1954_v46, %v1838_v23 }
 0x317   : > { %v2138_v52 = vadd.f32 %v2104_v13, %v1988_v49 }
 0x319   : > { %v2174_v29 = vadd.f32 %v6886_v51, %v2138_v52 }
 0x31b   : > { %v2236_v11 = vsel %vm575_vm2, %v2174_v29, 0.0 }
 0x31c   : > { %v2237_v59 = vadd.f32 %v2236_v11, %v2235_v47 }
 0x31e   : > { %v2238_v21 = vrot.slane %v2237_v59, 4 }
 0x320   : > { %v2239_v12 = vadd.f32 %v2238_v21, %v2237_v59 }
 0x322   : > { %v2240_v10 = vrot.slane %v2239_v12, 2 }
 0x324   : > { %v2241_v54 = vadd.f32 %v2240_v10, %v2239_v12 }
 0x326   : > { %v2242_v5 = vrot.slane %v2241_v54, 1 }
 0x328   : > { %v2243_v16 = vadd.f32 %v2242_v5, %v2241_v54 }
 0x32a   : > { %v7156_v50 = vmul.f32 %v7153_v44, %v2243_v16 }
 0x32c   : > { %v7160_v51 = vsub.f32 %v7133_v22, %v7156_v50  ;;  %v7163_v28 = vsub.f32 %v2170_v35, %v7156_v50  ;;  %v7166_v19 = vsub.f32 %v2171_v60, %v7156_v50  ;;  %v7169_v56 = vsub.f32 %v2172_v40, %v7156_v50  ;;  %v9773_v22 = vld [vmem:[#allocation46_spill] sm:$0xff]  ;;  %v9774_v60 = vld [vmem:[#allocation68_spill] sm:$0xff] }
 0x32d   : > { %v7172_v34 = vsub.f32 %v2173_v33, %v7156_v50  ;;  %v7175_v41 = vsub.f32 %v2174_v29, %v7156_v50  ;;  %v7179_v45 = vsub.f32 %v6900_v18, %v7156_v50  ;;  %v7183_v35 = vsub.f32 %v9773_v22, %v7156_v50 }
 0x32e   : > { %v7187_v38 = vsub.f32 %v9774_v60, %v7156_v50  ;;  %v7191_v40 = vsub.f32 %v6917_v7, %v7156_v50  ;;  %v7199_v18 = vsub.f32 %v6930_v24, %v7156_v50  ;;  %v7205_v57 = vsub.f32 %v6944_v15, %v7156_v50 }
 0x32f   : > { %v2284_v26 = vmul.f32 %v7179_v45, %v7179_v45  ;;  %v2285_v2 = vmul.f32 %v7183_v35, %v7183_v35  ;;  %v7213_v23 = vsub.f32 %v6952_v62, %v7156_v50  ;;  %v7220_v15 = vsub.f32 %v6965_v6, %v7156_v50 }
 0x330   : > { %v2286_v33 = vmul.f32 %v7187_v38, %v7187_v38  ;;  %v2287_v7 = vmul.f32 %v7191_v40, %v7191_v40  ;;  %v2288_v24 = vmul.f32 %v7199_v18, %v7199_v18  ;;  %v2289_v49 = vmul.f32 %v7205_v57, %v7205_v57 }
 0x331   : > { %v2316_v46 = vsel %vm575_vm2, %v2284_v26, 0.0  ;;  %v2317_v17 = vsel %vm575_vm2, %v2285_v2, 0.0  ;;  %v7227_v62 = vsub.f32 %v6979_v14, %v7156_v50  ;;  %v2290_v29 = vmul.f32 %v7213_v23, %v7213_v23 }
 0x332   : > { %v2318_v27 = vadd.f32 %v2317_v17, %v2316_v46  ;;  %v2319_v47 = vsel %vm575_vm2, %v2286_v33, 0.0  ;;  %v2321_v52 = vsel %vm575_vm2, %v2287_v7, 0.0  ;;  %v2323_v11 = vsel %vm575_vm2, %v2288_v24, 0.0 }
 0x333   : > { %v7234_v6 = vsub.f32 %v6991_v43, %v7156_v50  ;;  %v2291_v59 = vmul.f32 %v7220_v15, %v7220_v15  ;;  %v2325_v21 = vsel %vm575_vm2, %v2289_v49, 0.0  ;;  %v7241_v14 = vsub.f32 %v7004_v36, %v7156_v50 }
 0x334   : > { %v2320_v13 = vadd.f32 %v2319_v47, %v2318_v27  ;;  %v2292_v12 = vmul.f32 %v7227_v62, %v7227_v62  ;;  %v2327_v10 = vsel %vm575_vm2, %v2290_v29, 0.0  ;;  %v7248_v43 = vsub.f32 %v7014_v61, %v7156_v50 }
 0x335   : > { %v2293_v54 = vmul.f32 %v7234_v6, %v7234_v6  ;;  %v2329_v5 = vsel %vm575_vm2, %v2291_v59, 0.0  ;;  %v7255_v36 = vsub.f32 %v7026_v55, %v7156_v50  ;;  %v2294_v16 = vmul.f32 %v7241_v14, %v7241_v14 }
 0x336   : > { %v2322_v3 = vadd.f32 %v2321_v52, %v2320_v13  ;;  %v2331_v22 = vsel %vm575_vm2, %v2292_v12, 0.0  ;;  %v7262_v61 = vsub.f32 %v7036_v25, %v7156_v50  ;;  %v2295_v26 = vmul.f32 %v7248_v43, %v7248_v43 }
 0x337   : > { %v2333_v2 = vsel %vm575_vm2, %v2293_v54, 0.0  ;;  %v7269_v55 = vsub.f32 %v7046_v9, %v7156_v50  ;;  %v2296_v7 = vmul.f32 %v7255_v36, %v7255_v36  ;;  %v2335_v46 = vsel %vm575_vm2, %v2294_v16, 0.0 }
 0x338   : > { %v2324_v39 = vadd.f32 %v2323_v11, %v2322_v3  ;;  %v7276_v25 = vsub.f32 %v7056_v8, %v7156_v50  ;;  %v2297_v27 = vmul.f32 %v7262_v61, %v7262_v61  ;;  %v2337_v24 = vsel %vm575_vm2, %v2295_v26, 0.0 }
 0x339   : > { %v7283_v9 = vsub.f32 %v7063_v58, %v7156_v50  ;;  %v2298_v13 = vmul.f32 %v7269_v55, %v7269_v55  ;;  %v2339_v49 = vsel %vm575_vm2, %v2296_v7, 0.0  ;;  %v7290_v8 = vsub.f32 %v7073_v63, %v7156_v50 }
 0x33a   : > { %v2326_v48 = vadd.f32 %v2325_v21, %v2324_v39  ;;  %v2299_v3 = vmul.f32 %v7276_v25, %v7276_v25  ;;  %v2341_v29 = vsel %vm575_vm2, %v2297_v27, 0.0  ;;  %v7297_v58 = vsub.f32 %v7084_v30, %v7156_v50 }
 0x33b   : > { %v2300_v39 = vmul.f32 %v7283_v9, %v7283_v9  ;;  %v2343_v59 = vsel %vm575_vm2, %v2298_v13, 0.0  ;;  %v7304_v63 = vsub.f32 %v7091_v53, %v7156_v50  ;;  %v7311_v30 = vsub.f32 %v7098_v4, %v7156_v50 }
 0x33c   : > { %v2328_v31 = vadd.f32 %v2327_v10, %v2326_v48  ;;  %v2301_v48 = vmul.f32 %v7290_v8, %v7290_v8  ;;  %v2345_v12 = vsel %vm575_vm2, %v2299_v3, 0.0  ;;  %v7318_v53 = vsub.f32 %v7105_v0, %v7156_v50 }
 0x33d   : > { %v2347_v54 = vsel %vm575_vm2, %v2300_v39, 0.0  ;;  %v7325_v4 = vsub.f32 %v7111_v37, %v7156_v50  ;;  %v7332_v0 = vsub.f32 %v7117_v20, %v7156_v50  ;;  %v7339_v37 = vsub.f32 %v7122_v32, %v7156_v50 }
 0x33e   : > { %v2330_v42 = vadd.f32 %v2329_v5, %v2328_v31  ;;  %v2302_v31 = vmul.f32 %v7297_v58, %v7297_v58  ;;  %v2349_v16 = vsel %vm575_vm2, %v2301_v48, 0.0  ;;  %v7346_v20 = vsub.f32 %v7128_v1, %v7156_v50 }
 0x33f   : > { %v2308_v32 = vmul.f32 %v7339_v37, %v7339_v37  ;;  %v2310_v1 = vmul.f32 %v7160_v51, %v7160_v51 }
 0x340   : > { %v2332_v60 = vadd.f32 %v2331_v22, %v2330_v42  ;;  %v2303_v42 = vmul.f32 %v7304_v63, %v7304_v63  ;;  %v2351_v26 = vsel %vm575_vm2, %v2302_v31, 0.0 }
 0x341   : > { %v2363_v50 = vsel %vm575_vm2, %v2308_v32, 0.0  ;;  %v2367_v31 = vsel %vm575_vm2, %v2310_v1, 0.0  ;;  %v5121_v1 = vld [vmem:[%s9322_s3 + $0x8] sm:$0xf] }
 0x342   : > { %v2334_v33 = vadd.f32 %v2333_v2, %v2332_v60  ;;  %v2304_v60 = vmul.f32 %v7311_v30, %v7311_v30  ;;  %v2353_v7 = vsel %vm575_vm2, %v2303_v42, 0.0  ;;  %5122 = vmatpush.msk.msrb.mxu3 %vm636_vm0, %v5121_v1 }
 0x344   : > { %v2336_v17 = vadd.f32 %v2335_v46, %v2334_v33  ;;  %v2305_v33 = vmul.f32 %v7318_v53, %v7318_v53  ;;  %v2355_v27 = vsel %vm575_vm2, %v2304_v60, 0.0 }
 0x346   : > { %v2338_v47 = vadd.f32 %v2337_v24, %v2336_v17  ;;  %v2306_v17 = vmul.f32 %v7325_v4, %v7325_v4  ;;  %v2357_v13 = vsel %vm575_vm2, %v2305_v33, 0.0 }
 0x348   : > { %v2340_v52 = vadd.f32 %v2339_v49, %v2338_v47  ;;  %v2307_v47 = vmul.f32 %v7332_v0, %v7332_v0 }
 0x34a   : > { %v2342_v11 = vadd.f32 %v2341_v29, %v2340_v52  ;;  %v2359_v52 = vsel %vm575_vm2, %v2306_v17, 0.0  ;;  %v2309_v29 = vmul.f32 %v7346_v20, %v7346_v20 }
 0x34c   : > { %v2344_v21 = vadd.f32 %v2343_v59, %v2342_v11  ;;  %v2361_v11 = vsel %vm575_vm2, %v2307_v47, 0.0  ;;  %v2365_v48 = vsel %vm575_vm2, %v2309_v29, 0.0  ;;  %v2669_v29 = vld [vmem:[%s9322_s3] sm:$0xf] }
 0x34d   : > { %5088 = vmatpush.msk.msrb.mxu2 %vm636_vm0, %v2669_v29 }
 0x34e   : > { %v2346_v10 = vadd.f32 %v2345_v12, %v2344_v21  ;;  %v2311_v21 = vmul.f32 %v7163_v28, %v7163_v28 }
 0x350   : > { %v2348_v5 = vadd.f32 %v2347_v54, %v2346_v10  ;;  %v2312_v10 = vmul.f32 %v7166_v19, %v7166_v19  ;;  %v2369_v42 = vsel %vm575_vm2, %v2311_v21, 0.0  ;;  %v5155_v21 = vld [vmem:[%s9322_s3 + $0xc] sm:$0xf] }
 0x351   : > { %5156 = vmatpush.msk.msrb.mxu0 %vm636_vm0, %v5155_v21 }
 0x352   : > { %v2350_v22 = vadd.f32 %v2349_v16, %v2348_v5  ;;  %v2313_v5 = vmul.f32 %v7169_v56, %v7169_v56  ;;  %v2371_v60 = vsel %vm575_vm2, %v2312_v10, 0.0  ;;  %v5189_v10 = vld [vmem:[%s9322_s3 + $0x10] sm:$0xf] }
 0x353   : > { %5190 = vmatpush.msk.msrb.mxu1 %vm636_vm0, %v5189_v10 }
 0x354   : > { %v2352_v2 = vadd.f32 %v2351_v26, %v2350_v22  ;;  %v2314_v22 = vmul.f32 %v7172_v34, %v7172_v34  ;;  %v2373_v33 = vsel %vm575_vm2, %v2313_v5, 0.0 }
 0x356   : > { %v2354_v46 = vadd.f32 %v2353_v7, %v2352_v2  ;;  %v2315_v2 = vmul.f32 %v7175_v41, %v7175_v41 }
 0x358   : > { %v2356_v24 = vadd.f32 %v2355_v27, %v2354_v46  ;;  %v2375_v46 = vsel %vm575_vm2, %v2314_v22, 0.0  ;;  %v2377_v27 = vsel %vm575_vm2, %v2315_v2, 0.0 }
 0x35a   : > { %v2358_v49 = vadd.f32 %v2357_v13, %v2356_v24 }
 0x35c   : > { %v2360_v3 = vadd.f32 %v2359_v52, %v2358_v49 }
 0x35e   : > { %v2362_v39 = vadd.f32 %v2361_v11, %v2360_v3 }
 0x360   : > { %v2364_v59 = vadd.f32 %v2363_v50, %v2362_v39 }
 0x362   : > { %v2366_v12 = vadd.f32 %v2365_v48, %v2364_v59 }
 0x364   : > { %v2368_v54 = vadd.f32 %v2367_v31, %v2366_v12 }
 0x366   : > { %v2370_v16 = vadd.f32 %v2369_v42, %v2368_v54 }
 0x368   : > { %v2372_v26 = vadd.f32 %v2371_v60, %v2370_v16 }
 0x36a   : > { %v2374_v7 = vadd.f32 %v2373_v33, %v2372_v26 }
 0x36c   : > { %v2376_v17 = vadd.f32 %v2375_v46, %v2374_v7 }
 0x36e   : > { %v2378_v24 = vadd.f32 %v2377_v27, %v2376_v17 }
 0x370   : > { %v2379_v47 = vrot.slane %v2378_v24, 4 }
 0x372   : > { %v2380_v13 = vadd.f32 %v2379_v47, %v2378_v24 }
 0x374   : > { %v2381_v49 = vrot.slane %v2380_v13, 2 }
 0x376   : > { %v2382_v32 = vadd.f32 %v2381_v49, %v2380_v13 }
 0x378   : > { %v2383_v52 = vrot.slane %v2382_v32, 1 }
 0x37a   : > { %v2384_v3 = vadd.f32 %v2383_v52, %v2382_v32 }
 0x37c   : > { %v2385_v11 = vmul.f32 %v2384_v3, %v7153_v44 }
 0x37e   : > { %v2386_v39 = vadd.f32 1e-05, %v2385_v11 }
 0x380   : > { %5378 = vrsqrt.f32 %v2386_v39  ;;  %vm2393_vm7 = vweird.f32 %v2386_v39 }
 0x386   : > { %v5379_v50 = vpop.eup %5378 }
 0x387   : > { %v2388_v59 = vmul.f32 %v5379_v50, %v2386_v39  ;;  %vm2394_vm6 = vweird.f32 %v5379_v50 }
 0x388   : > { %vm2395_vm8 = vmor %vm2393_vm7, %vm2394_vm6 }
 0x389   : > { %v2389_v48 = vmul.f32 %v5379_v50, %v2388_v59 }
 0x38b   : > { %v2390_v12 = vmul.f32 0.5, %v2389_v48 }
 0x38d   : > { %v2391_v31 = vsub.f32 1.5, %v2390_v12 }
 0x38f   : > { %v2392_v54 = vmul.f32 %v5379_v50, %v2391_v31 }
 0x391   : > { %v7394_v5 = vsel %vm2395_vm8, %v5379_v50, %v2392_v54 }
 0x392   : > { %v2399_v42 = vmul.f32 %v7394_v5, %v7187_v38  ;;  %v2397_v16 = vmul.f32 %v7394_v5, %v7179_v45  ;;  %v2400_v22 = vmul.f32 %v7394_v5, %v7191_v40  ;;  %v2398_v33 = vmul.f32 %v7394_v5, %v7183_v35 }
 0x393   : > { %v2411_v44 = vmul.f32 %v7394_v5, %v7269_v55 }
 0x394   : > { %v2431_v60 = vmax.f32 %v2399_v42, 0.0  ;;  %v2429_v26 = vmax.f32 %v2397_v16, 0.0  ;;  %v2432_v2 = vmax.f32 %v2400_v22, 0.0  ;;  %v2430_v47 = vmax.f32 %v2398_v33, 0.0 }
 0x396   : > { %v2477_v7 = vrot.slane %v2431_v60, 1  ;;  %v2478_v46 = vrot.slane %v2429_v26, 1  ;;  %v2525_v17 = vrot.slane %v2431_v60, 7  ;;  %v2526_v27 = vrot.slane %v2432_v2, 7 }
 0x397   : > { %v2528_v24 = vrot.slane %v2429_v26, 7  ;;  %v2605_v13 = vrot.slane %v2432_v2, 5  ;;  %v2529_v11 = vrot.slane %v2430_v47, 7  ;;  %v2606_v42 = vrot.slane %v2430_v47, 5 }
 0x398   : > { %v7405_v38 = vsel %vm321_vm1, %v2525_v17, %v2526_v27  ;;  %v7408_v45 = vsel %vm321_vm1, %v2477_v7, %v2525_v17  ;;  %v2401_v60 = vmul.f32 %v7394_v5, %v7199_v18  ;;  %v2402_v17 = vmul.f32 %v7394_v5, %v7205_v57 }
 0x399   : > { %v2638_v40 = vsel %vm321_vm1, %v2478_v46, %v2528_v24  ;;  %5089 = vmatmul.msk.f32.vlgmr.msrb.gmra.mxu2 %vm575_vm2, %v7408_v45  ;;  %v2700_v35 = vrot.slane %v7408_v45, 1  ;;  %v2701_v49 = vrot.slane %v7405_v38, 1  ;;  %v3129_v32 = vrot.slane %v7408_v45, 2 }
 0x39a   : > { %5157 = vmatmul.msk.f32.vlgmr.msrb.gmra.mxu0 %vm575_vm2, %v2638_v40  ;;  %v3130_v52 = vrot.slane %v7405_v38, 2  ;;  %v2653_v39 = vsel %vm321_vm1, %v2526_v27, %v2605_v13  ;;  %v2530_v59 = vsel %vm321_vm1, %v2528_v24, %v2529_v11  ;;  %v2705_v31 = vrot.slane %v2638_v40, 1 }
 0x39b   : > { %v7419_v3 = vsel %vm497_vm3, %v2700_v35, %v2701_v49  ;;  %v2703_v1 = vrot.slane %v2653_v39, 1  ;;  %v3132_v50 = vrot.slane %v2653_v39, 2  ;;  %v2706_v12 = vrot.slane %v2530_v59, 1 }
 0x39c   : > { %v7422_v29 = vsel %vm929_vm4, %v3129_v32, %v3130_v52  ;;  %5056 = vmatmul.msk.f32.vlgmr.msra.gmra.mxu1 %vm575_vm2, %v7419_v3  ;;  %v3135_v10 = vrot.slane %v2530_v59, 2  ;;  %v3134_v54 = vrot.slane %v2638_v40, 2  ;;  %v2654_v26 = vsel %vm321_vm1, %v2529_v11, %v2606_v42 }
 0x39d   : > { %5123 = vmatmul.msk.f32.vlgmr.msrb.gmra.mxu3 %vm575_vm2, %v7422_v29  ;;  %v7434_v21 = vsel %vm497_vm3, %v2701_v49, %v2703_v1  ;;  %v7437_v48 = vsel %vm929_vm4, %v3130_v52, %v3132_v50  ;;  %v7447_v16 = vsel %vm497_vm3, %v2705_v31, %v2706_v12  ;;  %v2708_v2 = vrot.slane %v2654_v26, 1 }
 0x39e   : > { %v7450_v22 = vsel %vm929_vm4, %v3134_v54, %v3135_v10  ;;  %v3137_v33 = vrot.slane %v2654_v26, 2  ;;  %v2433_v7 = vmax.f32 %v2401_v60, 0.0  ;;  %v2434_v47 = vmax.f32 %v2402_v17, 0.0 }
 0x39f   : > { %v7463_v46 = vsel %vm497_vm3, %v2706_v12, %v2708_v2  ;;  %v2403_v57 = vmul.f32 %v7394_v5, %v7213_v23  ;;  %v2404_v23 = vmul.f32 %v7394_v5, %v7220_v15  ;;  %v2405_v54 = vmul.f32 %v7394_v5, %v7227_v62 }
 0x3a0   : > { %v7466_v18 = vsel %vm929_vm4, %v3135_v10, %v3137_v33  ;;  %v2479_v27 = vrot.slane %v2433_v7, 1  ;;  %v2531_v24 = vrot.slane %v2433_v7, 7  ;;  %v2607_v12 = vrot.slane %v2434_v47, 5 }
 0x3a1   : > { %5090 = vmatmul.msk.f32.gmra.mxu2 %vm575_vm2, %v7405_v38  ;;  %v2435_v35 = vmax.f32 %v2403_v57, 0.0  ;;  %v2437_v33 = vmax.f32 %v2405_v54, 0.0 }
 0x3a2   : > { %5158 = vmatmul.msk.f32.gmra.mxu0 %vm575_vm2, %v2530_v59  ;;  %v7475_v13 = vsel %vm321_vm1, %v2479_v27, %v2531_v24  ;;  %v2406_v27 = vmul.f32 %v7394_v5, %v7234_v6 }
 0x3a3   : > { %v2480_v32 = vrot.slane %v2435_v35, 1  ;;  %v2534_v52 = vrot.slane %v2435_v35, 7  ;;  %v2710_v11 = vrot.slane %v7475_v13, 1  ;;  %v3139_v1 = vrot.slane %v7475_v13, 2 }
 0x3a4   : > { %5057 = vmatmul.msk.f32.gmra.mxu1 %vm575_vm2, %v7434_v21 }
 0x3a5   : > { %5124 = vmatmul.msk.f32.gmra.mxu3 %vm575_vm2, %v7437_v48  ;;  %v7505_v15 = vsel %vm321_vm1, %v2480_v32, %v2534_v52  ;;  %v2438_v32 = vmax.f32 %v2406_v27, 0.0 }
 0x3a6   : > { %v2715_v57 = vrot.slane %v7505_v15, 1  ;;  %v3144_v35 = vrot.slane %v7505_v15, 2 }
 0x3a9   : > { %5091 = vmatmul.msk.f32.gmra.mxu2 %vm575_vm2, %v2638_v40  ;;  %v2532_v40 = vrot.slane %v2434_v47, 7  ;;  %v2537_v47 = vrot.slane %v2437_v33, 7 }
 0x3aa   : > { %5159 = vmatmul.msk.f32.gmra.mxu0 %vm575_vm2, %v7408_v45 }
 0x3ab   : > { %v7488_v49 = vsel %vm321_vm1, %v2531_v24, %v2532_v40  ;;  %v2655_v60 = vsel %vm321_vm1, %v2532_v40, %v2607_v12  ;;  %v2481_v24 = vrot.slane %v2437_v33, 1 }
 0x3ac   : > { %5058 = vmatmul.msk.f32.gmra.mxu1 %vm575_vm2, %v7447_v16  ;;  %v2711_v39 = vrot.slane %v7488_v49, 1  ;;  %v3140_v50 = vrot.slane %v7488_v49, 2  ;;  %v2713_v26 = vrot.slane %v2655_v60, 1  ;;  %v3142_v2 = vrot.slane %v2655_v60, 2 }
 0x3ad   : > { %5125 = vmatmul.msk.f32.gmra.mxu3 %vm575_vm2, %v7450_v22  ;;  %v7548_v6 = vsel %vm321_vm1, %v2481_v24, %v2537_v47 }
 0x3ae   : > { %v7512_v10 = vsel %vm497_vm3, %v2710_v11, %v2711_v39  ;;  %v7515_v31 = vsel %vm929_vm4, %v3139_v1, %v3140_v50  ;;  %v7532_v62 = vsel %vm497_vm3, %v2711_v39, %v2713_v26  ;;  %v7535_v17 = vsel %vm929_vm4, %v3140_v50, %v3142_v2  ;;  %9775 = vst [vmem:[#allocation51_spill] sm:$0xff] %v7548_v6 }
 0x3af   : > { %v2407_v1 = vmul.f32 %v7394_v5, %v7241_v14  ;;  %v2538_v50 = vrot.slane %v2438_v32, 7  ;;  %v2720_v24 = vrot.slane %v7548_v6, 1 }
 0x3b1   : > { %5092 = vmatmul.msk.f32.gmra.mxu2 %vm575_vm2, %v2530_v59  ;;  %v2436_v59 = vmax.f32 %v2404_v23, 0.0  ;;  %v2439_v60 = vmax.f32 %v2407_v1, 0.0  ;;  %v7568_v26 = vsel %vm321_vm1, %v2537_v47, %v2538_v50 }
 0x3b2   : > { %5160 = vmatmul.msk.f32.gmra.mxu0 %vm575_vm2, %v7405_v38  ;;  %9776 = vst [vmem:[#allocation48_spill] sm:$0xff] %v7568_v26  ;;  %v2721_v47 = vrot.slane %v7568_v26, 1 }
 0x3b3   : > { %v2535_v42 = vrot.slane %v2436_v59, 7  ;;  %v2482_v33 = vrot.slane %v2439_v60, 1  ;;  %v2540_v27 = vrot.slane %v2439_v60, 7 }
 0x3b4   : > { %5059 = vmatmul.msk.f32.gmra.mxu1 %vm575_vm2, %v7463_v46 }
 0x3b5   : > { %5126 = vmatmul.msk.f32.gmra.mxu3 %vm575_vm2, %v7466_v18  ;;  %v7525_v7 = vsel %vm321_vm1, %v2534_v52, %v2535_v42  ;;  %v2608_v52 = vrot.slane %v2436_v59, 5 }
 0x3b6   : > { %v2716_v40 = vrot.slane %v7525_v7, 1  ;;  %v3145_v23 = vrot.slane %v7525_v7, 2 }
 0x3b7   : > { %v2656_v59 = vsel %vm321_vm1, %v2535_v42, %v2608_v52  ;;  %v2408_v42 = vmul.f32 %v7394_v5, %v7248_v43  ;;  %v7591_v43 = vsel %vm321_vm1, %v2482_v33, %v2540_v27  ;;  %v7598_v52 = vsel %vm497_vm3, %v2720_v24, %v2721_v47 }
 0x3b8   : > { %v7555_v11 = vsel %vm497_vm3, %v2715_v57, %v2716_v40  ;;  %v7558_v39 = vsel %vm929_vm4, %v3144_v35, %v3145_v23  ;;  %v2718_v12 = vrot.slane %v2656_v59, 1  ;;  %v3147_v54 = vrot.slane %v2656_v59, 2  ;;  %9778 = vst [vmem:[#allocation67_spill] sm:$0xff] %v7591_v43 }
 0x3b9   : > { %5093 = vmatmul.msk.f32.gmra.mxu2 %vm575_vm2, %v7408_v45  ;;  %v3149_v57 = vrot.slane %v7548_v6, 2  ;;  %v2440_v35 = vmax.f32 %v2408_v42, 0.0  ;;  %v2409_v59 = vmul.f32 %v7394_v5, %v7255_v36 }
 0x3ba   : > { %5161 = vmatmul.msk.f32.gmra.mxu0 %vm575_vm2, %v7475_v13  ;;  %v7575_v14 = vsel %vm497_vm3, %v2716_v40, %v2718_v12  ;;  %v7578_v2 = vsel %vm929_vm4, %v3145_v23, %v3147_v54  ;;  %v3150_v40 = vrot.slane %v7568_v26, 2  ;;  %v2609_v23 = vrot.slane %v2438_v32, 5 }
 0x3bb   : > { %9777 = vst [vmem:[#allocation70_spill] sm:$0xff] %v7578_v2  ;;  %v2541_v32 = vrot.slane %v2440_v35, 7  ;;  %v2441_v42 = vmax.f32 %v2409_v59, 0.0 }
 0x3bc   : > { %5060 = vmatmul.msk.f32.gmra.mxu1 %vm575_vm2, %v7419_v3  ;;  %v7601_v1 = vsel %vm929_vm4, %v3149_v57, %v3150_v40  ;;  %v2657_v12 = vsel %vm321_vm1, %v2538_v50, %v2609_v23  ;;  %v2410_v50 = vmul.f32 %v7394_v5, %v7262_v61  ;;  %v2725_v23 = vrot.slane %v7591_v43, 1 }
 0x3bd   : > { %5127 = vmatmul.msk.f32.gmra.mxu3 %vm575_vm2, %v7422_v29  ;;  %9779 = vst [vmem:[#allocation53_spill] sm:$0xff] %v7601_v1  ;;  %v2723_v54 = vrot.slane %v2657_v12, 1  ;;  %v3152_v60 = vrot.slane %v2657_v12, 2  ;;  %v7611_v33 = vsel %vm321_vm1, %v2540_v27, %v2541_v32  ;;  %v2483_v27 = vrot.slane %v2441_v42, 1 }
 0x3be   : > { %9780 = vst [vmem:[#allocation47_spill] sm:$0xff] %v7611_v33  ;;  %v2543_v57 = vrot.slane %v2441_v42, 7  ;;  %v2726_v59 = vrot.slane %v7611_v33, 1  ;;  %v2442_v12 = vmax.f32 %v2410_v50, 0.0 }
 0x3bf   : > { %v7618_v36 = vsel %vm497_vm3, %v2721_v47, %v2723_v54  ;;  %v7621_v24 = vsel %vm929_vm4, %v3150_v40, %v3152_v60  ;;  %v3154_v47 = vrot.slane %v7591_v43, 2  ;;  %v3155_v40 = vrot.slane %v7611_v33, 2 }
 0x3c0   : > { %9781 = vst [vmem:[#allocation72_spill] sm:$0xff] %v7618_v36  ;;  %v2610_v54 = vrot.slane %v2440_v35, 5  ;;  %v7634_v61 = vsel %vm321_vm1, %v2483_v27, %v2543_v57  ;;  %v7641_v60 = vsel %vm497_vm3, %v2725_v23, %v2726_v59  ;;  %v2544_v35 = vrot.slane %v2442_v12, 7 }
 0x3c1   : > { %5094 = vmatmul.msk.f32.gmra.mxu2 %vm575_vm2, %v7405_v38  ;;  %9782 = vst [vmem:[#allocation69_spill] sm:$0xff] %v7621_v24  ;;  %v7644_v42 = vsel %vm929_vm4, %v3154_v47, %v3155_v40 }
 0x3c2   : > { %5162 = vmatmul.msk.f32.gmra.mxu0 %vm575_vm2, %v7488_v49  ;;  %9783 = vst [vmem:[#allocation5_spill] sm:$0xff] %v7634_v61  ;;  %v2658_v50 = vsel %vm321_vm1, %v2541_v32, %v2610_v54  ;;  %v7654_v23 = vsel %vm321_vm1, %v2543_v57, %v2544_v35  ;;  %v2412_v32 = vmul.f32 %v7394_v5, %v7276_v25  ;;  %v2730_v54 = vrot.slane %v7634_v61, 1 }
 0x3c3   : > { %9784 = vst [vmem:[#allocation3_spill] sm:$0xff] %v7641_v60  ;;  %v2728_v27 = vrot.slane %v2658_v50, 1 }
 0x3c4   : > { %5061 = vmatmul.msk.f32.gmra.mxu1 %vm575_vm2, %v7434_v21  ;;  %9785 = vst [vmem:[#allocation74_spill] sm:$0xff] %v7644_v42 }
 0x3c5   : > { %5128 = vmatmul.msk.f32.gmra.mxu3 %vm575_vm2, %v7437_v48  ;;  %9786 = vst [vmem:[#allocation71_spill] sm:$0xff] %v7654_v23  ;;  %v7661_v55 = vsel %vm497_vm3, %v2726_v59, %v2728_v27  ;;  %v3159_v59 = vrot.slane %v7634_v61, 2  ;;  %v2611_v27 = vrot.slane %v2442_v12, 5 }
 0x3c6   : > { %9787 = vst [vmem:[#allocation6_spill] sm:$0xff] %v7661_v55 }
 0x3c9   : > { %5095 = vmatmul.msk.f32.gmra.mxu2 %vm575_vm2, %v7475_v13 }
 0x3ca   : > { %5163 = vmatmul.msk.f32.gmra.mxu0 %vm575_vm2, %v7505_v15 }
 0x3cc   : > { %5062 = vmatmul.msk.f32.gmra.mxu1 %vm575_vm2, %v7512_v10 }
 0x3cd   : > { %5129 = vmatmul.msk.f32.gmra.mxu3 %vm575_vm2, %v7515_v31 }
 0x3d1   : > { %5096 = vmatmul.msk.f32.gmra.mxu2 %vm575_vm2, %v7488_v49 }
 0x3d2   : > { %5164 = vmatmul.msk.f32.gmra.mxu0 %vm575_vm2, %v7525_v7 }
 0x3d4   : > { %5063 = vmatmul.msk.f32.gmra.mxu1 %vm575_vm2, %v7532_v62 }
 0x3d5   : > { %5130 = vmatmul.msk.f32.gmra.mxu3 %vm575_vm2, %v7535_v17 }
 0x3d9   : > { %5097 = vmatmul.msk.f32.gmra.mxu2 %vm575_vm2, %v7505_v15 }
 0x3da   : > { %5165 = vmatmul.msk.f32.gmra.mxu0 %vm575_vm2, %v7548_v6 }
 0x3dc   : > { %5064 = vmatmul.msk.f32.gmra.mxu1 %vm575_vm2, %v7555_v11 }
 0x3dd   : > { %5131 = vmatmul.msk.f32.gmra.mxu3 %vm575_vm2, %v7558_v39 }
 0x3e1   : > { %5098 = vmatmul.msk.f32.gmra.mxu2 %vm575_vm2, %v7525_v7 }
 0x3e2   : > { %5166 = vmatmul.msk.f32.gmra.mxu0 %vm575_vm2, %v7568_v26 }
 0x3e4   : > { %5065 = vmatmul.msk.f32.gmra.mxu1 %vm575_vm2, %v7575_v14 }
 0x3e5   : > { %5132 = vmatmul.msk.f32.gmra.mxu3 %vm575_vm2, %v7578_v2 }
 0x3e9   : > { %5099 = vmatmul.msk.f32.gmra.mxu2 %vm575_vm2, %v7548_v6 }
 0x3ea   : > { %5167 = vmatmul.msk.f32.gmra.mxu0 %vm575_vm2, %v7591_v43 }
 0x3ec   : > { %5066 = vmatmul.msk.f32.gmra.mxu1 %vm575_vm2, %v7598_v52 }
 0x3ed   : > { %5133 = vmatmul.msk.f32.gmra.mxu3 %vm575_vm2, %v7601_v1 }
 0x3f1   : > { %5100 = vmatmul.msk.f32.gmra.mxu2 %vm575_vm2, %v7568_v26 }
 0x3f2   : > { %5168 = vmatmul.msk.f32.gmra.mxu0 %vm575_vm2, %v7611_v33 }
 0x3f4   : > { %5067 = vmatmul.msk.f32.gmra.mxu1 %vm575_vm2, %v7618_v36 }
 0x3f5   : > { %5134 = vmatmul.msk.f32.gmra.mxu3 %vm575_vm2, %v7621_v24  ;;  %v3157_v24 = vrot.slane %v2658_v50, 2  ;;  %v2731_v50 = vrot.slane %v7654_v23, 1 }
 0x3f7   : > { %v7664_v47 = vsel %vm929_vm4, %v3155_v40, %v3157_v24  ;;  %v3160_v24 = vrot.slane %v7654_v23, 2  ;;  %v2444_v40 = vmax.f32 %v2412_v32, 0.0  ;;  %v2659_v32 = vsel %vm321_vm1, %v2544_v35, %v2611_v27 }
 0x3f8   : > { %9788 = vst [vmem:[#allocation2_spill] sm:$0xff] %v7664_v47  ;;  %v2414_v35 = vmul.f32 %v7394_v5, %v7290_v8 }
 0x3f9   : > { %5101 = vmatmul.msk.f32.gmra.mxu2 %vm575_vm2, %v7591_v43  ;;  %v2443_v43 = vmax.f32 %v2411_v44, 0.0  ;;  %v2547_v12 = vrot.slane %v2444_v40, 7  ;;  %v2612_v8 = vrot.slane %v2444_v40, 5 }
 0x3fa   : > { %5169 = vmatmul.msk.f32.gmra.mxu0 %vm575_vm2, %v7634_v61 }
 0x3fb   : > { %v2484_v44 = vrot.slane %v2443_v43, 1  ;;  %v2546_v57 = vrot.slane %v2443_v43, 7  ;;  %v7684_v43 = vsel %vm497_vm3, %v2730_v54, %v2731_v50 }
 0x3fc   : > { %5068 = vmatmul.msk.f32.gmra.mxu1 %vm575_vm2, %v7641_v60  ;;  %9790 = vst [vmem:[#allocation8_spill] sm:$0xff] %v7684_v43 }
 0x3fd   : > { %5135 = vmatmul.msk.f32.gmra.mxu3 %vm575_vm2, %v7644_v42  ;;  %v7677_v25 = vsel %vm321_vm1, %v2484_v44, %v2546_v57  ;;  %v2413_v42 = vmul.f32 %v7394_v5, %v7283_v9  ;;  %v2733_v44 = vrot.slane %v2659_v32, 1  ;;  %v7697_v54 = vsel %vm321_vm1, %v2546_v57, %v2547_v12 }
 0x3fe   : > { %9789 = vst [vmem:[#allocation73_spill] sm:$0xff] %v7677_v25 }
 0x3ff   : > { %9792 = vst [vmem:[#allocation7_spill] sm:$0xff] %v7697_v54  ;;  %v7704_v9 = vsel %vm497_vm3, %v2731_v50, %v2733_v44  ;;  %v2736_v50 = vrot.slane %v7697_v54, 1  ;;  %v2446_v44 = vmax.f32 %v2414_v35, 0.0  ;;  %v2415_v35 = vmul.f32 %v7394_v5, %v7297_v58 }
 0x400   : > { %9793 = vst [vmem:[#allocation76_spill] sm:$0xff] %v7704_v9 }
 0x401   : > { %5102 = vmatmul.msk.f32.gmra.mxu2 %vm575_vm2, %v7611_v33  ;;  %v2445_v33 = vmax.f32 %v2413_v42, 0.0  ;;  %v2447_v60 = vmax.f32 %v2415_v35, 0.0 }
 0x402   : > { %5170 = vmatmul.msk.f32.gmra.mxu0 %vm575_vm2, %v7654_v23 }
 0x403   : > { %v2485_v42 = vrot.slane %v2445_v33, 1  ;;  %v2549_v57 = vrot.slane %v2445_v33, 7 }
 0x404   : > { %5069 = vmatmul.msk.f32.gmra.mxu1 %vm575_vm2, %v7661_v55 }
 0x405   : > { %5136 = vmatmul.msk.f32.gmra.mxu3 %vm575_vm2, %v7664_v47  ;;  %v7687_v47 = vsel %vm929_vm4, %v3159_v59, %v3160_v24 }
 0x406   : > { %9791 = vst [vmem:[#allocation75_spill] sm:$0xff] %v7687_v47 }
 0x409   : > { %5103 = vmatmul.msk.f32.gmra.mxu2 %vm575_vm2, %v7634_v61  ;;  %v3162_v61 = vrot.slane %v2659_v32, 2  ;;  %v2735_v32 = vrot.slane %v7677_v25, 1 }
 0x40a   : > { %5171 = vmatmul.msk.f32.gmra.mxu0 %vm575_vm2, %v7677_v25 }
 0x40b   : > { %v7707_v59 = vsel %vm929_vm4, %v3160_v24, %v3162_v61  ;;  %v3164_v61 = vrot.slane %v7677_v25, 2  ;;  %v3165_v24 = vrot.slane %v7697_v54, 2  ;;  %v7729_v33 = vsel %vm497_vm3, %v2735_v32, %v2736_v50 }
 0x40c   : > { %5070 = vmatmul.msk.f32.gmra.mxu1 %vm575_vm2, %v7684_v43  ;;  %9794 = vst [vmem:[#allocation77_spill] sm:$0xff] %v7707_v59 }
 0x40d   : > { %5137 = vmatmul.msk.f32.gmra.mxu3 %vm575_vm2, %v7687_v47  ;;  %v7722_v47 = vsel %vm321_vm1, %v2485_v42, %v2549_v57  ;;  %9796 = vst [vmem:[#allocation10_spill] sm:$0xff] %v7729_v33  ;;  %v2550_v42 = vrot.slane %v2446_v44, 7 }
 0x40e   : > { %9795 = vst [vmem:[#allocation78_spill] sm:$0xff] %v7722_v47 }
 0x40f   : > { %v7746_v58 = vsel %vm321_vm1, %v2549_v57, %v2550_v42  ;;  %v2486_v57 = vrot.slane %v2447_v60, 1 }
 0x410   : > { %9798 = vst [vmem:[#allocation18_spill] sm:$0xff] %v7746_v58 }
 0x411   : > { %5104 = vmatmul.msk.f32.gmra.mxu2 %vm575_vm2, %v7654_v23 }
 0x412   : > { %5172 = vmatmul.msk.f32.gmra.mxu0 %vm575_vm2, %v7697_v54 }
 0x414   : > { %5071 = vmatmul.msk.f32.gmra.mxu1 %vm575_vm2, %v7704_v9 }
 0x415   : > { %5138 = vmatmul.msk.f32.gmra.mxu3 %vm575_vm2, %v7707_v59  ;;  %v7732_v59 = vsel %vm929_vm4, %v3164_v61, %v3165_v24 }
 0x416   : > { %9797 = vst [vmem:[#allocation9_spill] sm:$0xff] %v7732_v59 }
 0x417   : > { %v7715_v27 = vpop.f32.mrf.mxu0 }
 0x419   : > { %v2857_v23 = vpop.f32.mrf.mxu1  ;;  %5105 = vmatmul.msk.f32.gmra.mxu2 %vm575_vm2, %v7677_v25  ;;  %v2660_v25 = vsel %vm321_vm1, %v2547_v12, %v2612_v8  ;;  %v2552_v8 = vrot.slane %v2447_v60, 7 }
 0x41a   : > { %5173 = vmatmul.msk.f32.gmra.mxu0 %vm575_vm2, %v7722_v47  ;;  %v2738_v55 = vrot.slane %v2660_v25, 1  ;;  %v3167_v61 = vrot.slane %v2660_v25, 2  ;;  %v2416_v25 = vmul.f32 %v7394_v5, %v7304_v63  ;;  %v3170_v63 = vrot.slane %v7746_v58, 2 }
 0x41c   : > { %5072 = vmatmul.msk.f32.gmra.mxu1 %vm575_vm2, %v7729_v33  ;;  %v3033_v40 = vpop.f32.mrf.mxu2  ;;  %v7756_v12 = vsel %vm929_vm4, %v3165_v24, %v3167_v61  ;;  %v2741_v24 = vrot.slane %v7746_v58, 1  ;;  %v2448_v61 = vmax.f32 %v2416_v25, 0.0 }
 0x41d   : > { %5139 = vmatmul.msk.f32.gmra.mxu3 %vm575_vm2, %v7732_v59  ;;  %v3034_v9 = vadd.f32 %v3033_v40, %v2857_v23  ;;  %v7753_v23 = vsel %vm497_vm3, %v2736_v50, %v2738_v55  ;;  %9800 = vst [vmem:[#allocation17_spill] sm:$0xff] %v7756_v12  ;;  %v2740_v50 = vrot.slane %v7722_v47, 1  ;;  %v2613_v59 = vrot.slane %v2446_v44, 5 }
 0x41e   : > { %9799 = vst [vmem:[#allocation14_spill] sm:$0xff] %v7753_v23  ;;  %v2417_v44 = vmul.f32 %v7394_v5, %v7311_v30 }
 0x41f   : > { %v7741_v43 = vpop.f32.mrf.mxu0 }
 0x420   : > { %v3286_v32 = vpop.f32.mrf.mxu3  ;;  %v2449_v26 = vmax.f32 %v2417_v44, 0.0 }
 0x421   : > { %v7743_v1 = vadd.f32 %v3286_v32, %v3034_v9  ;;  %v2860_v33 = vpop.f32.mrf.mxu1  ;;  %5106 = vmatmul.msk.f32.gmra.mxu2 %vm575_vm2, %v7697_v54  ;;  %v3169_v32 = vrot.slane %v7722_v47, 2 }
 0x422   : > { %5174 = vmatmul.msk.f32.gmra.mxu0 %vm575_vm2, %v7746_v58  ;;  %v2487_v44 = vrot.slane %v2449_v26, 1 }
 0x424   : > { %5073 = vmatmul.msk.f32.gmra.mxu1 %vm575_vm2, %v7753_v23  ;;  %v3036_v9 = vpop.f32.mrf.mxu2 }
 0x425   : > { %5140 = vmatmul.msk.f32.gmra.mxu3 %vm575_vm2, %v7756_v12  ;;  %v3037_v35 = vadd.f32 %v3036_v9, %v2860_v33  ;;  %v7773_v12 = vsel %vm321_vm1, %v2486_v57, %v2552_v8  ;;  %v7780_v33 = vsel %vm497_vm3, %v2740_v50, %v2741_v24  ;;  %v7783_v9 = vsel %vm929_vm4, %v3169_v32, %v3170_v63 }
 0x426   : > { %9801 = vst [vmem:[#allocation13_spill] sm:$0xff] %v7773_v12  ;;  %v2553_v57 = vrot.slane %v2448_v61, 7 }
 0x427   : > { %v7764_v40 = vpop.f32.mrf.mxu0  ;;  %9802 = vst [vmem:[#allocation16_spill] sm:$0xff] %v7780_v33 }
 0x428   : > { %v3289_v55 = vpop.f32.mrf.mxu3  ;;  %9803 = vst [vmem:[#allocation23_spill] sm:$0xff] %v7783_v9  ;;  %v7797_v30 = vsel %vm321_vm1, %v2552_v8, %v2553_v57 }
 0x429   : > { %v7770_v54 = vadd.f32 %v3289_v55, %v3037_v35  ;;  %v2863_v60 = vpop.f32.mrf.mxu1  ;;  %5107 = vmatmul.msk.f32.gmra.mxu2 %vm575_vm2, %v7722_v47  ;;  %v2661_v35 = vsel %vm321_vm1, %v2550_v42, %v2613_v59  ;;  %9804 = vst [vmem:[#allocation40_spill] sm:$0xff] %v7797_v30 }
 0x42a   : > { %5175 = vmatmul.msk.f32.gmra.mxu0 %vm575_vm2, %v7773_v12  ;;  %v2743_v23 = vrot.slane %v2661_v35, 1  ;;  %v3172_v32 = vrot.slane %v2661_v35, 2 }
 0x42c   : > { %5074 = vmatmul.msk.f32.gmra.mxu1 %vm575_vm2, %v7780_v33  ;;  %v3039_v25 = vpop.f32.mrf.mxu2  ;;  %v7804_v59 = vsel %vm497_vm3, %v2741_v24, %v2743_v23  ;;  %v7807_v42 = vsel %vm929_vm4, %v3170_v63, %v3172_v32  ;;  %v2745_v24 = vrot.slane %v7773_v12, 1  ;;  %v2746_v63 = vrot.slane %v7797_v30, 1 }
 0x42d   : > { %5141 = vmatmul.msk.f32.gmra.mxu3 %vm575_vm2, %v7783_v9  ;;  %v3040_v55 = vadd.f32 %v3039_v25, %v2863_v60  ;;  %9805 = vst [vmem:[#allocation36_spill] sm:$0xff] %v7804_v59  ;;  %v2418_v60 = vmul.f32 %v7394_v5, %v7318_v53  ;;  %v2555_v25 = vrot.slane %v2449_v26, 7  ;;  %v3175_v53 = vrot.slane %v7797_v30, 2 }
 0x42e   : > { %9806 = vst [vmem:[#allocation27_spill] sm:$0xff] %v7807_v42  ;;  %v2614_v9 = vrot.slane %v2448_v61, 5  ;;  %v2419_v61 = vmul.f32 %v7394_v5, %v7325_v4 }
 0x42f   : > { %v7792_v47 = vpop.f32.mrf.mxu0  ;;  %v2450_v32 = vmax.f32 %v2418_v60, 0.0 }
 0x430   : > { %v3292_v50 = vpop.f32.mrf.mxu3  ;;  %v2451_v2 = vmax.f32 %v2419_v61, 0.0 }
 0x431   : > { %v7794_v36 = vadd.f32 %v3292_v50, %v3040_v55  ;;  %v2866_v33 = vpop.f32.mrf.mxu1  ;;  %5108 = vmatmul.msk.f32.gmra.mxu2 %vm575_vm2, %v7746_v58  ;;  %v3174_v50 = vrot.slane %v7773_v12, 2 }
 0x432   : > { %5176 = vmatmul.msk.f32.gmra.mxu0 %vm575_vm2, %v7797_v30 }
 0x434   : > { %5075 = vmatmul.msk.f32.gmra.mxu1 %vm575_vm2, %v7804_v59  ;;  %v3042_v8 = vpop.f32.mrf.mxu2 }
 0x435   : > { %5142 = vmatmul.msk.f32.gmra.mxu3 %vm575_vm2, %v7807_v42  ;;  %v3043_v35 = vadd.f32 %v3042_v8, %v2866_v33  ;;  %v7824_v42 = vsel %vm321_vm1, %v2487_v44, %v2555_v25  ;;  %v7831_v33 = vsel %vm497_vm3, %v2745_v24, %v2746_v63  ;;  %v7834_v8 = vsel %vm929_vm4, %v3174_v50, %v3175_v53 }
 0x436   : > { %9807 = vst [vmem:[#allocation43_spill] sm:$0xff] %v7824_v42  ;;  %v2556_v44 = vrot.slane %v2450_v32, 7  ;;  %v2750_v61 = vrot.slane %v7824_v42, 1 }
 0x437   : > { %v7815_v55 = vpop.f32.mrf.mxu0  ;;  %9808 = vst [vmem:[#allocation35_spill] sm:$0xff] %v7831_v33 }
 0x438   : > { %v3295_v23 = vpop.f32.mrf.mxu3  ;;  %9809 = vst [vmem:[#allocation45_spill] sm:$0xff] %v7834_v8 }
 0x439   : > { %v7821_v58 = vadd.f32 %v3295_v23, %v3043_v35  ;;  %v2869_v26 = vpop.f32.mrf.mxu1  ;;  %5109 = vmatmul.msk.f32.gmra.mxu2 %vm575_vm2, %v7773_v12  ;;  %v2662_v35 = vsel %vm321_vm1, %v2553_v57, %v2614_v9  ;;  %v7845_v23 = vadd.f32 %v7715_v27, %v7743_v1  ;;  %v2488_v57 = vrot.slane %v2451_v2, 1 }
 0x43a   : > { %5177 = vmatmul.msk.f32.gmra.mxu0 %vm575_vm2, %v7824_v42  ;;  %v2748_v59 = vrot.slane %v2662_v35, 1  ;;  %v3177_v4 = vrot.slane %v2662_v35, 2 }
 0x43c   : > { %5076 = vmatmul.msk.f32.gmra.mxu1 %vm575_vm2, %v7831_v33  ;;  %v3045_v60 = vpop.f32.mrf.mxu2  ;;  %v7852_v33 = vsel %vm321_vm1, %v2555_v25, %v2556_v44  ;;  %v7859_v1 = vsel %vm497_vm3, %v2746_v63, %v2748_v59  ;;  %v7862_v27 = vsel %vm929_vm4, %v3175_v53, %v3177_v4  ;;  %v2558_v25 = vrot.slane %v2451_v2, 7 }
 0x43d   : > { %5143 = vmatmul.msk.f32.gmra.mxu3 %vm575_vm2, %v7834_v8  ;;  %v3046_v24 = vadd.f32 %v3045_v60, %v2869_v26  ;;  %9810 = vst [vmem:[#allocation44_spill] sm:$0xff] %v7852_v33  ;;  %v7872_v26 = vadd.f32 %v7741_v43, %v7770_v54  ;;  %v3179_v60 = vrot.slane %v7824_v42, 2  ;;  %v3180_v35 = vrot.slane %v7852_v33, 2 }
 0x43e   : > { %9811 = vst [vmem:[#allocation34_spill] sm:$0xff] %v7862_v27  ;;  %v2615_v4 = vrot.slane %v2450_v32, 5  ;;  %v7883_v2 = vsel %vm321_vm1, %v2488_v57, %v2558_v25  ;;  %v2421_v32 = vmul.f32 %v7394_v5, %v7339_v37 }
 0x43f   : > { %v7847_v50 = vpop.f32.mrf.mxu0  ;;  %9812 = vst [vmem:[#allocation22_spill] sm:$0xff] %v7872_v26 }
 0x440   : > { %v3298_v12 = vpop.f32.mrf.mxu3  ;;  %9813 = vst [vmem:[#allocation26_spill] sm:$0xff] %v7883_v2  ;;  %v2663_v57 = vsel %vm321_vm1, %v2556_v44, %v2615_v4  ;;  %v2422_v44 = vmul.f32 %v7394_v5, %v7346_v20 }
 0x441   : > { %v7849_v6 = vadd.f32 %v3298_v12, %v3046_v24  ;;  %v2872_v8 = vpop.f32.mrf.mxu1  ;;  %5110 = vmatmul.msk.f32.gmra.mxu2 %vm575_vm2, %v7797_v30  ;;  %v2420_v12 = vmul.f32 %v7394_v5, %v7332_v0  ;;  %v2751_v0 = vrot.slane %v7852_v33, 1  ;;  %v3182_v37 = vrot.slane %v2663_v57, 2 }
 0x442   : > { %5178 = vmatmul.msk.f32.gmra.mxu0 %vm575_vm2, %v7852_v33  ;;  %v2453_v30 = vmax.f32 %v2421_v32, 0.0  ;;  %v7931_v32 = vadd.f32 %v7792_v47, %v7821_v58 }
 0x443   : > { %v2452_v24 = vmax.f32 %v2420_v12, 0.0  ;;  %v7890_v54 = vsel %vm497_vm3, %v2750_v61, %v2751_v0 }
 0x444   : > { %5077 = vmatmul.msk.f32.gmra.mxu1 %vm575_vm2, %v7859_v1  ;;  %v3048_v9 = vpop.f32.mrf.mxu2  ;;  %9814 = vst [vmem:[#allocation25_spill] sm:$0xff] %v7890_v54  ;;  %v2489_v4 = vrot.slane %v2453_v30, 1 }
 0x445   : > { %5144 = vmatmul.msk.f32.gmra.mxu3 %vm575_vm2, %v7862_v27  ;;  %v3049_v59 = vadd.f32 %v3048_v9, %v2872_v8  ;;  %v7893_v8 = vsel %vm929_vm4, %v3179_v60, %v3180_v35  ;;  %v2559_v9 = vrot.slane %v2452_v24, 7  ;;  %9818 = vst [vmem:[#allocation41_spill] sm:$0xff] %v7931_v32 }
 0x446   : > { %9815 = vst [vmem:[#allocation32_spill] sm:$0xff] %v7893_v8 }
 0x447   : > { %v7874_v63 = vpop.f32.mrf.mxu0 }
 0x448   : > { %v3301_v53 = vpop.f32.mrf.mxu3 }
 0x449   : > { %v7880_v27 = vadd.f32 %v3301_v53, %v3049_v59  ;;  %v2875_v43 = vpop.f32.mrf.mxu1  ;;  %5111 = vmatmul.msk.f32.gmra.mxu2 %vm575_vm2, %v7824_v42  ;;  %v7904_v59 = vadd.f32 %v7764_v40, %v7794_v36  ;;  %v2753_v42 = vrot.slane %v2663_v57, 1  ;;  %v7921_v40 = vsel %vm929_vm4, %v3180_v35, %v3182_v37 }
 0x44a   : > { %5179 = vmatmul.msk.f32.gmra.mxu0 %vm575_vm2, %v7883_v2  ;;  %9817 = vst [vmem:[#allocation60_spill] sm:$0xff] %v7921_v40  ;;  %v3184_v57 = vrot.slane %v7883_v2, 2  ;;  %v2616_v37 = vrot.slane %v2452_v24, 5  ;;  %v2423_v24 = vmul.f32 %v7394_v5, %v7160_v51 }
 0x44b   : > { %v7918_v36 = vsel %vm497_vm3, %v2751_v0, %v2753_v42 }
 0x44c   : > { %5078 = vmatmul.msk.f32.gmra.mxu1 %vm575_vm2, %v7890_v54  ;;  %v3051_v12 = vpop.f32.mrf.mxu2  ;;  %v7911_v54 = vsel %vm321_vm1, %v2558_v25, %v2559_v9 }
 0x44d   : > { %5145 = vmatmul.msk.f32.gmra.mxu3 %vm575_vm2, %v7893_v8  ;;  %v3052_v53 = vadd.f32 %v3051_v12, %v2875_v43  ;;  %9816 = vst [vmem:[#allocation31_spill] sm:$0xff] %v7911_v54  ;;  %v2561_v43 = vrot.slane %v2453_v30, 7  ;;  %v2755_v12 = vrot.slane %v7883_v2, 1  ;;  %v2756_v20 = vrot.slane %v7911_v54, 1 }
 0x44f   : > { %v7906_v61 = vpop.f32.mrf.mxu0  ;;  %v7942_v30 = vsel %vm321_vm1, %v2489_v4, %v2561_v43  ;;  %v7949_v58 = vsel %vm497_vm3, %v2755_v12, %v2756_v20  ;;  %v2664_v4 = vsel %vm321_vm1, %v2559_v9, %v2616_v37  ;;  %v2424_v9 = vmul.f32 %v7394_v5, %v7163_v28 }
 0x450   : > { %v3304_v60 = vpop.f32.mrf.mxu3  ;;  %9819 = vst [vmem:[#allocation58_spill] sm:$0xff] %v7942_v30  ;;  %v3187_v51 = vrot.slane %v2664_v4, 2 }
 0x451   : > { %v7908_v26 = vadd.f32 %v3304_v60, %v3052_v53  ;;  %v2878_v8 = vpop.f32.mrf.mxu1  ;;  %5112 = vmatmul.msk.f32.gmra.mxu2 %vm575_vm2, %v7852_v33  ;;  %v3185_v53 = vrot.slane %v7911_v54, 2  ;;  %v2454_v60 = vmax.f32 %v2422_v44, 0.0  ;;  %9820 = vst [vmem:[#allocation21_spill] sm:$0xff] %v7949_v58  ;;  %v2455_v33 = vmax.f32 %v2423_v24, 0.0 }
 0x452   : > { %5180 = vmatmul.msk.f32.gmra.mxu0 %vm575_vm2, %v7911_v54  ;;  %v7990_v24 = vadd.f32 %v7847_v50, %v7880_v27 }
 0x453   : > { %v2490_v37 = vrot.slane %v2455_v33, 1 }
 0x454   : > { %5079 = vmatmul.msk.f32.gmra.mxu1 %vm575_vm2, %v7918_v36  ;;  %v3054_v25 = vpop.f32.mrf.mxu2  ;;  %9824 = vst [vmem:[#allocation62_spill] sm:$0xff] %v7990_v24 }
 0x455   : > { %5146 = vmatmul.msk.f32.gmra.mxu3 %vm575_vm2, %v7921_v40  ;;  %v3055_v42 = vadd.f32 %v3054_v25, %v2878_v8  ;;  %v7952_v8 = vsel %vm929_vm4, %v3184_v57, %v3185_v53  ;;  %v2562_v25 = vrot.slane %v2454_v60, 7 }
 0x456   : > { %9821 = vst [vmem:[#allocation59_spill] sm:$0xff] %v7952_v8 }
 0x457   : > { %v7933_v0 = vpop.f32.mrf.mxu0 }
 0x458   : > { %v3307_v35 = vpop.f32.mrf.mxu3 }
 0x459   : > { %v7939_v40 = vadd.f32 %v3307_v35, %v3055_v42  ;;  %v2881_v47 = vpop.f32.mrf.mxu1  ;;  %5113 = vmatmul.msk.f32.gmra.mxu2 %vm575_vm2, %v7883_v2  ;;  %v7963_v42 = vadd.f32 %v7815_v55, %v7849_v6  ;;  %v2758_v2 = vrot.slane %v2664_v4, 1  ;;  %v7980_v55 = vsel %vm929_vm4, %v3185_v53, %v3187_v51 }
 0x45a   : > { %5181 = vmatmul.msk.f32.gmra.mxu0 %vm575_vm2, %v7942_v30  ;;  %9823 = vst [vmem:[#allocation50_spill] sm:$0xff] %v7980_v55  ;;  %v3189_v4 = vrot.slane %v7942_v30, 2  ;;  %v2617_v51 = vrot.slane %v2454_v60, 5  ;;  %v2425_v60 = vmul.f32 %v7394_v5, %v7166_v19 }
 0x45b   : > { %v7977_v6 = vsel %vm497_vm3, %v2756_v20, %v2758_v2 }
 0x45c   : > { %5080 = vmatmul.msk.f32.gmra.mxu1 %vm575_vm2, %v7949_v58  ;;  %v3057_v44 = vpop.f32.mrf.mxu2  ;;  %v7970_v58 = vsel %vm321_vm1, %v2561_v43, %v2562_v25 }
 0x45d   : > { %5147 = vmatmul.msk.f32.gmra.mxu3 %vm575_vm2, %v7952_v8  ;;  %v3058_v35 = vadd.f32 %v3057_v44, %v2881_v47  ;;  %9822 = vst [vmem:[#allocation61_spill] sm:$0xff] %v7970_v58  ;;  %v2564_v47 = vrot.slane %v2455_v33, 7  ;;  %v2760_v44 = vrot.slane %v7942_v30, 1  ;;  %v2761_v28 = vrot.slane %v7970_v58, 1 }
 0x45f   : > { %v7965_v12 = vpop.f32.mrf.mxu0  ;;  %v8001_v33 = vsel %vm321_vm1, %v2490_v37, %v2564_v47  ;;  %v8008_v27 = vsel %vm497_vm3, %v2760_v44, %v2761_v28  ;;  %v2665_v37 = vsel %vm321_vm1, %v2562_v25, %v2617_v51  ;;  %v5223_v25 = vld [vmem:[%s9322_s3 + $0x14] sm:$0xf] }
 0x460   : > { %v3310_v57 = vpop.f32.mrf.mxu3  ;;  %9825 = vst [vmem:[#allocation57_spill] sm:$0xff] %v8001_v33  ;;  %v3192_v19 = vrot.slane %v2665_v37, 2  ;;  %5224 = vmatpush.msk.msra.mxu2 %vm636_vm0, %v5223_v25 }
 0x461   : > { %v7967_v32 = vadd.f32 %v3310_v57, %v3058_v35  ;;  %v2884_v8 = vpop.f32.mrf.mxu1  ;;  %5114 = vmatmul.msk.f32.gmra.mxu2 %vm575_vm2, %v7911_v54  ;;  %v3190_v35 = vrot.slane %v7970_v58, 2  ;;  %v2456_v57 = vmax.f32 %v2424_v9, 0.0  ;;  %9826 = vst [vmem:[#allocation20_spill] sm:$0xff] %v8008_v27  ;;  %v2457_v54 = vmax.f32 %v2425_v60, 0.0 }
 0x462   : > { %5182 = vmatmul.msk.f32.gmra.mxu0 %vm575_vm2, %v7970_v58 }
 0x463   : > { %v2491_v60 = vrot.slane %v2457_v54, 1 }
 0x464   : > { %5081 = vmatmul.msk.f32.gmra.mxu1 %vm575_vm2, %v7977_v6  ;;  %v3060_v43 = vpop.f32.mrf.mxu2 }
 0x465   : > { %5148 = vmatmul.msk.f32.gmra.mxu3 %vm575_vm2, %v7980_v55  ;;  %v3061_v2 = vadd.f32 %v3060_v43, %v2884_v8  ;;  %v8011_v8 = vsel %vm929_vm4, %v3189_v4, %v3190_v35  ;;  %v2565_v43 = vrot.slane %v2456_v57, 7 }
 0x466   : > { %9827 = vst [vmem:[#allocation63_spill] sm:$0xff] %v8011_v8 }
 0x467   : > { %v7992_v20 = vpop.f32.mrf.mxu0 }
 0x468   : > { %v3313_v53 = vpop.f32.mrf.mxu3 }
 0x469   : > { %v7998_v55 = vadd.f32 %v3313_v53, %v3061_v2  ;;  %v2887_v50 = vpop.f32.mrf.mxu1  ;;  %5115 = vmatmul.msk.f32.gmra.mxu2 %vm575_vm2, %v7942_v30  ;;  %v8022_v2 = vadd.f32 %v7874_v63, %v7908_v26  ;;  %v2763_v30 = vrot.slane %v2665_v37, 1  ;;  %v5257_v26 = vld [vmem:[%s9322_s3 + $0x18] sm:$0xf] }
 0x46a   : > { %5183 = vmatmul.msk.f32.gmra.mxu0 %vm575_vm2, %v8001_v33  ;;  %5258 = vmatpush.msk.msra.mxu3 %vm636_vm0, %v5257_v26  ;;  %v2618_v26 = vrot.slane %v2456_v57, 5 }
 0x46b   : > { %v8044_v63 = vsel %vm497_vm3, %v2761_v28, %v2763_v30 }
 0x46c   : > { %5082 = vmatmul.msk.f32.gmra.mxu1 %vm575_vm2, %v8008_v27  ;;  %v3063_v9 = vpop.f32.mrf.mxu2  ;;  %v8029_v27 = vsel %vm321_vm1, %v2564_v47, %v2565_v43  ;;  %v8047_v47 = vsel %vm929_vm4, %v3190_v35, %v3192_v19 }
 0x46d   : > { %5149 = vmatmul.msk.f32.gmra.mxu3 %vm575_vm2, %v8011_v8  ;;  %v3064_v53 = vadd.f32 %v3063_v9, %v2887_v50  ;;  %9828 = vst [vmem:[#allocation49_spill] sm:$0xff] %v8029_v27  ;;  %v2426_v50 = vmul.f32 %v7394_v5, %v7169_v56  ;;  %v2567_v9 = vrot.slane %v2457_v54, 7  ;;  %v2766_v56 = vrot.slane %v8029_v27, 1 }
 0x46e   : > { %9829 = vst [vmem:[#allocation37_spill] sm:$0xff] %v8047_v47  ;;  %v3194_v54 = vrot.slane %v8001_v33, 2  ;;  %v3195_v19 = vrot.slane %v8029_v27, 2 }
 0x46f   : > { %v8024_v44 = vpop.f32.mrf.mxu0  ;;  %v2458_v25 = vmax.f32 %v2426_v50, 0.0  ;;  %v2427_v50 = vmul.f32 %v7394_v5, %v7172_v34 }
 0x470   : > { %v3316_v4 = vpop.f32.mrf.mxu3 }
 0x471   : > { %v8026_v24 = vadd.f32 %v3316_v4, %v3064_v53  ;;  %v2890_v51 = vpop.f32.mrf.mxu1  ;;  %5116 = vmatmul.msk.f32.gmra.mxu2 %vm575_vm2, %v7970_v58  ;;  %v8057_v53 = vadd.f32 %v7906_v61, %v7939_v40  ;;  %v2765_v4 = vrot.slane %v8001_v33, 1  ;;  %v5291_v61 = vld [vmem:[%s9322_s3 + $0x1c] sm:$0xf]  ;;  %v2459_v58 = vmax.f32 %v2427_v50, 0.0 }
 0x472   : > { %5184 = vmatmul.msk.f32.gmra.mxu0 %vm575_vm2, %v8029_v27 }
 0x473   : > { %5292 = vmatpush.msk.msra.mxu0 %vm636_vm0, %v5291_v61  ;;  %v8079_v57 = vsel %vm497_vm3, %v2765_v4, %v2766_v56  ;;  %v2492_v50 = vrot.slane %v2459_v58, 1 }
 0x474   : > { %5083 = vmatmul.msk.f32.gmra.mxu1 %vm575_vm2, %v8044_v63  ;;  %v3066_v37 = vpop.f32.mrf.mxu2  ;;  %9831 = vst [vmem:[#allocation30_spill] sm:$0xff] %v8079_v57 }
 0x475   : > { %5150 = vmatmul.msk.f32.gmra.mxu3 %vm575_vm2, %v8047_v47  ;;  %v3067_v30 = vadd.f32 %v3066_v37, %v2890_v51  ;;  %v8068_v47 = vsel %vm321_vm1, %v2491_v60, %v2567_v9  ;;  %v8082_v51 = vsel %vm929_vm4, %v3194_v54, %v3195_v19  ;;  %v2568_v60 = vrot.slane %v2458_v25, 7  ;;  %v5325_v54 = vld [vmem:[%s9322_s3 + $0x20] sm:$0xf] }
 0x476   : > { %9830 = vst [vmem:[#allocation24_spill] sm:$0xff] %v8068_v47  ;;  %5326 = vmatpush.msk.msra.mxu1 %vm636_vm0, %v5325_v54 }
 0x477   : > { %v8059_v28 = vpop.f32.mrf.mxu0  ;;  %9832 = vst [vmem:[#allocation38_spill] sm:$0xff] %v8082_v51 }
 0x478   : > { %v3319_v35 = vpop.f32.mrf.mxu3 }
 0x479   : > { %v8065_v8 = vadd.f32 %v3319_v35, %v3067_v30  ;;  %v2893_v40 = vpop.f32.mrf.mxu1  ;;  %5117 = vmatmul.msk.f32.gmra.mxu2 %vm575_vm2, %v8001_v33  ;;  %v2666_v30 = vsel %vm321_vm1, %v2565_v43, %v2618_v26  ;;  %v8093_v35 = vadd.f32 %v7933_v0, %v7967_v32  ;;  %v8102_v43 = vsel %vm321_vm1, %v2567_v9, %v2568_v60 }
 0x47a   : > { %5185 = vmatmul.msk.f32.gmra.mxu0 %vm575_vm2, %v8068_v47  ;;  %v2768_v33 = vrot.slane %v2666_v30, 1 }
 0x47c   : > { %5084 = vmatmul.msk.f32.gmra.mxu1 %vm575_vm2, %v8079_v57  ;;  %v3069_v37 = vpop.f32.mrf.mxu2  ;;  %v3197_v57 = vrot.slane %v2666_v30, 2  ;;  %v8109_v32 = vsel %vm497_vm3, %v2766_v56, %v2768_v33  ;;  %v8124_v33 = vadd.f32 %v7965_v12, %v7998_v55  ;;  %v3199_v30 = vrot.slane %v8068_v47, 2 }
 0x47d   : > { %5151 = vmatmul.msk.f32.gmra.mxu3 %vm575_vm2, %v8082_v51  ;;  %v3070_v4 = vadd.f32 %v3069_v37, %v2893_v40  ;;  %v8116_v40 = vmul.f32 %v7394_v5, %v7175_v41  ;;  %v2570_v37 = vrot.slane %v2459_v58, 7  ;;  %v2770_v41 = vrot.slane %v8068_v47, 1 }
 0x47e   : > { %v8112_v0 = vsel %vm929_vm4, %v3195_v19, %v3197_v57  ;;  %v2771_v5 = vrot.slane %v8102_v43, 1 }
 0x47f   : > { %v8098_v34 = vpop.f32.mrf.mxu0  ;;  %9833 = vst [vmem:[#allocation52_spill] sm:$0xff] %v8112_v0  ;;  %v9516_v54 = vmax.f32 %v8116_v40, 0.0 }
 0x480   : > { %v3322_v61 = vpop.f32.mrf.mxu3  ;;  %v8141_v55 = vsel %vm497_vm3, %v2770_v41, %v2771_v5 }
 0x481   : > { %v3394_v51 = vadd.f32 %v3322_v61, %v3070_v4  ;;  %v2896_v26 = vpop.f32.mrf.mxu1  ;;  %5118 = vmatmul.msk.f32.gmra.mxu2 %vm575_vm2, %v8029_v27  ;;  %v3200_v4 = vrot.slane %v8102_v43, 2  ;;  %v2619_v61 = vrot.slane %v2458_v25, 5  ;;  %9835 = vst [vmem:[#allocation28_spill] sm:$0xff] %v8141_v55 }
 0x482   : > { %5186 = vmatmul.msk.f32.gmra.mxu0 %vm575_vm2, %v8102_v43 }
 0x484   : > { %5085 = vmatmul.msk.f32.gmra.mxu1 %vm575_vm2, %v8109_v32  ;;  %v3072_v9 = vpop.f32.mrf.mxu2 }
 0x485   : > { %5152 = vmatmul.msk.f32.gmra.mxu3 %vm575_vm2, %v8112_v0  ;;  %v3073_v56 = vadd.f32 %v3072_v9, %v2896_v26  ;;  %v8134_v0 = vsel %vm321_vm1, %v2492_v50, %v2570_v37  ;;  %v8144_v26 = vsel %vm929_vm4, %v3199_v30, %v3200_v4  ;;  %v8152_v9 = vrot.slane %v9516_v54, 7  ;;  %v9857_v54 = vld [vmem:[#allocation10_spill] sm:$0xff] }
 0x486   : > { %9834 = vst [vmem:[#allocation42_spill] sm:$0xff] %v8134_v0  ;;  %v2667_v50 = vsel %vm321_vm1, %v2568_v60, %v2619_v61 }
 0x487   : > { %v8126_v19 = vpop.f32.mrf.mxu0  ;;  %9836 = vst [vmem:[#allocation65_spill] sm:$0xff] %v8144_v26  ;;  %v8161_v27 = vsel %vm321_vm1, %v2570_v37, %v8152_v9  ;;  %v8179_v37 = vadd.f32 %v8024_v44, %v8065_v8  ;;  %v8190_v8 = vadd.f32 %v8059_v28, %v3394_v51 }
 0x488   : > { %v3325_v57 = vpop.f32.mrf.mxu3 }
 0x489   : > { %v3395_v58 = vadd.f32 %v3325_v57, %v3073_v56  ;;  %v2899_v12 = vpop.f32.mrf.mxu1  ;;  %5119 = vmatmul.msk.f32.gmra.mxu2 %vm575_vm2, %v8068_v47  ;;  %v8157_v56 = vadd.f32 %v7992_v20, %v8026_v24  ;;  %v3202_v47 = vrot.slane %v2667_v50, 2 }
 0x48a   : > { %5187 = vmatmul.msk.f32.gmra.mxu0 %vm575_vm2, %v8134_v0  ;;  %v2773_v0 = vrot.slane %v2667_v50, 1 }
 0x48b   : > { %v8171_v20 = vsel %vm929_vm4, %v3200_v4, %v3202_v47 }
 0x48c   : > { %5086 = vmatmul.msk.f32.gmra.mxu1 %vm575_vm2, %v8141_v55  ;;  %v3075_v25 = vpop.f32.mrf.mxu2  ;;  %v8168_v24 = vsel %vm497_vm3, %v2771_v5, %v2773_v0 }
 0x48d   : > { %5153 = vmatmul.msk.f32.gmra.mxu3 %vm575_vm2, %v8144_v26  ;;  %v3076_v57 = vadd.f32 %v3075_v25, %v2899_v12 }
 0x48f   : > { %v3486_v41 = vpop.f32.mrf.mxu0 }
 0x490   : > { %v3328_v30 = vpop.f32.mrf.mxu3 }
 0x491   : > { %v3396_v55 = vadd.f32 %v3328_v30, %v3076_v57  ;;  %v2902_v26 = vpop.f32.mrf.mxu1  ;;  %5120 = vmatmul.msk.f32.gmra.mxu2 %vm575_vm2, %v8102_v43 }
 0x492   : > { %5188 = vmatmul.msk.f32.gmra.mxu0 %vm575_vm2, %v8161_v27 }
 0x494   : > { %5087 = vmatmul.msk.f32.gmra.mxu1 %vm575_vm2, %v8168_v24  ;;  %v3078_v60 = vpop.f32.mrf.mxu2 }
 0x495   : > { %5154 = vmatmul.msk.f32.gmra.mxu3 %vm575_vm2, %v8171_v20  ;;  %v3079_v61 = vadd.f32 %v3078_v60, %v2902_v26 }
 0x497   : > { %v3489_v12 = vpop.f32.mrf.mxu0 }
 0x498   : > { %v3331_v25 = vpop.f32.mrf.mxu3 }
 0x499   : > { %v3397_v50 = vadd.f32 %v3331_v25, %v3079_v61  ;;  %v2905_v0 = vpop.f32.mrf.mxu1  ;;  %5225 = vmatmul.msk.f32.vlgmr.msra.gmra.mxu2 %vm575_vm2, %v7450_v22 }
 0x49a   : > { %5293 = vmatmul.msk.f32.vlgmr.msra.gmra.mxu0 %vm575_vm2, %v7419_v3 }
 0x49c   : > { %v3081_v47 = vpop.f32.mrf.mxu2  ;;  %5191 = vmatmul.msk.f32.vlgmr.msrb.gmra.mxu1 %vm575_vm2, %v7447_v16 }
 0x49d   : > { %5259 = vmatmul.msk.f32.vlgmr.msra.gmra.mxu3 %vm575_vm2, %v7408_v45  ;;  %v3082_v44 = vadd.f32 %v3081_v47, %v2905_v0  ;;  %v8201_v45 = vadd.f32 %v8098_v34, %v3395_v58  ;;  %v8212_v34 = vadd.f32 %v8126_v19, %v3396_v55  ;;  %v8222_v19 = vadd.f32 %v3486_v41, %v3397_v50 }
 0x49f   : > { %v3492_v5 = vpop.f32.mrf.mxu0 }
 0x4a0   : > { %v3334_v4 = vpop.f32.mrf.mxu3 }
 0x4a1   : > { %v3398_v26 = vadd.f32 %v3334_v4, %v3082_v44  ;;  %v2908_v57 = vpop.f32.mrf.mxu1  ;;  %5226 = vmatmul.msk.f32.gmra.mxu2 %vm575_vm2, %v7466_v18 }
 0x4a2   : > { %5294 = vmatmul.msk.f32.gmra.mxu0 %vm575_vm2, %v7434_v21 }
 0x4a3   : > { %v8232_v50 = vadd.f32 %v3489_v12, %v3398_v26 }
 0x4a4   : > { %v3084_v22 = vpop.f32.mrf.mxu2  ;;  %5192 = vmatmul.msk.f32.gmra.mxu1 %vm575_vm2, %v7463_v46 }
 0x4a5   : > { %5260 = vmatmul.msk.f32.gmra.mxu3 %vm575_vm2, %v7405_v38  ;;  %v3085_v16 = vadd.f32 %v3084_v22, %v2908_v57 }
 0x4a7   : > { %v3495_v28 = vpop.f32.mrf.mxu0 }
 0x4a8   : > { %v3337_v51 = vpop.f32.mrf.mxu3 }
 0x4a9   : > { %v3399_v30 = vadd.f32 %v3337_v51, %v3085_v16  ;;  %v2911_v60 = vpop.f32.mrf.mxu1  ;;  %5227 = vmatmul.msk.f32.gmra.mxu2 %vm575_vm2, %v7422_v29 }
 0x4aa   : > { %5295 = vmatmul.msk.f32.gmra.mxu0 %vm575_vm2, %v7512_v10 }
 0x4ab   : > { %v8242_v12 = vadd.f32 %v3492_v5, %v3399_v30 }
 0x4ac   : > { %v3087_v18 = vpop.f32.mrf.mxu2  ;;  %5193 = vmatmul.msk.f32.gmra.mxu1 %vm575_vm2, %v7419_v3 }
 0x4ad   : > { %5261 = vmatmul.msk.f32.gmra.mxu3 %vm575_vm2, %v7475_v13  ;;  %v3088_v38 = vadd.f32 %v3087_v18, %v2911_v60 }
 0x4af   : > { %v3498_v46 = vpop.f32.mrf.mxu0 }
 0x4b0   : > { %v3340_v58 = vpop.f32.mrf.mxu3 }
 0x4b1   : > { %v3400_v61 = vadd.f32 %v3340_v58, %v3088_v38  ;;  %v2914_v25 = vpop.f32.mrf.mxu1  ;;  %5228 = vmatmul.msk.f32.gmra.mxu2 %vm575_vm2, %v7437_v48 }
 0x4b2   : > { %5296 = vmatmul.msk.f32.gmra.mxu0 %vm575_vm2, %v7532_v62 }
 0x4b3   : > { %v8252_v5 = vadd.f32 %v3495_v28, %v3400_v61 }
 0x4b4   : > { %v3090_v0 = vpop.f32.mrf.mxu2  ;;  %5194 = vmatmul.msk.f32.gmra.mxu1 %vm575_vm2, %v7434_v21 }
 0x4b5   : > { %5262 = vmatmul.msk.f32.gmra.mxu3 %vm575_vm2, %v7488_v49  ;;  %v3091_v3 = vadd.f32 %v3090_v0, %v2914_v25  ;;  %v9838_v0 = vld [vmem:[#allocation70_spill] sm:$0xff] }
 0x4b7   : > { %v3501_v13 = vpop.f32.mrf.mxu0 }
 0x4b8   : > { %v3343_v55 = vpop.f32.mrf.mxu3 }
 0x4b9   : > { %v3401_v47 = vadd.f32 %v3343_v55, %v3091_v3  ;;  %v2917_v44 = vpop.f32.mrf.mxu1  ;;  %5229 = vmatmul.msk.f32.gmra.mxu2 %vm575_vm2, %v7515_v31  ;;  %v9839_v3 = vld [vmem:[#allocation72_spill] sm:$0xff] }
 0x4ba   : > { %5297 = vmatmul.msk.f32.gmra.mxu0 %vm575_vm2, %v7555_v11 }
 0x4bb   : > { %v8262_v28 = vadd.f32 %v3498_v46, %v3401_v47 }
 0x4bc   : > { %v3093_v4 = vpop.f32.mrf.mxu2  ;;  %5195 = vmatmul.msk.f32.gmra.mxu1 %vm575_vm2, %v7512_v10 }
 0x4bd   : > { %5263 = vmatmul.msk.f32.gmra.mxu3 %vm575_vm2, %v7505_v15  ;;  %v3094_v21 = vadd.f32 %v3093_v4, %v2917_v44 }
 0x4bf   : > { %v3504_v49 = vpop.f32.mrf.mxu0 }
 0x4c0   : > { %v3346_v41 = vpop.f32.mrf.mxu3 }
 0x4c1   : > { %v3402_v57 = vadd.f32 %v3346_v41, %v3094_v21  ;;  %v2920_v22 = vpop.f32.mrf.mxu1  ;;  %5230 = vmatmul.msk.f32.gmra.mxu2 %vm575_vm2, %v7535_v17 }
 0x4c2   : > { %5298 = vmatmul.msk.f32.gmra.mxu0 %vm575_vm2, %v7575_v14 }
 0x4c3   : > { %v8272_v46 = vadd.f32 %v3501_v13, %v3402_v57 }
 0x4c4   : > { %v3096_v16 = vpop.f32.mrf.mxu2  ;;  %5196 = vmatmul.msk.f32.gmra.mxu1 %vm575_vm2, %v7532_v62  ;;  %v9837_v62 = vld [vmem:[#allocation51_spill] sm:$0xff] }
 0x4c5   : > { %5264 = vmatmul.msk.f32.gmra.mxu3 %vm575_vm2, %v7525_v7  ;;  %v3097_v15 = vadd.f32 %v3096_v16, %v2920_v22  ;;  %v9841_v22 = vld [vmem:[#allocation53_spill] sm:$0xff]  ;;  %v9842_v16 = vld [vmem:[#allocation3_spill] sm:$0xff] }
 0x4c7   : > { %v3507_v10 = vpop.f32.mrf.mxu0 }
 0x4c8   : > { %v3349_v51 = vpop.f32.mrf.mxu3 }
 0x4c9   : > { %v3403_v26 = vadd.f32 %v3349_v51, %v3097_v15  ;;  %v2923_v60 = vpop.f32.mrf.mxu1  ;;  %5231 = vmatmul.msk.f32.gmra.mxu2 %vm575_vm2, %v7558_v39 }
 0x4ca   : > { %5299 = vmatmul.msk.f32.gmra.mxu0 %vm575_vm2, %v7598_v52 }
 0x4cb   : > { %v8282_v13 = vadd.f32 %v3504_v49, %v3403_v26 }
 0x4cc   : > { %v3099_v18 = vpop.f32.mrf.mxu2  ;;  %5197 = vmatmul.msk.f32.gmra.mxu1 %vm575_vm2, %v7555_v11  ;;  %v9840_v11 = vld [vmem:[#allocation48_spill] sm:$0xff] }
 0x4cd   : > { %5265 = vmatmul.msk.f32.gmra.mxu3 %vm575_vm2, %v9837_v62  ;;  %v3100_v7 = vadd.f32 %v3099_v18, %v2923_v60  ;;  %9847 = vst [vmem:[#allocation4_spill] sm:$0xff] %v8282_v13 }
 0x4cf   : > { %v3510_v38 = vpop.f32.mrf.mxu0 }
 0x4d0   : > { %v3352_v58 = vpop.f32.mrf.mxu3 }
 0x4d1   : > { %v3404_v30 = vadd.f32 %v3352_v58, %v3100_v7  ;;  %v2926_v25 = vpop.f32.mrf.mxu1  ;;  %5232 = vmatmul.msk.f32.gmra.mxu2 %vm575_vm2, %v9838_v0  ;;  %v9844_v7 = vld [vmem:[#allocation69_spill] sm:$0xff]  ;;  %v9845_v58 = vld [vmem:[#allocation6_spill] sm:$0xff] }
 0x4d2   : > { %5300 = vmatmul.msk.f32.gmra.mxu0 %vm575_vm2, %v9839_v3 }
 0x4d3   : > { %v8292_v49 = vadd.f32 %v3507_v10, %v3404_v30 }
 0x4d4   : > { %v3102_v55 = vpop.f32.mrf.mxu2  ;;  %5198 = vmatmul.msk.f32.gmra.mxu1 %vm575_vm2, %v7575_v14  ;;  %v9843_v14 = vld [vmem:[#allocation67_spill] sm:$0xff] }
 0x4d5   : > { %5266 = vmatmul.msk.f32.gmra.mxu3 %vm575_vm2, %v9840_v11  ;;  %v3103_v44 = vadd.f32 %v3102_v55, %v2926_v25  ;;  %9851 = vst [vmem:[#allocation33_spill] sm:$0xff] %v8292_v49 }
 0x4d7   : > { %v3513_v4 = vpop.f32.mrf.mxu0 }
 0x4d8   : > { %v3355_v21 = vpop.f32.mrf.mxu3 }
 0x4d9   : > { %v3405_v61 = vadd.f32 %v3355_v21, %v3103_v44  ;;  %v2929_v41 = vpop.f32.mrf.mxu1  ;;  %5233 = vmatmul.msk.f32.gmra.mxu2 %vm575_vm2, %v9841_v22 }
 0x4da   : > { %5301 = vmatmul.msk.f32.gmra.mxu0 %vm575_vm2, %v9842_v16 }
 0x4db   : > { %v8302_v10 = vadd.f32 %v3510_v38, %v3405_v61 }
 0x4dc   : > { %v3105_v15 = vpop.f32.mrf.mxu2  ;;  %5199 = vmatmul.msk.f32.gmra.mxu1 %vm575_vm2, %v7598_v52  ;;  %v9846_v52 = vld [vmem:[#allocation47_spill] sm:$0xff] }
 0x4dd   : > { %5267 = vmatmul.msk.f32.gmra.mxu3 %vm575_vm2, %v9843_v14  ;;  %v3106_v51 = vadd.f32 %v3105_v15, %v2929_v41  ;;  %v9848_v41 = vld [vmem:[#allocation74_spill] sm:$0xff]  ;;  %v9849_v15 = vld [vmem:[#allocation8_spill] sm:$0xff]  ;;  %9855 = vst [vmem:[#allocation64_spill] sm:$0xff] %v8302_v10 }
 0x4de   : > { %v9861_v10 = vld [vmem:[#allocation14_spill] sm:$0xff] }
 0x4df   : > { %v3516_v60 = vpop.f32.mrf.mxu0 }
 0x4e0   : > { %v3358_v18 = vpop.f32.mrf.mxu3 }
 0x4e1   : > { %v3406_v47 = vadd.f32 %v3358_v18, %v3106_v51  ;;  %v2932_v62 = vpop.f32.mrf.mxu1  ;;  %5234 = vmatmul.msk.f32.gmra.mxu2 %vm575_vm2, %v9844_v7 }
 0x4e2   : > { %5302 = vmatmul.msk.f32.gmra.mxu0 %vm575_vm2, %v9845_v58 }
 0x4e3   : > { %v8312_v38 = vadd.f32 %v3513_v4, %v3406_v47 }
 0x4e4   : > { %v3108_v25 = vpop.f32.mrf.mxu2  ;;  %5200 = vmatmul.msk.f32.gmra.mxu1 %vm575_vm2, %v9839_v3  ;;  %v9850_v3 = vld [vmem:[#allocation5_spill] sm:$0xff] }
 0x4e5   : > { %5268 = vmatmul.msk.f32.gmra.mxu3 %vm575_vm2, %v9846_v52  ;;  %v3109_v55 = vadd.f32 %v3108_v25, %v2932_v62  ;;  %v9852_v52 = vld [vmem:[#allocation2_spill] sm:$0xff]  ;;  %9859 = vst [vmem:[#allocation54_spill] sm:$0xff] %v8312_v38  ;;  %v9865_v38 = vld [vmem:[#allocation16_spill] sm:$0xff] }
 0x4e7   : > { %v3519_v11 = vpop.f32.mrf.mxu0 }
 0x4e8   : > { %v3361_v44 = vpop.f32.mrf.mxu3 }
 0x4e9   : > { %v3407_v57 = vadd.f32 %v3361_v44, %v3109_v55  ;;  %v2935_v21 = vpop.f32.mrf.mxu1  ;;  %5235 = vmatmul.msk.f32.gmra.mxu2 %vm575_vm2, %v9848_v41  ;;  %v9853_v55 = vld [vmem:[#allocation76_spill] sm:$0xff] }
 0x4ea   : > { %5303 = vmatmul.msk.f32.gmra.mxu0 %vm575_vm2, %v9849_v15 }
 0x4eb   : > { %v8322_v4 = vadd.f32 %v3516_v60, %v3407_v57 }
 0x4ec   : > { %v3111_v14 = vpop.f32.mrf.mxu2  ;;  %5201 = vmatmul.msk.f32.gmra.mxu1 %vm575_vm2, %v9842_v16  ;;  %v9854_v16 = vld [vmem:[#allocation71_spill] sm:$0xff] }
 0x4ed   : > { %5269 = vmatmul.msk.f32.gmra.mxu3 %vm575_vm2, %v9850_v3  ;;  %v3112_v51 = vadd.f32 %v3111_v14, %v2935_v21  ;;  %9863 = vst [vmem:[#allocation29_spill] sm:$0xff] %v8322_v4  ;;  %v9869_v4 = vld [vmem:[#allocation36_spill] sm:$0xff] }
 0x4ef   : > { %v3522_v18 = vpop.f32.mrf.mxu0 }
 0x4f0   : > { %v3364_v62 = vpop.f32.mrf.mxu3 }
 0x4f1   : > { %v3408_v26 = vadd.f32 %v3364_v62, %v3112_v51  ;;  %v2938_v25 = vpop.f32.mrf.mxu1  ;;  %5236 = vmatmul.msk.f32.gmra.mxu2 %vm575_vm2, %v9852_v52  ;;  %v9856_v62 = vld [vmem:[#allocation75_spill] sm:$0xff] }
 0x4f2   : > { %5304 = vmatmul.msk.f32.gmra.mxu0 %vm575_vm2, %v9853_v55 }
 0x4f3   : > { %v8332_v60 = vadd.f32 %v3519_v11, %v3408_v26 }
 0x4f4   : > { %v3114_v44 = vpop.f32.mrf.mxu2  ;;  %5202 = vmatmul.msk.f32.gmra.mxu1 %vm575_vm2, %v9845_v58  ;;  %v9858_v58 = vld [vmem:[#allocation73_spill] sm:$0xff] }
 0x4f5   : > { %5270 = vmatmul.msk.f32.gmra.mxu3 %vm575_vm2, %v9854_v16  ;;  %v3115_v21 = vadd.f32 %v3114_v44, %v2938_v25  ;;  %9867 = vst [vmem:[#allocation39_spill] sm:$0xff] %v8332_v60  ;;  %v9873_v60 = vld [vmem:[#allocation35_spill] sm:$0xff] }
 0x4f7   : > { %v3525_v14 = vpop.f32.mrf.mxu0 }
 0x4f8   : > { %v3367_v3 = vpop.f32.mrf.mxu3 }
 0x4f9   : > { %v3409_v30 = vadd.f32 %v3367_v3, %v3115_v21  ;;  %v2941_v51 = vpop.f32.mrf.mxu1  ;;  %5237 = vmatmul.msk.f32.gmra.mxu2 %vm575_vm2, %v9856_v62  ;;  %v9860_v3 = vld [vmem:[#allocation77_spill] sm:$0xff] }
 0x4fa   : > { %5305 = vmatmul.msk.f32.gmra.mxu0 %vm575_vm2, %v9857_v54 }
 0x4fb   : > { %v8342_v11 = vadd.f32 %v3522_v18, %v3409_v30 }
 0x4fc   : > { %v3117_v49 = vpop.f32.mrf.mxu2  ;;  %5203 = vmatmul.msk.f32.gmra.mxu1 %vm575_vm2, %v9849_v15  ;;  %v9862_v15 = vld [vmem:[#allocation7_spill] sm:$0xff] }
 0x4fd   : > { %5271 = vmatmul.msk.f32.gmra.mxu3 %vm575_vm2, %v9858_v58  ;;  %v3118_v25 = vadd.f32 %v3117_v49, %v2941_v51  ;;  %9871 = vst [vmem:[#allocation55_spill] sm:$0xff] %v8342_v11  ;;  %v9876_v11 = vld [vmem:[#allocation27_spill] sm:$0xff] }
 0x4ff   : > { %v3528_v44 = vpop.f32.mrf.mxu0 }
 0x500   : > { %v3370_v16 = vpop.f32.mrf.mxu3 }
 0x501   : > { %v3410_v61 = vadd.f32 %v3370_v16, %v3118_v25  ;;  %v2944_v21 = vpop.f32.mrf.mxu1  ;;  %5238 = vmatmul.msk.f32.gmra.mxu2 %vm575_vm2, %v9860_v3  ;;  %v9864_v16 = vld [vmem:[#allocation9_spill] sm:$0xff] }
 0x502   : > { %5306 = vmatmul.msk.f32.gmra.mxu0 %vm575_vm2, %v9861_v10 }
 0x503   : > { %v8353_v30 = vadd.f32 %v3525_v14, %v3410_v61 }
 0x504   : > { %v3120_v13 = vpop.f32.mrf.mxu2  ;;  %5204 = vmatmul.msk.f32.gmra.mxu1 %vm575_vm2, %v9853_v55  ;;  %v9866_v55 = vld [vmem:[#allocation78_spill] sm:$0xff] }
 0x505   : > { %5272 = vmatmul.msk.f32.gmra.mxu3 %vm575_vm2, %v9862_v15  ;;  %v3121_v49 = vadd.f32 %v3120_v13, %v2944_v21  ;;  %9875 = vst [vmem:[#allocation15_spill] sm:$0xff] %v8353_v30  ;;  %v9881_v30 = vld [vmem:[#allocation25_spill] sm:$0xff] }
 0x507   : > { %v3531_v51 = vpop.f32.mrf.mxu0 }
 0x508   : > { %v3373_v58 = vpop.f32.mrf.mxu3 }
 0x509   : > { %v3411_v47 = vadd.f32 %v3373_v58, %v3121_v49  ;;  %v2947_v25 = vpop.f32.mrf.mxu1  ;;  %5239 = vmatmul.msk.f32.gmra.mxu2 %vm575_vm2, %v9864_v16  ;;  %v9868_v58 = vld [vmem:[#allocation17_spill] sm:$0xff] }
 0x50a   : > { %5307 = vmatmul.msk.f32.gmra.mxu0 %vm575_vm2, %v9865_v38 }
 0x50c   : > { %v3123_v3 = vpop.f32.mrf.mxu2  ;;  %5205 = vmatmul.msk.f32.gmra.mxu1 %vm575_vm2, %v9857_v54  ;;  %v9870_v54 = vld [vmem:[#allocation18_spill] sm:$0xff] }
 0x50d   : > { %5273 = vmatmul.msk.f32.gmra.mxu3 %vm575_vm2, %v9866_v55  ;;  %v3124_v13 = vadd.f32 %v3123_v3, %v2947_v25 }
 0x50f   : > { %v3534_v21 = vpop.f32.mrf.mxu0 }
 0x510   : > { %v3376_v15 = vpop.f32.mrf.mxu3 }
 0x511   : > { %v3412_v57 = vadd.f32 %v3376_v15, %v3124_v13  ;;  %v2950_v49 = vpop.f32.mrf.mxu1  ;;  %5240 = vmatmul.msk.f32.gmra.mxu2 %vm575_vm2, %v9868_v58  ;;  %v9872_v15 = vld [vmem:[#allocation23_spill] sm:$0xff] }
 0x512   : > { %5308 = vmatmul.msk.f32.gmra.mxu0 %vm575_vm2, %v9869_v4 }
 0x514   : > { %v3126_v16 = vpop.f32.mrf.mxu2  ;;  %5206 = vmatmul.msk.f32.gmra.mxu1 %vm575_vm2, %v9861_v10 }
 0x515   : > { %5274 = vmatmul.msk.f32.gmra.mxu3 %vm575_vm2, %v9870_v54  ;;  %v3127_v3 = vadd.f32 %v3126_v16, %v2950_v49  ;;  %v9874_v54 = vld [vmem:[#allocation13_spill] sm:$0xff] }
 0x517   : > { %v4060_v25 = vpop.f32.mrf.mxu0 }
 0x518   : > { %v3379_v55 = vpop.f32.mrf.mxu3 }
 0x519   : > { %v3413_v26 = vadd.f32 %v3379_v55, %v3127_v3  ;;  %v3601_v13 = vpop.f32.mrf.mxu1  ;;  %5241 = vmatmul.msk.f32.gmra.mxu2 %vm575_vm2, %v9872_v15 }
 0x51a   : > { %5309 = vmatmul.msk.f32.gmra.mxu0 %vm575_vm2, %v9873_v60  ;;  %v3697_v58 = vadd.f32 %v3601_v13, %v7845_v23  ;;  %v9877_v23 = vld [vmem:[#allocation22_spill] sm:$0xff] }
 0x51c   : > { %5207 = vmatmul.msk.f32.gmra.mxu1 %vm575_vm2, %v9865_v38  ;;  %v3760_v10 = vpop.f32.mrf.mxu2 }
 0x51d   : > { %5275 = vmatmul.msk.f32.gmra.mxu3 %vm575_vm2, %v9874_v54  ;;  %v3856_v16 = vadd.f32 %v3760_v10, %v3697_v58  ;;  %v9878_v54 = vld [vmem:[#allocation40_spill] sm:$0xff]  ;;  %v8364_v58 = vadd.f32 %v3528_v44, %v3411_v47 }
 0x51f   : > { %v4063_v49 = vpop.f32.mrf.mxu0  ;;  %9879 = vst [vmem:[#allocation12_spill] sm:$0xff] %v8364_v58 }
 0x520   : > { %v3910_v18 = vpop.f32.mrf.mxu3 }
 0x521   : > { %v4006_v3 = vadd.f32 %v3910_v18, %v3856_v16  ;;  %v3604_v55 = vpop.f32.mrf.mxu1  ;;  %5242 = vmatmul.msk.f32.gmra.mxu2 %vm575_vm2, %v9876_v11  ;;  %v9880_v18 = vld [vmem:[#allocation45_spill] sm:$0xff] }
 0x522   : > { %5310 = vmatmul.msk.f32.gmra.mxu0 %vm575_vm2, %v7859_v1  ;;  %v3698_v13 = vadd.f32 %v3604_v55, %v9877_v23 }
 0x524   : > { %5208 = vmatmul.msk.f32.gmra.mxu1 %vm575_vm2, %v9869_v4  ;;  %v3763_v38 = vpop.f32.mrf.mxu2 }
 0x525   : > { %5276 = vmatmul.msk.f32.gmra.mxu3 %vm575_vm2, %v9878_v54  ;;  %v3857_v14 = vadd.f32 %v3763_v38, %v3698_v13  ;;  %v9882_v54 = vld [vmem:[#allocation43_spill] sm:$0xff]  ;;  %v8375_v13 = vadd.f32 %v3531_v51, %v3412_v57 }
 0x527   : > { %v4066_v55 = vpop.f32.mrf.mxu0  ;;  %9883 = vst [vmem:[#allocation56_spill] sm:$0xff] %v8375_v13  ;;  %v9889_v13 = vld [vmem:[#allocation21_spill] sm:$0xff] }
 0x528   : > { %v3913_v61 = vpop.f32.mrf.mxu3 }
 0x529   : > { %v4007_v10 = vadd.f32 %v3913_v61, %v3857_v14  ;;  %v3607_v16 = vpop.f32.mrf.mxu1  ;;  %5243 = vmatmul.msk.f32.gmra.mxu2 %vm575_vm2, %v9880_v18  ;;  %v9884_v61 = vld [vmem:[#allocation34_spill] sm:$0xff] }
 0x52a   : > { %5311 = vmatmul.msk.f32.gmra.mxu0 %vm575_vm2, %v9881_v30  ;;  %v3699_v23 = vadd.f32 %v3607_v16, %v7904_v59  ;;  %v9885_v59 = vld [vmem:[#allocation41_spill] sm:$0xff] }
 0x52c   : > { %5209 = vmatmul.msk.f32.gmra.mxu1 %vm575_vm2, %v9873_v60  ;;  %v3766_v4 = vpop.f32.mrf.mxu2 }
 0x52d   : > { %5277 = vmatmul.msk.f32.gmra.mxu3 %vm575_vm2, %v9882_v54  ;;  %v3858_v44 = vadd.f32 %v3766_v4, %v3699_v23  ;;  %v9886_v54 = vld [vmem:[#allocation44_spill] sm:$0xff]  ;;  %v8386_v23 = vadd.f32 %v3534_v21, %v3413_v26 }
 0x52f   : > { %v4069_v58 = vpop.f32.mrf.mxu0  ;;  %9887 = vst [vmem:[#allocation19_spill] sm:$0xff] %v8386_v23  ;;  %v9895_v23 = vld [vmem:[#allocation59_spill] sm:$0xff] }
 0x530   : > { %v3916_v47 = vpop.f32.mrf.mxu3 }
 0x531   : > { %v4008_v38 = vadd.f32 %v3916_v47, %v3858_v44  ;;  %v3610_v14 = vpop.f32.mrf.mxu1  ;;  %5244 = vmatmul.msk.f32.gmra.mxu2 %vm575_vm2, %v9884_v61  ;;  %v9888_v47 = vld [vmem:[#allocation32_spill] sm:$0xff] }
 0x532   : > { %5312 = vmatmul.msk.f32.gmra.mxu0 %vm575_vm2, %v7918_v36  ;;  %v3700_v16 = vadd.f32 %v3610_v14, %v9885_v59  ;;  %v9890_v59 = vld [vmem:[#allocation26_spill] sm:$0xff] }
 0x534   : > { %5210 = vmatmul.msk.f32.gmra.mxu1 %vm575_vm2, %v7859_v1  ;;  %v3769_v60 = vpop.f32.mrf.mxu2 }
 0x535   : > { %5278 = vmatmul.msk.f32.gmra.mxu3 %vm575_vm2, %v9886_v54  ;;  %v3859_v51 = vadd.f32 %v3769_v60, %v3700_v16  ;;  %v8397_v60 = vadd.f32 %v4060_v25, %v4006_v3  ;;  %v8408_v3 = vadd.f32 %v4063_v49, %v4007_v10 }
 0x537   : > { %v4072_v21 = vpop.f32.mrf.mxu0  ;;  %9891 = vst [vmem:[#allocation11_spill] sm:$0xff] %v8397_v60  ;;  %v9896_v60 = vld [vmem:[#allocation20_spill] sm:$0xff] }
 0x538   : > { %v3919_v57 = vpop.f32.mrf.mxu3 }
 0x539   : > { %v4009_v4 = vadd.f32 %v3919_v57, %v3859_v51  ;;  %v3613_v44 = vpop.f32.mrf.mxu1  ;;  %5245 = vmatmul.msk.f32.gmra.mxu2 %vm575_vm2, %v9888_v47  ;;  %v9892_v57 = vld [vmem:[#allocation60_spill] sm:$0xff] }
 0x53a   : > { %5313 = vmatmul.msk.f32.gmra.mxu0 %vm575_vm2, %v9889_v13  ;;  %v3701_v14 = vadd.f32 %v3613_v44, %v7963_v42  ;;  %v9893_v42 = vld [vmem:[#allocation62_spill] sm:$0xff] }
 0x53c   : > { %5211 = vmatmul.msk.f32.gmra.mxu1 %vm575_vm2, %v9881_v30  ;;  %v3772_v1 = vpop.f32.mrf.mxu2 }
 0x53d   : > { %5279 = vmatmul.msk.f32.gmra.mxu3 %vm575_vm2, %v9890_v59  ;;  %v3860_v16 = vadd.f32 %v3772_v1, %v3701_v14  ;;  %v9894_v59 = vld [vmem:[#allocation31_spill] sm:$0xff] }
 0x53f   : > { %v4075_v1 = vpop.f32.mrf.mxu0 }
 0x540   : > { %v3922_v26 = vpop.f32.mrf.mxu3 }
 0x541   : > { %v4010_v54 = vadd.f32 %v3922_v26, %v3860_v16  ;;  %v3616_v51 = vpop.f32.mrf.mxu1  ;;  %5246 = vmatmul.msk.f32.gmra.mxu2 %vm575_vm2, %v9892_v57 }
 0x542   : > { %5314 = vmatmul.msk.f32.gmra.mxu0 %vm575_vm2, %v7977_v6  ;;  %v3702_v44 = vadd.f32 %v3616_v51, %v9893_v42  ;;  %v9897_v42 = vld [vmem:[#allocation58_spill] sm:$0xff] }
 0x544   : > { %5212 = vmatmul.msk.f32.gmra.mxu1 %vm575_vm2, %v7918_v36  ;;  %v3775_v30 = vpop.f32.mrf.mxu2 }
 0x545   : > { %5280 = vmatmul.msk.f32.gmra.mxu3 %vm575_vm2, %v9894_v59  ;;  %v3861_v14 = vadd.f32 %v3775_v30, %v3702_v44  ;;  %v8419_v44 = vadd.f32 %v4066_v55, %v4008_v38 }
 0x547   : > { %9898 = vst [vmem:[#allocation46_spill] sm:$0xff] %v8419_v44 }
 0x548   : > { %v3925_v25 = vpop.f32.mrf.mxu3 }
 0x549   : > { %v4011_v16 = vadd.f32 %v3925_v25, %v3861_v14  ;;  %v3619_v26 = vpop.f32.mrf.mxu1  ;;  %5247 = vmatmul.msk.f32.gmra.mxu2 %vm575_vm2, %v9895_v23  ;;  %v9899_v14 = vld [vmem:[#allocation50_spill] sm:$0xff] }
 0x54a   : > { %5315 = vmatmul.msk.f32.gmra.mxu0 %vm575_vm2, %v9896_v60  ;;  %v3703_v51 = vadd.f32 %v3619_v26, %v8022_v2  ;;  %v4078_v2 = vpop.f32.mrf.mxu0  ;;  %v9900_v26 = vld [vmem:[#allocation61_spill] sm:$0xff] }
 0x54c   : > { %5213 = vmatmul.msk.f32.gmra.mxu1 %vm575_vm2, %v9889_v13  ;;  %v3778_v36 = vpop.f32.mrf.mxu2 }
 0x54d   : > { %5281 = vmatmul.msk.f32.gmra.mxu3 %vm575_vm2, %v9897_v42  ;;  %v3862_v49 = vadd.f32 %v3778_v36, %v3703_v51  ;;  %v8430_v51 = vadd.f32 %v4069_v58, %v4009_v4 }
 0x54f   : > { %9901 = vst [vmem:[#allocation68_spill] sm:$0xff] %v8430_v51  ;;  %v9916_v51 = vld [vmem:[#allocation65_spill] sm:$0xff] }
 0x550   : > { %v3928_v10 = vpop.f32.mrf.mxu3 }
 0x551   : > { %v4012_v30 = vadd.f32 %v3928_v10, %v3862_v49  ;;  %v3622_v59 = vpop.f32.mrf.mxu1  ;;  %5248 = vmatmul.msk.f32.gmra.mxu2 %vm575_vm2, %v9899_v14  ;;  %v9902_v49 = vld [vmem:[#allocation63_spill] sm:$0xff]  ;;  %v9903_v10 = vld [vmem:[#allocation30_spill] sm:$0xff] }
 0x552   : > { %5316 = vmatmul.msk.f32.gmra.mxu0 %vm575_vm2, %v8044_v63  ;;  %v3704_v25 = vadd.f32 %v3622_v59, %v8057_v53  ;;  %v4081_v59 = vpop.f32.mrf.mxu0 }
 0x554   : > { %5214 = vmatmul.msk.f32.gmra.mxu1 %vm575_vm2, %v7977_v6  ;;  %v3781_v13 = vpop.f32.mrf.mxu2 }
 0x555   : > { %5282 = vmatmul.msk.f32.gmra.mxu3 %vm575_vm2, %v9900_v26  ;;  %v3863_v55 = vadd.f32 %v3781_v13, %v3704_v25  ;;  %v9904_v26 = vld [vmem:[#allocation57_spill] sm:$0xff]  ;;  %v8441_v25 = vadd.f32 %v4072_v21, %v4010_v54 }
 0x557   : > { %9905 = vst [vmem:[#allocation51_spill] sm:$0xff] %v8441_v25  ;;  %v9910_v25 = vld [vmem:[#allocation28_spill] sm:$0xff] }
 0x558   : > { %v3931_v38 = vpop.f32.mrf.mxu3 }
 0x559   : > { %v4013_v36 = vadd.f32 %v3931_v38, %v3863_v55  ;;  %v3625_v42 = vpop.f32.mrf.mxu1  ;;  %5249 = vmatmul.msk.f32.gmra.mxu2 %vm575_vm2, %v9902_v49  ;;  %v9906_v38 = vld [vmem:[#allocation37_spill] sm:$0xff] }
 0x55a   : > { %5317 = vmatmul.msk.f32.gmra.mxu0 %vm575_vm2, %v9903_v10  ;;  %v3705_v53 = vadd.f32 %v3625_v42, %v8093_v35  ;;  %v9907_v42 = vld [vmem:[#allocation49_spill] sm:$0xff]  ;;  %v4084_v21 = vpop.f32.mrf.mxu0 }
 0x55c   : > { %5215 = vmatmul.msk.f32.gmra.mxu1 %vm575_vm2, %v9896_v60  ;;  %v3784_v6 = vpop.f32.mrf.mxu2 }
 0x55d   : > { %5283 = vmatmul.msk.f32.gmra.mxu3 %vm575_vm2, %v9904_v26  ;;  %v3864_v58 = vadd.f32 %v3784_v6, %v3705_v53  ;;  %v8452_v6 = vadd.f32 %v4075_v1, %v4011_v16  ;;  %v8463_v16 = vadd.f32 %v4078_v2, %v4012_v30  ;;  %v9915_v2 = vmax.f32 %v8116_v40, 0.0 }
 0x55f   : > { %9908 = vst [vmem:[#allocation70_spill] sm:$0xff] %v8452_v6  ;;  %v3571_v6 = vrot.slane %v8161_v27, 1 }
 0x560   : > { %v3934_v4 = vpop.f32.mrf.mxu3  ;;  %9912 = vst [vmem:[#allocation72_spill] sm:$0xff] %v8463_v16 }
 0x561   : > { %v4014_v13 = vadd.f32 %v3934_v4, %v3864_v58  ;;  %v3628_v55 = vpop.f32.mrf.mxu1  ;;  %5250 = vmatmul.msk.f32.gmra.mxu2 %vm575_vm2, %v9906_v38  ;;  %v9909_v4 = vld [vmem:[#allocation38_spill] sm:$0xff] }
 0x562   : > { %5318 = vmatmul.msk.f32.gmra.mxu0 %vm575_vm2, %v8109_v32  ;;  %v3706_v35 = vadd.f32 %v3628_v55, %v8124_v33  ;;  %v9911_v55 = vld [vmem:[#allocation24_spill] sm:$0xff] }
 0x564   : > { %5216 = vmatmul.msk.f32.gmra.mxu1 %vm575_vm2, %v8044_v63  ;;  %v3787_v60 = vpop.f32.mrf.mxu2 }
 0x565   : > { %5284 = vmatmul.msk.f32.gmra.mxu3 %vm575_vm2, %v9907_v42  ;;  %v3865_v53 = vadd.f32 %v3787_v60, %v3706_v35  ;;  %v4087_v60 = vpop.f32.mrf.mxu0 }
 0x568   : > { %v3937_v54 = vpop.f32.mrf.mxu3 }
 0x569   : > { %v4015_v26 = vadd.f32 %v3937_v54, %v3865_v53  ;;  %v3631_v58 = vpop.f32.mrf.mxu1  ;;  %5251 = vmatmul.msk.f32.gmra.mxu2 %vm575_vm2, %v9909_v4  ;;  %v9913_v54 = vld [vmem:[#allocation52_spill] sm:$0xff] }
 0x56a   : > { %5319 = vmatmul.msk.f32.gmra.mxu0 %vm575_vm2, %v9910_v25  ;;  %v3707_v33 = vadd.f32 %v3631_v58, %v8157_v56 }
 0x56c   : > { %5217 = vmatmul.msk.f32.gmra.mxu1 %vm575_vm2, %v9903_v10  ;;  %v3790_v63 = vpop.f32.mrf.mxu2  ;;  %v9914_v10 = vld [vmem:[#allocation42_spill] sm:$0xff] }
 0x56d   : > { %5285 = vmatmul.msk.f32.gmra.mxu3 %vm575_vm2, %v9911_v55  ;;  %v3866_v35 = vadd.f32 %v3790_v63, %v3707_v33  ;;  %v3570_v58 = vrot.slane %v9914_v10, 1  ;;  %v2620_v33 = vrot.slane %v9915_v2, 5  ;;  %v4090_v44 = vpop.f32.mrf.mxu0 }
 0x570   : > { %v3940_v1 = vpop.f32.mrf.mxu3 }
 0x571   : > { %v4016_v42 = vadd.f32 %v3940_v1, %v3866_v35  ;;  %v3634_v53 = vpop.f32.mrf.mxu1  ;;  %5252 = vmatmul.msk.f32.gmra.mxu2 %vm575_vm2, %v9913_v54  ;;  %v8478_v1 = vadd.f32 %v4081_v59, %v4013_v36 }
 0x572   : > { %5320 = vmatmul.msk.f32.gmra.mxu0 %vm575_vm2, %v8168_v24  ;;  %v3708_v56 = vadd.f32 %v3634_v53, %v8179_v37  ;;  %v3572_v37 = vsel %vm497_vm3, %v3570_v58, %v3571_v6 }
 0x574   : > { %5218 = vmatmul.msk.f32.gmra.mxu1 %vm575_vm2, %v8109_v32  ;;  %v3793_v30 = vpop.f32.mrf.mxu2  ;;  %v2668_v32 = vsel %vm321_vm1, %v8152_v9, %v2620_v33  ;;  %v3730_v33 = vrot.slane %v8161_v27, 2 }
 0x575   : > { %5286 = vmatmul.msk.f32.gmra.mxu3 %vm575_vm2, %v8102_v43  ;;  %v3867_v63 = vadd.f32 %v3793_v30, %v3708_v56  ;;  %v3573_v59 = vrot.slane %v2668_v32, 1  ;;  %v8491_v30 = vadd.f32 %v4084_v21, %v4014_v13 }
 0x578   : > { %v3943_v35 = vpop.f32.mrf.mxu3 }
 0x579   : > { %v4017_v16 = vadd.f32 %v3943_v35, %v3867_v63  ;;  %v3637_v53 = vpop.f32.mrf.mxu1  ;;  %5253 = vmatmul.msk.f32.gmra.mxu2 %vm575_vm2, %v9916_v51  ;;  %v3574_v63 = vsel %vm497_vm3, %v3571_v6, %v3573_v59 }
 0x57a   : > { %5321 = vmatmul.msk.f32.gmra.mxu0 %vm575_vm2, %v3572_v37  ;;  %v3709_v40 = vadd.f32 %v3637_v53, %v8190_v8  ;;  %v3729_v8 = vrot.slane %v9914_v10, 2  ;;  %v4093_v53 = vpop.f32.mrf.mxu0 }
 0x57c   : > { %5219 = vmatmul.msk.f32.gmra.mxu1 %vm575_vm2, %v9910_v25  ;;  %v3796_v36 = vpop.f32.mrf.mxu2  ;;  %v8507_v59 = vsel %vm929_vm4, %v3729_v8, %v3730_v33 }
 0x57d   : > { %5287 = vmatmul.msk.f32.gmra.mxu3 %vm575_vm2, %v9914_v10  ;;  %v3868_v56 = vadd.f32 %v3796_v36, %v3709_v40  ;;  %v8504_v40 = vadd.f32 %v4087_v60, %v4015_v26  ;;  %v3732_v26 = vrot.slane %v2668_v32, 2 }
 0x57f   : > { %v8520_v8 = vsel %vm929_vm4, %v3730_v33, %v3732_v26 }
 0x580   : > { %v3946_v58 = vpop.f32.mrf.mxu3 }
 0x581   : > { %v4018_v2 = vadd.f32 %v3946_v58, %v3868_v56  ;;  %v3640_v35 = vpop.f32.mrf.mxu1  ;;  %5254 = vmatmul.msk.f32.gmra.mxu2 %vm575_vm2, %v8171_v20 }
 0x582   : > { %5322 = vmatmul.msk.f32.gmra.mxu0 %vm575_vm2, %v3574_v63  ;;  %v3710_v9 = vadd.f32 %v3640_v35, %v8201_v45  ;;  %v4096_v56 = vpop.f32.mrf.mxu0  ;;  %v8517_v35 = vadd.f32 %v4090_v44, %v4016_v42  ;;  %v8530_v42 = vadd.f32 %v4093_v53, %v4017_v16 }
 0x584   : > { %5220 = vmatmul.msk.f32.gmra.mxu1 %vm575_vm2, %v8168_v24  ;;  %v3799_v13 = vpop.f32.mrf.mxu2 }
 0x585   : > { %5288 = vmatmul.msk.f32.gmra.mxu3 %vm575_vm2, %v8161_v27  ;;  %v3869_v21 = vadd.f32 %v3799_v13, %v3710_v9 }
 0x588   : > { %v3949_v6 = vpop.f32.mrf.mxu3 }
 0x589   : > { %v4019_v36 = vadd.f32 %v3949_v6, %v3869_v21  ;;  %v3643_v45 = vpop.f32.mrf.mxu1  ;;  %5255 = vmatmul.msk.f32.gmra.mxu2 %vm575_vm2, %v8507_v59 }
 0x58a   : > { %5323 = vmatmul.msk.f32.gmra.mxu0 %vm575_vm2, %v9910_v25  ;;  %v3711_v10 = vadd.f32 %v3643_v45, %v8212_v34 }
 0x58c   : > { %5221 = vmatmul.msk.f32.gmra.mxu1 %vm575_vm2, %v3572_v37  ;;  %v3802_v27 = vpop.f32.mrf.mxu2  ;;  %v4099_v37 = vpop.f32.mrf.mxu0 }
 0x58d   : > { %5289 = vmatmul.msk.f32.gmra.mxu3 %vm575_vm2, %v9911_v55  ;;  %v3870_v60 = vadd.f32 %v3802_v27, %v3711_v10 }
 0x590   : > { %v3952_v58 = vpop.f32.mrf.mxu3 }
 0x591   : > { %v4020_v9 = vadd.f32 %v3952_v58, %v3870_v60  ;;  %v3646_v13 = vpop.f32.mrf.mxu1  ;;  %5256 = vmatmul.msk.f32.gmra.mxu2 %vm575_vm2, %v8520_v8 }
 0x592   : > { %5324 = vmatmul.msk.f32.gmra.mxu0 %vm575_vm2, %v8168_v24  ;;  %v3712_v34 = vadd.f32 %v3646_v13, %v8222_v19 }
 0x594   : > { %5222 = vmatmul.msk.f32.gmra.mxu1 %vm575_vm2, %v3574_v63  ;;  %v3805_v25 = vpop.f32.mrf.mxu2  ;;  %v8535_v63 = vadd.f32 %v4096_v56, %v4018_v2 }
 0x595   : > { %5290 = vmatmul.msk.f32.gmra.mxu3 %vm575_vm2, %v8102_v43  ;;  %v3871_v44 = vadd.f32 %v3805_v25, %v3712_v34  ;;  %v4102_v43 = vpop.f32.mrf.mxu0 }
 0x598   : > { %v3955_v55 = vpop.f32.mrf.mxu3 }
 0x599   : > { %v4021_v32 = vadd.f32 %v3955_v55, %v3871_v44  ;;  %v3649_v33 = vpop.f32.mrf.mxu1 }
 0x59a   : > { %v3713_v21 = vadd.f32 %v3649_v33, %v8232_v50  ;;  %v8540_v50 = vadd.f32 %v4099_v37, %v4019_v36 }
 0x59c   : > { %v3808_v6 = vpop.f32.mrf.mxu2  ;;  %5327 = vmatmul.msk.f32.vlgmr.msra.gmra.mxu1 %vm575_vm2, %v7422_v29 }
 0x59d   : > { %v3872_v24 = vadd.f32 %v3808_v6, %v3713_v21  ;;  %v4105_v13 = vpop.f32.mrf.mxu0 }
 0x59e   : > { %v8550_v33 = vadd.f32 %v4105_v13, %v4021_v32 }
 0x5a0   : > { %v3958_v19 = vpop.f32.mrf.mxu3 }
 0x5a1   : > { %v4022_v45 = vadd.f32 %v3958_v19, %v3872_v24  ;;  %v3652_v10 = vpop.f32.mrf.mxu1 }
 0x5a2   : > { %v3714_v27 = vadd.f32 %v3652_v10, %v8242_v12  ;;  %v8545_v12 = vadd.f32 %v4102_v43, %v4020_v9 }
 0x5a4   : > { %v3811_v16 = vpop.f32.mrf.mxu2  ;;  %5328 = vmatmul.msk.f32.gmra.mxu1 %vm575_vm2, %v7437_v48 }
 0x5a5   : > { %v3873_v53 = vadd.f32 %v3811_v16, %v3714_v27  ;;  %v4108_v37 = vpop.f32.mrf.mxu0 }
 0x5a8   : > { %v3961_v26 = vpop.f32.mrf.mxu3 }
 0x5a9   : > { %v4023_v60 = vadd.f32 %v3961_v26, %v3873_v53  ;;  %v3655_v58 = vpop.f32.mrf.mxu1 }
 0x5aa   : > { %v3715_v29 = vadd.f32 %v3655_v58, %v8252_v5 }
 0x5ac   : > { %v3814_v2 = vpop.f32.mrf.mxu2  ;;  %5329 = vmatmul.msk.f32.gmra.mxu1 %vm575_vm2, %v7515_v31 }
 0x5ad   : > { %v3874_v56 = vadd.f32 %v3814_v2, %v3715_v29  ;;  %v4111_v10 = vpop.f32.mrf.mxu0  ;;  %v9917_v29 = vld [vmem:[#allocation77_spill] sm:$0xff] }
 0x5ae   : > { %v8561_v32 = vadd.f32 %v4111_v10, %v4023_v60 }
 0x5b0   : > { %v3964_v34 = vpop.f32.mrf.mxu3 }
 0x5b1   : > { %v4024_v25 = vadd.f32 %v3964_v34, %v3874_v56  ;;  %v3658_v44 = vpop.f32.mrf.mxu1  ;;  %v9919_v56 = vld [vmem:[#allocation17_spill] sm:$0xff] }
 0x5b2   : > { %v3716_v48 = vadd.f32 %v3658_v44, %v8262_v28  ;;  %v8555_v28 = vadd.f32 %v4108_v37, %v4022_v45 }
 0x5b4   : > { %v3817_v55 = vpop.f32.mrf.mxu2  ;;  %5330 = vmatmul.msk.f32.gmra.mxu1 %vm575_vm2, %v7535_v17 }
 0x5b5   : > { %v3875_v36 = vadd.f32 %v3817_v55, %v3716_v48 }
 0x5b8   : > { %v3967_v5 = vpop.f32.mrf.mxu3 }
 0x5b9   : > { %v4025_v21 = vadd.f32 %v3967_v5, %v3875_v36  ;;  %v3661_v6 = vpop.f32.mrf.mxu1 }
 0x5ba   : > { %v3717_v31 = vadd.f32 %v3661_v6, %v8272_v46  ;;  %v4114_v46 = vpop.f32.mrf.mxu0 }
 0x5bc   : > { %v3820_v24 = vpop.f32.mrf.mxu2  ;;  %5331 = vmatmul.msk.f32.gmra.mxu1 %vm575_vm2, %v7558_v39  ;;  %v8567_v39 = vadd.f32 %v4114_v46, %v4024_v25  ;;  %v9920_v46 = vld [vmem:[#allocation11_spill] sm:$0xff] }
 0x5bd   : > { %v3876_v9 = vadd.f32 %v3820_v24, %v3717_v31 }
 0x5c0   : > { %v3970_v19 = vpop.f32.mrf.mxu3 }
 0x5c1   : > { %v4026_v43 = vadd.f32 %v3970_v19, %v3876_v9  ;;  %v8557_v17 = vpop.f32.mrf.mxu1 }
 0x5c2   : > { %v4117_v45 = vpop.f32.mrf.mxu0 }
 0x5c3   : > { %v8573_v53 = vadd.f32 %v4117_v45, %v4025_v21  ;;  %v8702_v45 = vld [vmem:[%s9323_s4] ss:$0 sm:$0xff] }
 0x5c4   : > { %5332 = vmatmul.msk.f32.gmra.mxu1 %vm575_vm2, %v9838_v0  ;;  %v8672_v5 = vpop.f32.mrf.mxu2 }
 0x5c8   : > { %v8677_v21 = vpop.f32.mrf.mxu3 }
 0x5c9   : > { %v8563_v27 = vpop.f32.mrf.mxu1 }
 0x5ca   : > { %v4120_v0 = vpop.f32.mrf.mxu0 }
 0x5cb   : > { %v8579_v60 = vadd.f32 %v4120_v0, %v4026_v43  ;;  %v9921_v0 = vld [vmem:[#allocation46_spill] sm:$0xff] }
 0x5cc   : > { %5333 = vmatmul.msk.f32.gmra.mxu1 %vm575_vm2, %v9841_v22  ;;  %v8684_v31 = vpop.f32.mrf.mxu2 }
 0x5d1   : > { %v8569_v16 = vpop.f32.mrf.mxu1 }
 0x5d2   : > { %v8679_v6 = vpop.f32.mrf.mxu0 }
 0x5d4   : > { %5334 = vmatmul.msk.f32.gmra.mxu1 %vm575_vm2, %v9844_v7 }
 0x5d9   : > { %v8575_v26 = vpop.f32.mrf.mxu1 }
 0x5da   : > { %v8691_v19 = vpop.f32.mrf.mxu0 }
 0x5dc   : > { %5335 = vmatmul.msk.f32.gmra.mxu1 %vm575_vm2, %v9848_v41  ;;  %v9918_v41 = vld [vmem:[#allocation9_spill] sm:$0xff] }
 0x5e1   : > { %v8581_v58 = vpop.f32.mrf.mxu1 }
 0x5e4   : > { %5336 = vmatmul.msk.f32.gmra.mxu1 %vm575_vm2, %v9852_v52 }
 0x5e9   : > { %v8585_v22 = vpop.f32.mrf.mxu1 }
 0x5ec   : > { %5337 = vmatmul.msk.f32.gmra.mxu1 %vm575_vm2, %v9856_v62 }
 0x5f1   : > { %v8589_v7 = vpop.f32.mrf.mxu1 }
 0x5f4   : > { %5338 = vmatmul.msk.f32.gmra.mxu1 %vm575_vm2, %v9917_v29 }
 0x5f9   : > { %v8593_v13 = vpop.f32.mrf.mxu1 }
 0x5fc   : > { %5339 = vmatmul.msk.f32.gmra.mxu1 %vm575_vm2, %v9918_v41 }
 0x601   : > { %v8597_v2 = vpop.f32.mrf.mxu1 }
 0x604   : > { %5340 = vmatmul.msk.f32.gmra.mxu1 %vm575_vm2, %v9919_v56  ;;  %v9922_v56 = vld [vmem:[#allocation68_spill] sm:$0xff] }
 0x609   : > { %v8601_v52 = vpop.f32.mrf.mxu1 }
 0x60c   : > { %5341 = vmatmul.msk.f32.gmra.mxu1 %vm575_vm2, %v9872_v15 }
 0x611   : > { %v8605_v62 = vpop.f32.mrf.mxu1 }
 0x614   : > { %5342 = vmatmul.msk.f32.gmra.mxu1 %vm575_vm2, %v9876_v11 }
 0x619   : > { %v4210_v34 = vpop.f32.mrf.mxu1 }
 0x61c   : > { %5343 = vmatmul.msk.f32.gmra.mxu1 %vm575_vm2, %v9880_v18 }
 0x621   : > { %v4213_v25 = vpop.f32.mrf.mxu1 }
 0x622   : > { %v4307_v10 = vadd.f32 %v4213_v25, %v8408_v3  ;;  %v8712_v25 = vpop.f32.mrf.mxu0 }
 0x624   : > { %5344 = vmatmul.msk.f32.gmra.mxu1 %vm575_vm2, %v9884_v61  ;;  %v8709_v41 = vadd.f32 %v8702_v45, %v4307_v10 }
 0x629   : > { %v4216_v44 = vpop.f32.mrf.mxu1 }
 0x62a   : > { %v4308_v29 = vadd.f32 %v4216_v44, %v9921_v0 }
 0x62c   : > { %5345 = vmatmul.msk.f32.gmra.mxu1 %vm575_vm2, %v9888_v47 }
 0x631   : > { %v4219_v48 = vpop.f32.mrf.mxu1 }
 0x632   : > { %v4309_v3 = vadd.f32 %v4219_v48, %v9922_v56 }
 0x634   : > { %5346 = vmatmul.msk.f32.gmra.mxu1 %vm575_vm2, %v9892_v57  ;;  %v8726_v44 = vadd.f32 %v8702_v45, %v4309_v3 }
 0x639   : > { %v4222_v15 = vpop.f32.mrf.mxu1 }
 0x63c   : > { %5347 = vmatmul.msk.f32.gmra.mxu1 %vm575_vm2, %v9895_v23 }
 0x641   : > { %v4225_v11 = vpop.f32.mrf.mxu1 }
 0x644   : > { %5348 = vmatmul.msk.f32.gmra.mxu1 %vm575_vm2, %v9899_v14 }
 0x649   : > { %v8621_v18 = vpop.f32.mrf.mxu1 }
 0x64c   : > { %5349 = vmatmul.msk.f32.gmra.mxu1 %vm575_vm2, %v9902_v49 }
 0x651   : > { %v8625_v61 = vpop.f32.mrf.mxu1 }
 0x654   : > { %5350 = vmatmul.msk.f32.gmra.mxu1 %vm575_vm2, %v9906_v38 }
 0x659   : > { %v4234_v47 = vpop.f32.mrf.mxu1 }
 0x65a   : > { %v8630_v57 = vadd.f32 %v4234_v47, %v8491_v30 }
 0x65c   : > { %5351 = vmatmul.msk.f32.gmra.mxu1 %vm575_vm2, %v9909_v4 }
 0x661   : > { %v4237_v23 = vpop.f32.mrf.mxu1 }
 0x662   : > { %v8635_v14 = vadd.f32 %v4237_v23, %v8504_v40  ;;  %v9923_v23 = vld [vmem:[#allocation51_spill] sm:$0xff] }
 0x664   : > { %5352 = vmatmul.msk.f32.gmra.mxu1 %vm575_vm2, %v9913_v54 }
 0x669   : > { %v4240_v49 = vpop.f32.mrf.mxu1 }
 0x66a   : > { %v8640_v55 = vadd.f32 %v4240_v49, %v8517_v35  ;;  %v4310_v49 = vadd.f32 %v4222_v15, %v9923_v23 }
 0x66c   : > { %5353 = vmatmul.msk.f32.gmra.mxu1 %vm575_vm2, %v9916_v51  ;;  %v8736_v15 = vadd.f32 %v8702_v45, %v4310_v49 }
 0x671   : > { %v4243_v38 = vpop.f32.mrf.mxu1 }
 0x672   : > { %v8645_v30 = vadd.f32 %v4243_v38, %v8530_v42 }
 0x674   : > { %5354 = vmatmul.msk.f32.gmra.mxu1 %vm575_vm2, %v8171_v20 }
 0x679   : > { %v4246_v4 = vpop.f32.mrf.mxu1 }
 0x67a   : > { %v8650_v40 = vadd.f32 %v4246_v4, %v8535_v63  ;;  %v9924_v4 = vld [vmem:[#allocation70_spill] sm:$0xff] }
 0x67b   : > { %v4311_v48 = vadd.f32 %v4225_v11, %v9924_v4  ;;  %v4379_v11 = vsel %vm575_vm2, %v8726_v44, 0.0 }
 0x67c   : > { %5355 = vmatmul.msk.f32.gmra.mxu1 %vm575_vm2, %v8507_v59 }
 0x67d   : > { %v8745_v10 = vadd.f32 %v8702_v45, %v4311_v48 }
 0x67f   : > { %v4383_v56 = vsel %vm575_vm2, %v8745_v10, 0.0 }
 0x681   : > { %v4249_v54 = vpop.f32.mrf.mxu1 }
 0x682   : > { %v8655_v35 = vadd.f32 %v4249_v54, %v8540_v50 }
 0x684   : > { %5356 = vmatmul.msk.f32.gmra.mxu1 %vm575_vm2, %v8520_v8 }
 0x689   : > { %v4252_v36 = vpop.f32.mrf.mxu1 }
 0x68a   : > { %v8660_v42 = vadd.f32 %v4252_v36, %v8545_v12 }
 0x68c   : > { %5357 = vmatmul.msk.f32.gmra.mxu1 %vm575_vm2, %v9916_v51 }
 0x691   : > { %v4255_v37 = vpop.f32.mrf.mxu1 }
 0x692   : > { %v8665_v63 = vadd.f32 %v4255_v37, %v8550_v33 }
 0x694   : > { %5358 = vmatmul.msk.f32.gmra.mxu1 %vm575_vm2, %v8171_v20  ;;  %v8686_v20 = vpop.f32.mrf.mxu3 }
 0x699   : > { %v4258_v59 = vpop.f32.mrf.mxu1 }
 0x69a   : > { %v8670_v50 = vadd.f32 %v4258_v59, %v8555_v28  ;;  %v8693_v28 = vpop.f32.mrf.mxu2  ;;  %v9925_v59 = vld [vmem:[#allocation72_spill] sm:$0xff] }
 0x69c   : > { %v8696_v43 = vpop.f32.mrf.mxu3 }
 0x6a1   : > { %v4261_v8 = vpop.f32.mrf.mxu1 }
 0x6a2   : > { %v8675_v12 = vadd.f32 %v4261_v8, %v8561_v32  ;;  %v8721_v38 = vpop.f32.mrf.mxu2  ;;  %v4312_v8 = vadd.f32 %v8621_v18, %v9925_v59 }
 0x6a4   : > { %v8752_v0 = vadd.f32 %v8702_v45, %v4312_v8 }
 0x6a9   : > { %v4264_v51 = vpop.f32.mrf.mxu1 }
 0x6aa   : > { %v8682_v33 = vadd.f32 %v4264_v51, %v8567_v39  ;;  %v4306_v39 = vadd.f32 %v4210_v34, %v9920_v46  ;;  %v8718_v34 = vadd.f32 %v8702_v45, %v4308_v29  ;;  %v8740_v51 = vpop.f32.mrf.mxu3  ;;  %v8754_v29 = vpop.f32.mrf.mxu0 }
 0x6ab   : > { %v3835_v23 = vpop.f32.mrf.mxu2 }
 0x6ac   : > { %v8715_v47 = vadd.f32 %v8702_v45, %v4306_v39  ;;  %v4377_v37 = vsel %vm575_vm2, %v8718_v34, 0.0  ;;  %v4381_v39 = vsel %vm575_vm2, %v8736_v15, 0.0 }
 0x6ae   : > { %v4374_v36 = vsel %vm575_vm2, %v8715_v47, 0.0 }
 0x6b1   : > { %v4267_v24 = vpop.f32.mrf.mxu1 }
 0x6b2   : > { %v8689_v9 = vadd.f32 %v4267_v24, %v8573_v53 }
 0x6b9   : > { %v4270_v32 = vpop.f32.mrf.mxu1 }
 0x6ba   : > { %v8706_v53 = vadd.f32 %v4270_v32, %v8579_v60  ;;  %v4375_v60 = vsel %vm575_vm2, %v8709_v41, 0.0  ;;  %v4313_v32 = vadd.f32 %v8625_v61, %v8478_v1  ;;  %v4385_v1 = vsel %vm575_vm2, %v8752_v0, 0.0 }
 0x6bb   : > { %v4376_v24 = vadd.f32 %v4375_v60, %v4374_v36  ;;  %v8767_v61 = vadd.f32 %v8702_v45, %v8630_v57  ;;  %v8773_v36 = vadd.f32 %v8702_v45, %v8635_v14 }
 0x6bc   : > { %v8759_v3 = vadd.f32 %v8702_v45, %v4313_v32  ;;  %v8785_v32 = vadd.f32 %v8702_v45, %v8645_v30 }
 0x6bd   : > { %v4378_v46 = vadd.f32 %v4377_v37, %v4376_v24  ;;  %v3985_v37 = vpop.f32.mrf.mxu3  ;;  %v4389_v8 = vsel %vm575_vm2, %v8767_v61, 0.0  ;;  %v8779_v24 = vadd.f32 %v8702_v45, %v8640_v55  ;;  %v4391_v57 = vsel %vm575_vm2, %v8773_v36, 0.0 }
 0x6be   : > { %v4387_v48 = vsel %vm575_vm2, %v8759_v3, 0.0  ;;  %9927 = vst [vmem:[#allocation53_spill] sm:$0xff] %v8785_v32  ;;  %v8795_v55 = vadd.f32 %v8702_v45, %v8650_v40 }
 0x6bf   : > { %v4380_v18 = vadd.f32 %v4379_v11, %v4378_v46  ;;  %9926 = vst [vmem:[#allocation48_spill] sm:$0xff] %v8779_v24 }
 0x6c0   : > { %v4397_v40 = vsel %vm575_vm2, %v8795_v55, 0.0 }
 0x6c1   : > { %v8729_v54 = vpop.f32.mrf.mxu1  ;;  %v4382_v49 = vadd.f32 %v4381_v39, %v4380_v18  ;;  %v9928_v39 = vld [vmem:[#allocation4_spill] sm:$0xff] }
 0x6c2   : > { %v3718_v18 = vadd.f32 %v8557_v17, %v9928_v39  ;;  %v8803_v17 = vadd.f32 %v8702_v45, %v8655_v35  ;;  %v9930_v39 = vld [vmem:[#allocation64_spill] sm:$0xff] }
 0x6c3   : > { %v4384_v4 = vadd.f32 %v4383_v56, %v4382_v49  ;;  %v8789_v56 = vpop.f32.mrf.mxu0  ;;  %v4393_v49 = vsel %vm575_vm2, %v8779_v24, 0.0  ;;  %v3720_v24 = vadd.f32 %v8569_v16, %v9930_v39  ;;  %v8821_v16 = vadd.f32 %v8702_v45, %v8665_v63  ;;  %v9933_v63 = vld [vmem:[#allocation39_spill] sm:$0xff] }
 0x6c5   : > { %v4386_v59 = vadd.f32 %v4385_v1, %v4384_v4  ;;  %v3838_v1 = vpop.f32.mrf.mxu2 }
 0x6c7   : > { %v4388_v11 = vadd.f32 %v4387_v48, %v4386_v59  ;;  %v9929_v48 = vld [vmem:[#allocation33_spill] sm:$0xff]  ;;  %v4395_v59 = vsel %vm575_vm2, %v8785_v32, 0.0 }
 0x6c8   : > { %v3719_v30 = vadd.f32 %v8563_v27, %v9929_v48  ;;  %v9931_v27 = vld [vmem:[#allocation54_spill] sm:$0xff]  ;;  %v3988_v48 = vpop.f32.mrf.mxu3 }
 0x6c9   : > { %v8761_v60 = vpop.f32.mrf.mxu1  ;;  %v4390_v46 = vadd.f32 %v4389_v8, %v4388_v11  ;;  %v3877_v11 = vadd.f32 %v8672_v5, %v3718_v18  ;;  %v4399_v5 = vsel %vm575_vm2, %v8803_v17, 0.0  ;;  %v9932_v18 = vld [vmem:[#allocation29_spill] sm:$0xff] }
 0x6ca   : > { %v3878_v35 = vadd.f32 %v8684_v31, %v3719_v30  ;;  %v8831_v31 = vadd.f32 %v8702_v45, %v8670_v50 }
 0x6cb   : > { %v4392_v4 = vadd.f32 %v4391_v57, %v4390_v46  ;;  %v8812_v57 = vadd.f32 %v8702_v45, %v8660_v42  ;;  %v3721_v46 = vadd.f32 %v8575_v26, %v9931_v27  ;;  %v4027_v39 = vadd.f32 %v8677_v21, %v3877_v11 }
 0x6cc   : > { %v3879_v26 = vadd.f32 %v8693_v28, %v3720_v24  ;;  %v4403_v21 = vsel %vm575_vm2, %v8821_v16, 0.0  ;;  %v8841_v28 = vadd.f32 %v8702_v45, %v8675_v12 }
 0x6cd   : > { %v4394_v8 = vadd.f32 %v4393_v49, %v4392_v4  ;;  %v3722_v49 = vadd.f32 %v8581_v58, %v9932_v18  ;;  %v3880_v30 = vadd.f32 %v8721_v38, %v3721_v46  ;;  %v4028_v58 = vadd.f32 %v8686_v20, %v3878_v35  ;;  %v3841_v11 = vpop.f32.mrf.mxu2 }
 0x6ce   : > { %v4405_v38 = vsel %vm575_vm2, %v8831_v31, 0.0  ;;  %v4177_v20 = vadd.f32 %v8679_v6, %v4027_v39  ;;  %v4407_v12 = vsel %vm575_vm2, %v8841_v28, 0.0 }
 0x6cf   : > { %v4396_v32 = vadd.f32 %v4395_v59, %v4394_v8  ;;  %v4401_v59 = vsel %vm575_vm2, %v8812_v57, 0.0  ;;  %v3723_v8 = vadd.f32 %v8585_v22, %v9933_v63  ;;  %v3881_v24 = vadd.f32 %v3835_v23, %v3722_v49 }
 0x6d0   : > { %v8848_v22 = vadd.f32 %v8702_v45, %v8682_v33  ;;  %v4030_v46 = vadd.f32 %v8740_v51, %v3880_v30  ;;  %v8856_v23 = vadd.f32 %v8702_v45, %v8689_v9  ;;  %v4178_v18 = vadd.f32 %v8691_v19, %v4028_v58  ;;  %v3991_v33 = vpop.f32.mrf.mxu3 }
 0x6d1   : > { %v4279_v14 = vpop.f32.mrf.mxu1  ;;  %v4398_v4 = vadd.f32 %v4397_v40, %v4396_v32  ;;  %v4138_v32 = vpop.f32.mrf.mxu0  ;;  %v4029_v40 = vadd.f32 %v8696_v43, %v3879_v26  ;;  %v3882_v35 = vadd.f32 %v3838_v1, %v3723_v8  ;;  %v4327_v43 = vadd.f32 %v8729_v54, %v4177_v20 }
 0x6d2   : > { %v4031_v49 = vadd.f32 %v3985_v37, %v3881_v24  ;;  %v4409_v6 = vsel %vm575_vm2, %v8848_v22, 0.0  ;;  %v8864_v51 = vadd.f32 %v8702_v45, %v8706_v53  ;;  %v4328_v1 = vadd.f32 %v8761_v60, %v4178_v18 }
 0x6d3   : > { %v4400_v27 = vadd.f32 %v4399_v5, %v4398_v4  ;;  %v4179_v9 = vadd.f32 %v8712_v25, %v4029_v40  ;;  %v4032_v39 = vadd.f32 %v3988_v48, %v3882_v35  ;;  %v4411_v37 = vsel %vm575_vm2, %v8856_v23, 0.0 }
 0x6d4   : > { %v8873_v30 = vadd.f32 %v8702_v45, %v4327_v43  ;;  %v4180_v8 = vadd.f32 %v8754_v29, %v4030_v46  ;;  %v4413_v60 = vsel %vm575_vm2, %v8864_v51, 0.0  ;;  %v8879_v25 = vadd.f32 %v8702_v45, %v4328_v1 }
 0x6d5   : > { %v4402_v50 = vadd.f32 %v4401_v59, %v4400_v27  ;;  %v9934_v59 = vld [vmem:[#allocation55_spill] sm:$0xff]  ;;  %v4329_v63 = vadd.f32 %v4279_v14, %v4179_v9  ;;  %v4182_v40 = vadd.f32 %v4138_v32, %v4032_v39 }
 0x6d6   : > { %v3724_v54 = vadd.f32 %v8589_v7, %v9934_v59  ;;  %v4181_v7 = vadd.f32 %v8789_v56, %v4031_v49  ;;  %v4417_v46 = vsel %vm575_vm2, %v8879_v25, 0.0 }
 0x6d7   : > { %v4404_v5 = vadd.f32 %v4403_v21, %v4402_v50  ;;  %v3844_v21 = vpop.f32.mrf.mxu2  ;;  %v4415_v50 = vsel %vm575_vm2, %v8873_v30, 0.0  ;;  %v8885_v14 = vadd.f32 %v8702_v45, %v4329_v63 }
 0x6d8   : > { %v3883_v58 = vadd.f32 %v3841_v11, %v3724_v54  ;;  %v3994_v11 = vpop.f32.mrf.mxu3 }
 0x6d9   : > { %v4282_v42 = vpop.f32.mrf.mxu1  ;;  %v4406_v4 = vadd.f32 %v4405_v38, %v4404_v5  ;;  %v4141_v27 = vpop.f32.mrf.mxu0  ;;  %v4419_v18 = vsel %vm575_vm2, %v8885_v14, 0.0 }
 0x6da   : > { %v4330_v48 = vadd.f32 %v4282_v42, %v4180_v8  ;;  %v4033_v5 = vadd.f32 %v3991_v33, %v3883_v58 }
 0x6db   : > { %v4408_v19 = vadd.f32 %v4407_v12, %v4406_v4  ;;  %v9935_v12 = vld [vmem:[#allocation15_spill] sm:$0xff] }
 0x6dc   : > { %v8890_v42 = vadd.f32 %v8702_v45, %v4330_v48  ;;  %v3725_v43 = vadd.f32 %v8593_v13, %v9935_v12  ;;  %v4183_v13 = vadd.f32 %v4141_v27, %v4033_v5 }
 0x6dd   : > { %v4410_v53 = vadd.f32 %v4409_v6, %v4408_v19 }
 0x6de   : > { %v4421_v4 = vsel %vm575_vm2, %v8890_v42, 0.0  ;;  %v3884_v9 = vadd.f32 %v3844_v21, %v3725_v43 }
 0x6df   : > { %v4412_v24 = vadd.f32 %v4411_v37, %v4410_v53  ;;  %v3847_v39 = vpop.f32.mrf.mxu2  ;;  %v9936_v53 = vld [vmem:[#allocation12_spill] sm:$0xff] }
 0x6e0   : > { %v4034_v8 = vadd.f32 %v3994_v11, %v3884_v9 }
 0x6e1   : > { %v4285_v26 = vpop.f32.mrf.mxu1  ;;  %v4414_v38 = vadd.f32 %v4413_v60, %v4412_v24  ;;  %v4144_v1 = vpop.f32.mrf.mxu0  ;;  %v3726_v60 = vadd.f32 %v8597_v2, %v9936_v53 }
 0x6e2   : > { %v4331_v29 = vadd.f32 %v4285_v26, %v4181_v7  ;;  %v3997_v7 = vpop.f32.mrf.mxu3 }
 0x6e3   : > { %v4416_v35 = vadd.f32 %v4415_v50, %v4414_v38  ;;  %v3885_v27 = vadd.f32 %v3847_v39, %v3726_v60  ;;  %v4184_v50 = vadd.f32 %v4144_v1, %v4034_v8  ;;  %v9938_v1 = vld [vmem:[#allocation19_spill] sm:$0xff] }
 0x6e4   : > { %v8897_v32 = vadd.f32 %v8702_v45, %v4331_v29  ;;  %v3728_v9 = vadd.f32 %v8605_v62, %v9938_v1 }
 0x6e5   : > { %v4418_v49 = vadd.f32 %v4417_v46, %v4416_v35  ;;  %v4035_v46 = vadd.f32 %v3997_v7, %v3885_v27 }
 0x6e6   : > { %v4423_v33 = vsel %vm575_vm2, %v8897_v32, 0.0 }
 0x6e7   : > { %v4420_v6 = vadd.f32 %v4419_v18, %v4418_v49 }
 0x6e9   : > { %v4288_v20 = vpop.f32.mrf.mxu1  ;;  %v4422_v59 = vadd.f32 %v4421_v4, %v4420_v6  ;;  %v4147_v38 = vpop.f32.mrf.mxu0 }
 0x6ea   : > { %v4332_v56 = vadd.f32 %v4288_v20, %v4182_v40  ;;  %v3850_v20 = vpop.f32.mrf.mxu2  ;;  %v4000_v5 = vpop.f32.mrf.mxu3  ;;  %v4185_v18 = vadd.f32 %v4147_v38, %v4035_v46 }
 0x6eb   : > { %v4424_v63 = vadd.f32 %v4423_v33, %v4422_v59 }
 0x6ec   : > { %v8902_v26 = vadd.f32 %v8702_v45, %v4332_v56  ;;  %v9937_v56 = vld [vmem:[#allocation56_spill] sm:$0xff] }
 0x6ed   : > { %v3727_v11 = vadd.f32 %v8601_v52, %v9937_v56 }
 0x6ee   : > { %v4425_v19 = vsel %vm575_vm2, %v8902_v26, 0.0 }
 0x6ef   : > { %v4426_v58 = vadd.f32 %v4425_v19, %v4424_v63  ;;  %v3886_v43 = vadd.f32 %v3850_v20, %v3727_v11 }
 0x6f1   : > { %v4291_v54 = vpop.f32.mrf.mxu1  ;;  %v4036_v6 = vadd.f32 %v4000_v5, %v3886_v43  ;;  %v9939_v5 = vld [vmem:[#allocation66_spill] sm:$0xff] }
 0x6f2   : > { %v4333_v37 = vadd.f32 %v4291_v54, %v4183_v13  ;;  %v4150_v13 = vpop.f32.mrf.mxu0  ;;  %v3853_v39 = vpop.f32.mrf.mxu2 }
 0x6f3   : > { %v3887_v54 = vadd.f32 %v3853_v39, %v3728_v9  ;;  %v4186_v19 = vadd.f32 %v4150_v13, %v4036_v6 }
 0x6f4   : > { %v4369_v48 = vadd.f32 %v8702_v45, %v4333_v37  ;;  %v4003_v37 = vpop.f32.mrf.mxu3 }
 0x6f5   : > { %v4037_v53 = vadd.f32 %v4003_v37, %v3887_v54 }
 0x6f6   : > { %v4427_v21 = vsel %vm575_vm2, %v4369_v48, 0.0 }
 0x6f7   : > { %v4428_v24 = vadd.f32 %v4427_v21, %v4426_v58 }
 0x6f9   : > { %v4294_v29 = vpop.f32.mrf.mxu1 }
 0x6fa   : > { %v4334_v40 = vadd.f32 %v4294_v29, %v4184_v50  ;;  %v4153_v58 = vpop.f32.mrf.mxu0 }
 0x6fb   : > { %v4187_v62 = vadd.f32 %v4153_v58, %v4037_v53 }
 0x6fc   : > { %v4370_v35 = vadd.f32 %v8702_v45, %v4334_v40 }
 0x6fe   : > { %v4429_v2 = vsel %vm575_vm2, %v4370_v35, 0.0 }
 0x6ff   : > { %v4430_v12 = vadd.f32 %v4429_v2, %v4428_v24 }
 0x701   : > { %v4297_v49 = vpop.f32.mrf.mxu1 }
 0x702   : > { %v4335_v4 = vadd.f32 %v4297_v49, %v4185_v18 }
 0x704   : > { %v4371_v33 = vadd.f32 %v8702_v45, %v4335_v4 }
 0x706   : > { %v4431_v52 = vsel %vm575_vm2, %v4371_v33, 0.0 }
 0x707   : > { %v4432_v59 = vadd.f32 %v4431_v52, %v4430_v12 }
 0x709   : > { %v4300_v63 = vpop.f32.mrf.mxu1 }
 0x70a   : > { %v4336_v8 = vadd.f32 %v4300_v63, %v4186_v19 }
 0x70c   : > { %v4372_v60 = vadd.f32 %v8702_v45, %v4336_v8 }
 0x70e   : > { %v4433_v7 = vsel %vm575_vm2, %v4372_v60, 0.0 }
 0x70f   : > { %v4434_v21 = vadd.f32 %v4433_v7, %v4432_v59 }
 0x711   : > { %v4303_v24 = vpop.f32.mrf.mxu1 }
 0x712   : > { %v4337_v27 = vadd.f32 %v4303_v24, %v4187_v62  ;;  %v9940_v24 = vld [vmem:[#allocation48_spill] sm:$0xff] }
 0x714   : > { %v4373_v50 = vadd.f32 %v8702_v45, %v4337_v27 }
 0x716   : > { %v4435_v29 = vsel %vm575_vm2, %v4373_v50, 0.0 }
 0x717   : > { %v4436_v40 = vadd.f32 %v4435_v29, %v4434_v21 }
 0x719   : > { %v4437_v38 = vrot.slane %v4436_v40, 4 }
 0x71b   : > { %v4438_v20 = vadd.f32 %v4437_v38, %v4436_v40  ;;  %v9941_v40 = vld [vmem:[#allocation53_spill] sm:$0xff] }
 0x71d   : > { %v4439_v46 = vrot.slane %v4438_v20, 2 }
 0x71f   : > { %v4440_v56 = vadd.f32 %v4439_v46, %v4438_v20 }
 0x721   : > { %v4441_v11 = vrot.slane %v4440_v56, 1 }
 0x723   : > { %v4442_v2 = vadd.f32 %v4441_v11, %v4440_v56 }
 0x725   : > { %v8925_v12 = vmul.f32 %v4442_v2, %v9939_v5 }
 0x727   : > { %v8929_v43 = vsub.f32 %v8902_v26, %v8925_v12  ;;  %v8932_v18 = vsub.f32 %v4369_v48, %v8925_v12  ;;  %v8935_v45 = vsub.f32 %v4370_v35, %v8925_v12  ;;  %v8938_v49 = vsub.f32 %v4371_v33, %v8925_v12 }
 0x728   : > { %v8941_v4 = vsub.f32 %v4372_v60, %v8925_v12  ;;  %v8944_v6 = vsub.f32 %v4373_v50, %v8925_v12  ;;  %v8948_v1 = vsub.f32 %v8715_v47, %v8925_v12  ;;  %v8952_v26 = vsub.f32 %v8709_v41, %v8925_v12 }
 0x729   : > { %v8956_v48 = vsub.f32 %v8718_v34, %v8925_v12  ;;  %v8960_v35 = vsub.f32 %v8726_v44, %v8925_v12  ;;  %v8968_v47 = vsub.f32 %v8736_v15, %v8925_v12  ;;  %v8974_v34 = vsub.f32 %v8745_v10, %v8925_v12 }
 0x72a   : > { %v4476_v9 = vmul.f32 %v8948_v1, %v8948_v1  ;;  %v4477_v33 = vmul.f32 %v8952_v26, %v8952_v26  ;;  %v8982_v59 = vsub.f32 %v8752_v0, %v8925_v12  ;;  %v8989_v10 = vsub.f32 %v8759_v3, %v8925_v12 }
 0x72b   : > { %v4478_v41 = vmul.f32 %v8956_v48, %v8956_v48  ;;  %v4479_v44 = vmul.f32 %v8960_v35, %v8960_v35  ;;  %v4480_v15 = vmul.f32 %v8968_v47, %v8968_v47  ;;  %v4481_v37 = vmul.f32 %v8974_v34, %v8974_v34 }
 0x72c   : > { %v4508_v13 = vsel %vm575_vm2, %v4476_v9, 0.0  ;;  %v4509_v39 = vsel %vm575_vm2, %v4477_v33, 0.0  ;;  %v8996_v0 = vsub.f32 %v8767_v61, %v8925_v12  ;;  %v4482_v53 = vmul.f32 %v8982_v59, %v8982_v59 }
 0x72d   : > { %v4510_v52 = vadd.f32 %v4509_v39, %v4508_v13  ;;  %v4511_v54 = vsel %vm575_vm2, %v4478_v41, 0.0  ;;  %v4513_v63 = vsel %vm575_vm2, %v4479_v44, 0.0  ;;  %v4515_v60 = vsel %vm575_vm2, %v4480_v15, 0.0 }
 0x72e   : > { %v9003_v3 = vsub.f32 %v8773_v36, %v8925_v12  ;;  %v4483_v58 = vmul.f32 %v8989_v10, %v8989_v10  ;;  %v4517_v21 = vsel %vm575_vm2, %v4481_v37, 0.0  ;;  %v9010_v61 = vsub.f32 %v9940_v24, %v8925_v12 }
 0x72f   : > { %v4512_v19 = vadd.f32 %v4511_v54, %v4510_v52  ;;  %v4484_v27 = vmul.f32 %v8996_v0, %v8996_v0  ;;  %v4519_v50 = vsel %vm575_vm2, %v4482_v53, 0.0  ;;  %v9017_v36 = vsub.f32 %v9941_v40, %v8925_v12 }
 0x730   : > { %v4485_v38 = vmul.f32 %v9003_v3, %v9003_v3  ;;  %v4521_v20 = vsel %vm575_vm2, %v4483_v58, 0.0  ;;  %v9024_v56 = vsub.f32 %v8795_v55, %v8925_v12  ;;  %v4486_v11 = vmul.f32 %v9010_v61, %v9010_v61 }
 0x731   : > { %v4514_v8 = vadd.f32 %v4513_v63, %v4512_v19  ;;  %v4523_v2 = vsel %vm575_vm2, %v4484_v27, 0.0  ;;  %v9031_v33 = vsub.f32 %v8803_v17, %v8925_v12  ;;  %v4487_v41 = vmul.f32 %v9017_v36, %v9017_v36 }
 0x732   : > { %v4525_v44 = vsel %vm575_vm2, %v4485_v38, 0.0  ;;  %v9038_v55 = vsub.f32 %v8812_v57, %v8925_v12  ;;  %v4488_v39 = vmul.f32 %v9024_v56, %v9024_v56  ;;  %v4527_v52 = vsel %vm575_vm2, %v4486_v11, 0.0 }
 0x733   : > { %v4516_v7 = vadd.f32 %v4515_v60, %v4514_v8  ;;  %v9045_v17 = vsub.f32 %v8821_v16, %v8925_v12  ;;  %v4489_v54 = vmul.f32 %v9031_v33, %v9031_v33  ;;  %v4529_v19 = vsel %vm575_vm2, %v4487_v41, 0.0 }
 0x734   : > { %v9052_v57 = vsub.f32 %v8831_v31, %v8925_v12  ;;  %v4490_v63 = vmul.f32 %v9038_v55, %v9038_v55  ;;  %v4531_v8 = vsel %vm575_vm2, %v4488_v39, 0.0  ;;  %v9059_v16 = vsub.f32 %v8841_v28, %v8925_v12 }
 0x735   : > { %v4518_v62 = vadd.f32 %v4517_v21, %v4516_v7  ;;  %v4491_v60 = vmul.f32 %v9045_v17, %v9045_v17  ;;  %v4533_v7 = vsel %vm575_vm2, %v4489_v54, 0.0  ;;  %v9066_v31 = vsub.f32 %v8848_v22, %v8925_v12 }
 0x736   : > { %v4492_v21 = vmul.f32 %v9052_v57, %v9052_v57  ;;  %v9073_v28 = vsub.f32 %v8856_v23, %v8925_v12  ;;  %v4493_v27 = vmul.f32 %v9059_v16, %v9059_v16  ;;  %v9080_v22 = vsub.f32 %v8864_v51, %v8925_v12 }
 0x737   : > { %v4520_v29 = vadd.f32 %v4519_v50, %v4518_v62  ;;  %v4535_v62 = vsel %vm575_vm2, %v4490_v63, 0.0  ;;  %v4537_v50 = vsel %vm575_vm2, %v4491_v60, 0.0  ;;  %v4494_v40 = vmul.f32 %v9066_v31, %v9066_v31 }
 0x738   : > { %v4539_v38 = vsel %vm575_vm2, %v4492_v21, 0.0  ;;  %v9087_v23 = vsub.f32 %v8873_v30, %v8925_v12  ;;  %v4541_v11 = vsel %vm575_vm2, %v4493_v27, 0.0  ;;  %v9094_v51 = vsub.f32 %v8879_v25, %v8925_v12 }
 0x739   : > { %v4522_v46 = vadd.f32 %v4521_v20, %v4520_v29  ;;  %v4543_v41 = vsel %vm575_vm2, %v4494_v40, 0.0  ;;  %v9101_v30 = vsub.f32 %v8885_v14, %v8925_v12  ;;  %v9108_v25 = vsub.f32 %v8890_v42, %v8925_v12 }
 0x73a   : > { %v9115_v14 = vsub.f32 %v8897_v32, %v8925_v12  ;;  %v4502_v32 = vmul.f32 %v8929_v43, %v8929_v43 }
 0x73b   : > { %v4524_v9 = vadd.f32 %v4523_v2, %v4522_v46  ;;  %v4495_v46 = vmul.f32 %v9073_v28, %v9073_v28  ;;  %v4500_v42 = vmul.f32 %v9108_v25, %v9108_v25 }
 0x73c   : > { %v4559_v40 = vsel %vm575_vm2, %v4502_v32, 0.0 }
 0x73d   : > { %v4526_v13 = vadd.f32 %v4525_v44, %v4524_v9  ;;  %v4496_v9 = vmul.f32 %v9080_v22, %v9080_v22  ;;  %v4545_v39 = vsel %vm575_vm2, %v4495_v46, 0.0  ;;  %v4555_v12 = vsel %vm575_vm2, %v4500_v42, 0.0 }
 0x73f   : > { %v4528_v15 = vadd.f32 %v4527_v52, %v4526_v13  ;;  %v4497_v13 = vmul.f32 %v9087_v23, %v9087_v23  ;;  %v4547_v54 = vsel %vm575_vm2, %v4496_v9, 0.0 }
 0x741   : > { %v4530_v37 = vadd.f32 %v4529_v19, %v4528_v15  ;;  %v4498_v15 = vmul.f32 %v9094_v51, %v9094_v51  ;;  %v4549_v63 = vsel %vm575_vm2, %v4497_v13, 0.0 }
 0x743   : > { %v4532_v53 = vadd.f32 %v4531_v8, %v4530_v37  ;;  %v4499_v37 = vmul.f32 %v9101_v30, %v9101_v30 }
 0x745   : > { %v4534_v58 = vadd.f32 %v4533_v7, %v4532_v53  ;;  %v4551_v53 = vsel %vm575_vm2, %v4498_v15, 0.0  ;;  %v4501_v7 = vmul.f32 %v9115_v14, %v9115_v14 }
 0x747   : > { %v4536_v24 = vadd.f32 %v4535_v62, %v4534_v58  ;;  %v4553_v58 = vsel %vm575_vm2, %v4499_v37, 0.0  ;;  %v4557_v27 = vsel %vm575_vm2, %v4501_v7, 0.0 }
 0x749   : > { %v4538_v29 = vadd.f32 %v4537_v50, %v4536_v24  ;;  %v4503_v24 = vmul.f32 %v8932_v18, %v8932_v18 }
 0x74b   : > { %v4540_v20 = vadd.f32 %v4539_v38, %v4538_v29  ;;  %v4504_v29 = vmul.f32 %v8935_v45, %v8935_v45  ;;  %v4561_v46 = vsel %vm575_vm2, %v4503_v24, 0.0 }
 0x74d   : > { %v4542_v2 = vadd.f32 %v4541_v11, %v4540_v20  ;;  %v4505_v20 = vmul.f32 %v8938_v49, %v8938_v49  ;;  %v4563_v9 = vsel %vm575_vm2, %v4504_v29, 0.0 }
 0x74f   : > { %v4544_v44 = vadd.f32 %v4543_v41, %v4542_v2  ;;  %v4506_v2 = vmul.f32 %v8941_v4, %v8941_v4  ;;  %v4565_v13 = vsel %vm575_vm2, %v4505_v20, 0.0 }
 0x751   : > { %v4546_v52 = vadd.f32 %v4545_v39, %v4544_v44  ;;  %v4507_v44 = vmul.f32 %v8944_v6, %v8944_v6 }
 0x753   : > { %v4548_v19 = vadd.f32 %v4547_v54, %v4546_v52  ;;  %v4567_v52 = vsel %vm575_vm2, %v4506_v2, 0.0  ;;  %v4569_v54 = vsel %vm575_vm2, %v4507_v44, 0.0 }
 0x755   : > { %v4550_v8 = vadd.f32 %v4549_v63, %v4548_v19 }
 0x757   : > { %v4552_v60 = vadd.f32 %v4551_v53, %v4550_v8 }
 0x759   : > { %v4554_v21 = vadd.f32 %v4553_v58, %v4552_v60 }
 0x75b   : > { %v4556_v62 = vadd.f32 %v4555_v12, %v4554_v21 }
 0x75d   : > { %v4558_v50 = vadd.f32 %v4557_v27, %v4556_v62 }
 0x75f   : > { %v4560_v38 = vadd.f32 %v4559_v40, %v4558_v50 }
 0x761   : > { %v4562_v11 = vadd.f32 %v4561_v46, %v4560_v38  ;;  %v5383_v46 = vld [vmem:[%s5491_s8 + $0x8] sm:$0xff] }
 0x763   : > { %v4564_v41 = vadd.f32 %v4563_v9, %v4562_v11  ;;  %v5384_v11 = vld [vmem:[%s5491_s8 + $0x10] sm:$0xff] }
 0x765   : > { %v4566_v39 = vadd.f32 %v4565_v13, %v4564_v41  ;;  %v5385_v41 = vld [vmem:[%s5491_s8 + $0x18] sm:$0xff] }
 0x767   : > { %v4568_v15 = vadd.f32 %v4567_v52, %v4566_v39  ;;  %v5387_v52 = vld [vmem:[%s5491_s8 + $0x28] sm:$0xff] }
 0x769   : > { %v4570_v19 = vadd.f32 %v4569_v54, %v4568_v15  ;;  %v5388_v54 = vld [vmem:[%s5491_s8 + $0x30] sm:$0xff] }
 0x76b   : > { %v4571_v37 = vrot.slane %v4570_v19, 4 }
 0x76d   : > { %v4572_v63 = vadd.f32 %v4571_v37, %v4570_v19  ;;  %v5389_v37 = vld [vmem:[%s5491_s8 + $0x38] sm:$0xff] }
 0x76f   : > { %v4573_v8 = vrot.slane %v4572_v63, 2 }
 0x771   : > { %v4574_v42 = vadd.f32 %v4573_v8, %v4572_v63  ;;  %v5390_v8 = vld [vmem:[%s5491_s8 + $0x40] sm:$0xff] }
 0x773   : > { %v4575_v53 = vrot.slane %v4574_v42, 1 }
 0x775   : > { %v4576_v60 = vadd.f32 %v4575_v53, %v4574_v42  ;;  %v5391_v53 = vld [vmem:[%s5491_s8 + $0x48] sm:$0xff] }
 0x777   : > { %v4577_v7 = vmul.f32 %v4576_v60, %v9939_v5 }
 0x779   : > { %v4578_v58 = vadd.f32 1e-05, %v4577_v7  ;;  %v5392_v7 = vld [vmem:[%s5491_s8 + $0x50] sm:$0xff] }
 0x77b   : > { %5380 = vrsqrt.f32 %v4578_v58  ;;  %vm4585_vm10 = vweird.f32 %v4578_v58 }
 0x781   : > { %v5381_v21 = vpop.eup %5380 }
 0x782   : > { %v4580_v32 = vmul.f32 %v5381_v21, %v4578_v58  ;;  %vm4586_vm9 = vweird.f32 %v5381_v21 }
 0x783   : > { %vm4587_vm11 = vmor %vm4585_vm10, %vm4586_vm9 }
 0x784   : > { %v4581_v12 = vmul.f32 %v5381_v21, %v4580_v32 }
 0x786   : > { %v4582_v62 = vmul.f32 0.5, %v4581_v12  ;;  %v5394_v12 = vld [vmem:[%s5491_s8 + $0x60] sm:$0xff] }
 0x788   : > { %v4583_v24 = vsub.f32 1.5, %v4582_v62 }
 0x78a   : > { %v4584_v27 = vmul.f32 %v5381_v21, %v4583_v24  ;;  %v5395_v24 = vld [vmem:[%s5491_s8 + $0x68] sm:$0xff] }
 0x78c   : > { %v9147_v50 = vsel %vm4587_vm11, %v5381_v21, %v4584_v27  ;;  %v5393_v21 = vld [vmem:[%s5491_s8 + $0x58] sm:$0xff] }
 0x78d   : > { %v4589_v5 = vmul.f32 %v9147_v50, %v8948_v1  ;;  %v4590_v29 = vmul.f32 %v9147_v50, %v8952_v26  ;;  %v4591_v40 = vmul.f32 %v9147_v50, %v8956_v48  ;;  %v4592_v38 = vmul.f32 %v9147_v50, %v8960_v35  ;;  %v5382_v48 = vld [vmem:[%s5491_s8] sm:$0xff] }
 0x78e   : > { %v4593_v20 = vmul.f32 %v9147_v50, %v8968_v47  ;;  %v4594_v1 = vmul.f32 %v9147_v50, %v8974_v34  ;;  %v4595_v26 = vmul.f32 %v9147_v50, %v8982_v59  ;;  %v4596_v9 = vmul.f32 %v9147_v50, %v8989_v10  ;;  %v5386_v59 = vld [vmem:[%s5491_s8 + $0x20] sm:$0xff] }
 0x78f   : > { %v4621_v35 = vadd.f32 %v5382_v48, %v4589_v5  ;;  %v4622_v47 = vadd.f32 %v5383_v46, %v4590_v29  ;;  %v4623_v2 = vadd.f32 %v5384_v11, %v4591_v40  ;;  %v4624_v44 = vadd.f32 %v5385_v41, %v4592_v38  ;;  %v5396_v5 = vld [vmem:[%s5491_s8 + $0x70] sm:$0xff]  ;;  %v5397_v40 = vld [vmem:[%s5491_s8 + $0x78] sm:$0xff]  ;;  %v5403_v41 = vld [vmem:[%s5491_s8 + $0xa8] sm:$0xff] }
 0x790   : > { %v4597_v34 = vmul.f32 %v9147_v50, %v8996_v0  ;;  %v4625_v13 = vadd.f32 %v5386_v59, %v4593_v20  ;;  %v4598_v39 = vmul.f32 %v9147_v50, %v9003_v3  ;;  %v4626_v15 = vadd.f32 %v5387_v52, %v4594_v1  ;;  %v5398_v20 = vld [vmem:[%s5491_s8 + $0x80] sm:$0xff] }
 0x791   : > { %4653 = vst.msk [vmem:[%s9164_s22] sm:$0xff] %vm575_vm2, %v4621_v35  ;;  %v4599_v10 = vmul.f32 %v9147_v50, %v9010_v61  ;;  %v4627_v0 = vadd.f32 %v5388_v54, %v4595_v26  ;;  %v4600_v19 = vmul.f32 %v9147_v50, %v9017_v36  ;;  %v4628_v3 = vadd.f32 %v5389_v37, %v4596_v9  ;;  %v5399_v26 = vld [vmem:[%s5491_s8 + $0x88] sm:$0xff]  ;;  %v5400_v35 = vld [vmem:[%s5491_s8 + $0x90] sm:$0xff] }
 0x792   : > { %4654 = vst.msk [vmem:[%s9164_s22 + $0x8] sm:$0xff] %vm575_vm2, %v4622_v47  ;;  %v4601_v63 = vmul.f32 %v9147_v50, %v9024_v56  ;;  %v4629_v61 = vadd.f32 %v5390_v8, %v4597_v34  ;;  %v4602_v42 = vmul.f32 %v9147_v50, %v9031_v33  ;;  %v4630_v36 = vadd.f32 %v5391_v53, %v4598_v39  ;;  %v5401_v47 = vld [vmem:[%s5491_s8 + $0x98] sm:$0xff]  ;;  %v5404_v34 = vld [vmem:[%s5491_s8 + $0xb0] sm:$0xff] }
 0x793   : > { %4655 = vst.msk [vmem:[%s9164_s22 + $0x10] sm:$0xff] %vm575_vm2, %v4623_v2  ;;  %v4603_v60 = vmul.f32 %v9147_v50, %v9038_v55  ;;  %v4631_v56 = vadd.f32 %v5392_v7, %v4599_v10  ;;  %v4604_v58 = vmul.f32 %v9147_v50, %v9045_v17  ;;  %v4632_v33 = vadd.f32 %v5393_v21, %v4600_v19  ;;  %v5402_v2 = vld [vmem:[%s5491_s8 + $0xa0] sm:$0xff] }
 0x794   : > { %4656 = vst.msk [vmem:[%s9164_s22 + $0x18] sm:$0xff] %vm575_vm2, %v4624_v44  ;;  %v4605_v32 = vmul.f32 %v9147_v50, %v9052_v57  ;;  %v4633_v55 = vadd.f32 %v5394_v12, %v4601_v63  ;;  %v4606_v62 = vmul.f32 %v9147_v50, %v9059_v16  ;;  %v4634_v17 = vadd.f32 %v5395_v24, %v4602_v42  ;;  %v5411_v63 = vld [vmem:[%s5491_s8 + $0xe8] sm:$0xff] }
 0x795   : > { %4657 = vst.msk [vmem:[%s9164_s22 + $0x20] sm:$0xff] %vm575_vm2, %v4625_v13  ;;  %v4607_v27 = vmul.f32 %v9147_v50, %v9066_v31  ;;  %v4635_v57 = vadd.f32 %v5396_v5, %v4603_v60  ;;  %v4608_v29 = vmul.f32 %v9147_v50, %v9073_v28  ;;  %v4636_v16 = vadd.f32 %v5397_v40, %v4604_v58  ;;  %v5405_v13 = vld [vmem:[%s5491_s8 + $0xb8] sm:$0xff] }
 0x796   : > { %4658 = vst.msk [vmem:[%s9164_s22 + $0x28] sm:$0xff] %vm575_vm2, %v4626_v15  ;;  %v4609_v38 = vmul.f32 %v9147_v50, %v9080_v22  ;;  %v4637_v31 = vadd.f32 %v5398_v20, %v4605_v32  ;;  %v4610_v1 = vmul.f32 %v9147_v50, %v9087_v23  ;;  %v4638_v28 = vadd.f32 %v5399_v26, %v4606_v62 }
 0x797   : > { %4659 = vst.msk [vmem:[%s9164_s22 + $0x30] sm:$0xff] %vm575_vm2, %v4627_v0  ;;  %v4611_v48 = vmul.f32 %v9147_v50, %v9094_v51  ;;  %v4639_v22 = vadd.f32 %v5400_v35, %v4607_v27  ;;  %v4612_v46 = vmul.f32 %v9147_v50, %v9101_v30  ;;  %v4640_v23 = vadd.f32 %v5401_v47, %v4608_v29 }
 0x798   : > { %4660 = vst.msk [vmem:[%s9164_s22 + $0x38] sm:$0xff] %vm575_vm2, %v4628_v3  ;;  %v4613_v11 = vmul.f32 %v9147_v50, %v9108_v25  ;;  %v4641_v51 = vadd.f32 %v5402_v2, %v4609_v38  ;;  %v4614_v9 = vmul.f32 %v9147_v50, %v9115_v14  ;;  %v4642_v30 = vadd.f32 %v5403_v41, %v4610_v1  ;;  %v5410_v3 = vld [vmem:[%s5491_s8 + $0xe0] sm:$0xff] }
 0x799   : > { %4661 = vst.msk [vmem:[%s9164_s22 + $0x40] sm:$0xff] %vm575_vm2, %v4629_v61  ;;  %v4615_v44 = vmul.f32 %v9147_v50, %v8929_v43  ;;  %v4643_v25 = vadd.f32 %v5404_v34, %v4611_v48  ;;  %v4616_v59 = vmul.f32 %v9147_v50, %v8932_v18  ;;  %v4644_v14 = vadd.f32 %v5405_v13, %v4612_v46  ;;  %v5406_v43 = vld [vmem:[%s5491_s8 + $0xc0] sm:$0xff]  ;;  %v5407_v18 = vld [vmem:[%s5491_s8 + $0xc8] sm:$0xff]  ;;  %v5412_v61 = vld [vmem:[%s5491_s8 + $0xf0] sm:$0xff] }
 0x79a   : > { %4662 = vst.msk [vmem:[%s9164_s22 + $0x48] sm:$0xff] %vm575_vm2, %v4630_v36  ;;  %v4617_v39 = vmul.f32 %v9147_v50, %v8935_v45  ;;  %v4645_v52 = vadd.f32 %v5406_v43, %v4613_v11  ;;  %v4618_v15 = vmul.f32 %v9147_v50, %v8938_v49  ;;  %v4646_v10 = vadd.f32 %v5407_v18, %v4614_v9  ;;  %v5408_v45 = vld [vmem:[%s5491_s8 + $0xd0] sm:$0xff]  ;;  %v5409_v49 = vld [vmem:[%s5491_s8 + $0xd8] sm:$0xff] }
 0x79b   : > { %4663 = vst.msk [vmem:[%s9164_s22 + $0x50] sm:$0xff] %vm575_vm2, %v4631_v56  ;;  %v4619_v54 = vmul.f32 %v9147_v50, %v8941_v4  ;;  %v4647_v0 = vadd.f32 %v5408_v45, %v4615_v44  ;;  %v4620_v19 = vmul.f32 %v9147_v50, %v8944_v6  ;;  %v4648_v37 = vadd.f32 %v5409_v49, %v4616_v59  ;;  %v5413_v6 = vld [vmem:[%s5491_s8 + $0xf8] sm:$0xff] }
 0x79c   : > { %4664 = vst.msk [vmem:[%s9164_s22 + $0x58] sm:$0xff] %vm575_vm2, %v4632_v33  ;;  %v4649_v4 = vadd.f32 %v5410_v3, %v4617_v39  ;;  %v4650_v8 = vadd.f32 %v5411_v63, %v4618_v15 }
 0x79d   : > { %4665 = vst.msk [vmem:[%s9164_s22 + $0x60] sm:$0xff] %vm575_vm2, %v4633_v55  ;;  %v4651_v42 = vadd.f32 %v5412_v61, %v4619_v54  ;;  %v4652_v50 = vadd.f32 %v5413_v6, %v4620_v19 }
 0x79e   : > { %4666 = vst.msk [vmem:[%s9164_s22 + $0x68] sm:$0xff] %vm575_vm2, %v4634_v17 }
 0x79f   : > { %4667 = vst.msk [vmem:[%s9164_s22 + $0x70] sm:$0xff] %vm575_vm2, %v4635_v57 }
 0x7a0   : > { %4668 = vst.msk [vmem:[%s9164_s22 + $0x78] sm:$0xff] %vm575_vm2, %v4636_v16 }
 0x7a1   : > { %4669 = vst.msk [vmem:[%s9164_s22 + $0x80] sm:$0xff] %vm575_vm2, %v4637_v31 }
 0x7a2   : > { %4670 = vst.msk [vmem:[%s9164_s22 + $0x88] sm:$0xff] %vm575_vm2, %v4638_v28 }
 0x7a3   : > { %4671 = vst.msk [vmem:[%s9164_s22 + $0x90] sm:$0xff] %vm575_vm2, %v4639_v22 }
 0x7a4   : > { %4672 = vst.msk [vmem:[%s9164_s22 + $0x98] sm:$0xff] %vm575_vm2, %v4640_v23 }
 0x7a5   : > { %4673 = vst.msk [vmem:[%s9164_s22 + $0xa0] sm:$0xff] %vm575_vm2, %v4641_v51 }
 0x7a6   : > { %4674 = vst.msk [vmem:[%s9164_s22 + $0xa8] sm:$0xff] %vm575_vm2, %v4642_v30 }
 0x7a7   : > { %4675 = vst.msk [vmem:[%s9164_s22 + $0xb0] sm:$0xff] %vm575_vm2, %v4643_v25 }
 0x7a8   : > { %4676 = vst.msk [vmem:[%s9164_s22 + $0xb8] sm:$0xff] %vm575_vm2, %v4644_v14 }
 0x7a9   : > { %4677 = vst.msk [vmem:[%s9164_s22 + $0xc0] sm:$0xff] %vm575_vm2, %v4645_v52 }
 0x7aa   : > { %4678 = vst.msk [vmem:[%s9164_s22 + $0xc8] sm:$0xff] %vm575_vm2, %v4646_v10 }
 0x7ab   : > { %4679 = vst.msk [vmem:[%s9164_s22 + $0xd0] sm:$0xff] %vm575_vm2, %v4647_v0 }
 0x7ac   : > { %4680 = vst.msk [vmem:[%s9164_s22 + $0xd8] sm:$0xff] %vm575_vm2, %v4648_v37 }
 0x7ad   : > { %4681 = vst.msk [vmem:[%s9164_s22 + $0xe0] sm:$0xff] %vm575_vm2, %v4649_v4 }
 0x7ae   : > { %4682 = vst.msk [vmem:[%s9164_s22 + $0xe8] sm:$0xff] %vm575_vm2, %v4650_v8 }
 0x7af   : > { %4683 = vst.msk [vmem:[%s9164_s22 + $0xf0] sm:$0xff] %vm575_vm2, %v4651_v42 }
 0x7b0   : > { %4684 = vst.msk [vmem:[%s9164_s22 + $0xf8] sm:$0xff] %vm575_vm2, %v4652_v50 }
 0x7b1 PF: > { %s15_s18 = sadd.s32 1, %s5420_s18  }
 0x7b2   : > { %p12_p4 = scmp.ge.s32.totalorder %s15_s18, 4  }
 0x7b4   :  { %14 = sbr.rel (!%p12_p4) target bundleno = 1 (0x1), region = 86 }

</bundles_post_ra>
